<compile_context>
chip_gen: v5e
topology: v5e:2x2
jax: 0.10.0
libtpu: 0.0.40
codegen_flags: <defaults>
</compile_context>

<pallas_src>
import math
import numpy as np

import jax
import jax.numpy as jnp
from jax.experimental import pallas as pl
from jax.experimental.pallas import tpu as pltpu  # noqa: F401  (kept for TPU-specific params if needed)

# ------------------------- small synthetic config ---------------------------
LATENT_DIM = 32        # self.latent_dim  (latent_dim[-1])
TEXT_DIM   = 16        # text_encoded_dim (dim of the sinusoidal time proj)
FF_SIZE    = 64        # dim_feedforward
NUM_HEADS  = 4
NUM_LAYERS = 2         # (default is 7; kept small for this synthetic script)
BATCH      = 2
LAT_SEQ    = 8         # latent sequence length L  -> latent: (B, L, D)
MAX_LEN    = 64        # learned positional-embedding table length

_F32 = jnp.float32
_BF16 = jnp.bfloat16


# ----------------------------- in-kernel helpers ----------------------------
def _erf(x):
    # Abramowitz & Stegun 7.1.26 rational approximation, |err| < 1.5e-7
    # (float32 replacement for lax.erf inside the kernel).
    p = 0.3275911
    a1, a2, a3, a4, a5 = (0.254829592, -0.284496736, 1.421413741,
                          -1.453152027, 1.061405429)
    ax = jnp.abs(x)
    t = 1.0 / (1.0 + p * ax)
    poly = ((((a5 * t + a4) * t + a3) * t + a2) * t + a1) * t
    y = 1.0 - poly * jnp.exp(-ax * ax)
    return jnp.where(x >= 0, y, -y)


def _gelu_exact(x):
    # matches torch.nn.functional.gelu default (erf-based)
    return 0.5 * x * (1.0 + _erf(x * (1.0 / math.sqrt(2.0))))


def _layer_norm(x, w, b, eps=1e-5):
    mu = jnp.mean(x, axis=-1, keepdims=True)
    var = jnp.mean(jnp.square(x - mu), axis=-1, keepdims=True)
    return (x - mu) * jax.lax.rsqrt(var + eps) * w + b


def _mm(a, b):
    # bf16 MXU matmul with f32 accumulation.
    return jnp.dot(a.astype(_BF16), b.astype(_BF16),
                   preferred_element_type=jnp.float32)


# --------------------- single fused forward-pass kernel ---------------------
def _mld_fused_kernel(latent_ref, tsin_ref, bias_ref, pe_ref,
                      te_w1_ref, te_b1_ref, te_w2_ref, te_b2_ref,
                      wqkv_ref, bqkv_ref, wo_ref, bo_ref,
                      ln1w_ref, ln1b_ref, w1_ref, b1_ref, w2_ref, b2_ref,
                      ln2w_ref, ln2b_ref, out_ref):
    B, L, D = latent_ref.shape
    S = L + 1                       # latent tokens + one time token
    T = B * S                       # total tokens, batch-major (b*S + s)
    NL = wqkv_ref.shape[0]
    H = wo_ref.shape[1]
    dh = D // H
    scale = 1.0 / math.sqrt(dh)

    # ---- TimestepEmbedding MLP: Linear(TEXT_DIM->D) -> SiLU -> Linear(D->D) ----
    t = tsin_ref[...]                                        # (B, TEXT_DIM)
    h = _mm(t, te_w1_ref[...]) + te_b1_ref[...]
    h = h * jax.nn.sigmoid(h)                                # SiLU
    temb = _mm(h, te_w2_ref[...]) + te_b2_ref[...]           # (B, D)

    # ---- build the token matrix: [latent_b ; time_token_b] + positional emb ----
    lat = latent_ref[...]                                    # (B, L, D)
    pe = pe_ref[...]                                         # (S, D)
    pieces = []
    for b in range(B):
        pieces.append(lat[b] + pe[:L])                       # (L, D)
        pieces.append(temb[b:b + 1, :] + pe[L:])             # (1, D)
    x = jnp.concatenate(pieces, axis=0)                      # (T, D) f32

    bias = bias_ref[...]                                     # (T, T) block-diag additive

    # ---- stack of post-norm nn.TransformerEncoderLayer ----
    for l in range(NL):
        # self-attention: separate Q/K/V matmuls (no fused-qkv lane slicing)
        q = _mm(x, wqkv_ref[l, 0]) + bqkv_ref[l, 0]          # (T, D)
        k = _mm(x, wqkv_ref[l, 1]) + bqkv_ref[l, 1]
        v = _mm(x, wqkv_ref[l, 2]) + bqkv_ref[l, 2]

        attn = jnp.zeros((T, D), jnp.float32)
        for hh in range(H):
            sl = slice(hh * dh, (hh + 1) * dh)
            s = _mm(q[:, sl], k[:, sl].T) * scale + bias     # (T, T)
            m = jnp.max(s, axis=-1, keepdims=True)
            e = jnp.exp(s - m)                               # masked entries -> exactly 0
            denom = jnp.sum(e, axis=-1, keepdims=True)
            p = e * pl.reciprocal(denom, approx=True)
            ctx = _mm(p, v[:, sl])                           # (T, dh)
            # fold this head's slab of the output projection (no concat)
            attn = attn + _mm(ctx, wo_ref[l, hh])            # (T, D)
        attn = attn + bo_ref[l]

        # post-norm residual block 1 (dropout = identity in eval mode)
        x = _layer_norm(x + attn, ln1w_ref[l], ln1b_ref[l])

        # feed-forward
        h1 = _gelu_exact(_mm(x, w1_ref[l]) + b1_ref[l])
        h2 = _mm(h1, w2_ref[l]) + b2_ref[l]

        # post-norm residual block 2
        x = _layer_norm(x + h2, ln2w_ref[l], ln2b_ref[l])

    # ---- sample = tokens[:L] per batch element, written batch-major ----
    for b in range(B):
        out_ref[b] = x[b * S: b * S + L, :]                  # (L, D)


# ------------------------------ plain-JAX glue -------------------------------
def timesteps_sinusoidal(timesteps, dim=TEXT_DIM, flip_sin_to_cos=True,
                         freq_shift=0.0):
    """diffusers Timesteps / get_timestep_embedding, scale=1."""
    half = dim // 2
    exponent = (-math.log(10000.0)
                * jnp.arange(half, dtype=_F32) / (half - freq_shift))
    freqs = jnp.exp(exponent)
    args = timesteps.astype(_F32)[:, None] * freqs[None, :]
    emb = jnp.concatenate([jnp.sin(args), jnp.cos(args)], axis=-1)
    if flip_sin_to_cos:
        emb = jnp.concatenate([emb[:, half:], emb[:, :half]], axis=-1)
    return emb


def init_params(key):
    def nrm(k, shape, dtype=_F32):
        return (0.02 * jax.random.normal(k, shape, _F32)).astype(dtype)

    NL, D, H, FF, TD = NUM_LAYERS, LATENT_DIM, NUM_HEADS, FF_SIZE, TEXT_DIM
    dh = D // H
    ks = iter(jax.random.split(key, 16))
    return {
        # TimestepEmbedding (weights transposed: (in, out)); matmul weights bf16
        "te_w1": nrm(next(ks), (TD, D), _BF16),
        "te_b1": nrm(next(ks), (1, D)),
        "te_w2": nrm(next(ks), (D, D), _BF16),
        "te_b2": nrm(next(ks), (1, D)),
        # learned 1-D positional embedding table (max_len, D)
        "pe":    nrm(next(ks), (MAX_LEN, D)),
        # per-layer weights, stacked along a leading NUM_LAYERS axis
        "wqkv":  nrm(next(ks), (NL, 3, D, D), _BF16),   # W_q^T, W_k^T, W_v^T
        "bqkv":  nrm(next(ks), (NL, 3, 1, D)),
        "wo":    nrm(next(ks), (NL, H, dh, D), _BF16),  # out_proj W^T split per head
        "bo":    nrm(next(ks), (NL, 1, D)),
        "ln1w":  jnp.ones((NL, 1, D), _F32),
        "ln1b":  jnp.zeros((NL, 1, D), _F32),
        "w1":    nrm(next(ks), (NL, D, FF), _BF16),     # linear1 W^T
        "b1":    nrm(next(ks), (NL, 1, FF)),
        "w2":    nrm(next(ks), (NL, FF, D), _BF16),     # linear2 W^T
        "b2":    nrm(next(ks), (NL, 1, D)),
        "ln2w":  jnp.ones((NL, 1, D), _F32),
        "ln2b":  jnp.zeros((NL, 1, D), _F32),
    }


def mld_denoiser_forward(latent, timestep, params):
    """latent: (B, L, D) float32, timestep: scalar int.
    Returns (sample,) with sample shaped (L, B, D) — the PyTorch seq-first output."""
    B, L, D = latent.shape
    S = L + 1

    # timesteps = timestep.expand(B); sinusoidal projection (tiny, host-side)
    timesteps = jnp.broadcast_to(jnp.asarray(timestep), (B,))
    t_sin = timesteps_sinusoidal(timesteps).astype(_F32)          # (B, TEXT_DIM)

    # learned positional embedding rows actually used
    pe_s = params["pe"][:S]                                       # (S, D)

    # block-diagonal additive attention bias (compile-time numpy constant):
    # tokens of different batch elements must not attend to each other.
    seg = np.repeat(np.arange(B, dtype=np.int32), S)
    attn_bias = jnp.asarray(
        np.where(seg[:, None] == seg[None, :], 0.0, -1e30).astype(np.float32))

    out_bld = pl.pallas_call(
        _mld_fused_kernel,
        out_shape=jax.ShapeDtypeStruct((B, L, D), _F32),
    )(latent, t_sin, attn_bias, pe_s,
      params["te_w1"], params["te_b1"], params["te_w2"], params["te_b2"],
      params["wqkv"], params["bqkv"], params["wo"], params["bo"],
      params["ln1w"], params["ln1b"],
      params["w1"], params["b1"], params["w2"], params["b2"],
      params["ln2w"], params["ln2b"])

    # single tiny layout op left host-side: (B, L, D) -> (L, B, D) seq-first
    sample = jnp.transpose(out_bld, (1, 0, 2))
    return (sample,)


if __name__ == "__main__":
    key = jax.random.PRNGKey(0)
    pkey, lkey = jax.random.split(key)
    params = init_params(pkey)

    latent = jax.random.normal(lkey, (BATCH, LAT_SEQ, LATENT_DIM), _F32)
    timestep = jnp.array(17, dtype=jnp.int32)

    fwd = jax.jit(mld_denoiser_forward)
    (sample,) = fwd(latent, timestep, params)
    sample = jax.block_until_ready(sample)
    assert sample.shape == (LAT_SEQ, BATCH, LATENT_DIM)
    assert bool(jnp.all(jnp.isfinite(sample)))
    print("KERNEL_OK")
</pallas_src>

<mosaic_0001>
module attributes {stable_mosaic.version = 11 : i64} {
  func.func @_mld_fused_kernel(%arg0: memref<2x8x32xf32, #tpu.memory_space<vmem>>, %arg1: memref<2x16xf32, #tpu.memory_space<vmem>>, %arg2: memref<18x18xf32, #tpu.memory_space<vmem>>, %arg3: memref<9x32xf32, #tpu.memory_space<vmem>>, %arg4: memref<16x32xbf16, #tpu.memory_space<vmem>>, %arg5: memref<1x32xf32, #tpu.memory_space<vmem>>, %arg6: memref<32x32xbf16, #tpu.memory_space<vmem>>, %arg7: memref<1x32xf32, #tpu.memory_space<vmem>>, %arg8: memref<2x3x32x32xbf16, #tpu.memory_space<vmem>>, %arg9: memref<2x3x1x32xf32, #tpu.memory_space<vmem>>, %arg10: memref<2x4x8x32xbf16, #tpu.memory_space<vmem>>, %arg11: memref<2x1x32xf32, #tpu.memory_space<vmem>>, %arg12: memref<2x1x32xf32, #tpu.memory_space<vmem>>, %arg13: memref<2x1x32xf32, #tpu.memory_space<vmem>>, %arg14: memref<2x32x64xbf16, #tpu.memory_space<vmem>>, %arg15: memref<2x1x64xf32, #tpu.memory_space<vmem>>, %arg16: memref<2x64x32xbf16, #tpu.memory_space<vmem>>, %arg17: memref<2x1x32xf32, #tpu.memory_space<vmem>>, %arg18: memref<2x1x32xf32, #tpu.memory_space<vmem>>, %arg19: memref<2x1x32xf32, #tpu.memory_space<vmem>>, %arg20: memref<2x8x32xf32, #tpu.memory_space<vmem>>) attributes {dimension_semantics = [], scalar_prefetch = 0 : i64, scratch_operands = 0 : i64, tpu.core_type = #tpu.core_type<tc>} {
    %c0 = arith.constant 0 : index
    %c0_0 = arith.constant 0 : index
    %0 = vector.load %arg1[%c0, %c0_0] : memref<2x16xf32, #tpu.memory_space<vmem>>, vector<2x16xf32>
    %c0_1 = arith.constant 0 : index
    %c0_2 = arith.constant 0 : index
    %1 = vector.load %arg4[%c0_1, %c0_2] : memref<16x32xbf16, #tpu.memory_space<vmem>>, vector<16x32xbf16>
    %2 = arith.truncf %0 : vector<2x16xf32> to vector<2x16xbf16>
    %cst = arith.constant dense<0.000000e+00> : vector<2x32xf32>
    %3 = tpu.matmul %2, %1, %cst {dimension_numbers = #tpu.dot_dimension_numbers<[1], [0], [0], [1], [0, 0, 1, 1], [], []>} : vector<2x16xbf16>, vector<16x32xbf16>, vector<2x32xf32> -> vector<2x32xf32>
    %c0_3 = arith.constant 0 : index
    %c0_4 = arith.constant 0 : index
    %4 = vector.load %arg5[%c0_3, %c0_4] : memref<1x32xf32, #tpu.memory_space<vmem>>, vector<1x32xf32>
    %5 = vector.broadcast %4 : vector<1x32xf32> to vector<2x32xf32>
    %6 = arith.addf %3, %5 : vector<2x32xf32>
    %7 = arith.negf %6 : vector<2x32xf32>
    %8 = math.exp %7 : vector<2x32xf32>
    %cst_5 = arith.constant 1.000000e+00 : f32
    %9 = vector.broadcast %cst_5 : f32 to vector<2x32xf32>
    %10 = arith.addf %9, %8 : vector<2x32xf32>
    %11 = arith.divf %9, %10 : vector<2x32xf32>
    %12 = arith.mulf %6, %11 : vector<2x32xf32>
    %c0_6 = arith.constant 0 : index
    %c0_7 = arith.constant 0 : index
    %13 = vector.load %arg6[%c0_6, %c0_7] : memref<32x32xbf16, #tpu.memory_space<vmem>>, vector<32x32xbf16>
    %14 = arith.truncf %12 : vector<2x32xf32> to vector<2x32xbf16>
    %cst_8 = arith.constant dense<0.000000e+00> : vector<2x32xf32>
    %15 = tpu.matmul %14, %13, %cst_8 {dimension_numbers = #tpu.dot_dimension_numbers<[1], [0], [0], [1], [0, 0, 1, 1], [], []>} : vector<2x32xbf16>, vector<32x32xbf16>, vector<2x32xf32> -> vector<2x32xf32>
    %c0_9 = arith.constant 0 : index
    %c0_10 = arith.constant 0 : index
    %16 = vector.load %arg7[%c0_9, %c0_10] : memref<1x32xf32, #tpu.memory_space<vmem>>, vector<1x32xf32>
    %17 = vector.broadcast %16 : vector<1x32xf32> to vector<2x32xf32>
    %18 = arith.addf %15, %17 : vector<2x32xf32>
    %c0_11 = arith.constant 0 : index
    %c0_12 = arith.constant 0 : index
    %c0_13 = arith.constant 0 : index
    %19 = vector.load %arg0[%c0_11, %c0_12, %c0_13] : memref<2x8x32xf32, #tpu.memory_space<vmem>>, vector<2x8x32xf32>
    %c0_14 = arith.constant 0 : index
    %c0_15 = arith.constant 0 : index
    %20 = vector.load %arg3[%c0_14, %c0_15] : memref<9x32xf32, #tpu.memory_space<vmem>>, vector<9x32xf32>
    %21 = vector.extract_strided_slice %19 {offsets = [0, 0, 0], sizes = [1, 8, 32], strides = [1, 1, 1]} : vector<2x8x32xf32> to vector<1x8x32xf32>
    %22 = vector.shape_cast %21 : vector<1x8x32xf32> to vector<8x32xf32>
    %23 = vector.extract_strided_slice %20 {offsets = [0, 0], sizes = [8, 32], strides = [1, 1]} : vector<9x32xf32> to vector<8x32xf32>
    %24 = arith.addf %22, %23 : vector<8x32xf32>
    %25 = vector.extract_strided_slice %18 {offsets = [0, 0], sizes = [1, 32], strides = [1, 1]} : vector<2x32xf32> to vector<1x32xf32>
    %26 = vector.extract_strided_slice %20 {offsets = [8, 0], sizes = [1, 32], strides = [1, 1]} : vector<9x32xf32> to vector<1x32xf32>
    %27 = arith.addf %25, %26 : vector<1x32xf32>
    %28 = vector.extract_strided_slice %19 {offsets = [1, 0, 0], sizes = [1, 8, 32], strides = [1, 1, 1]} : vector<2x8x32xf32> to vector<1x8x32xf32>
    %29 = vector.shape_cast %28 : vector<1x8x32xf32> to vector<8x32xf32>
    %30 = vector.extract_strided_slice %20 {offsets = [0, 0], sizes = [8, 32], strides = [1, 1]} : vector<9x32xf32> to vector<8x32xf32>
    %31 = arith.addf %29, %30 : vector<8x32xf32>
    %32 = vector.extract_strided_slice %18 {offsets = [1, 0], sizes = [1, 32], strides = [1, 1]} : vector<2x32xf32> to vector<1x32xf32>
    %33 = vector.extract_strided_slice %20 {offsets = [8, 0], sizes = [1, 32], strides = [1, 1]} : vector<9x32xf32> to vector<1x32xf32>
    %34 = arith.addf %32, %33 : vector<1x32xf32>
    %35 = tpu.concatenate %24, %27, %31, %34 in 0 : vector<8x32xf32>, vector<1x32xf32>, vector<8x32xf32>, vector<1x32xf32> -> vector<18x32xf32>
    %c0_16 = arith.constant 0 : index
    %c0_17 = arith.constant 0 : index
    %36 = vector.load %arg2[%c0_16, %c0_17] : memref<18x18xf32, #tpu.memory_space<vmem>>, vector<18x18xf32>
    %c0_18 = arith.constant 0 : index
    %c0_19 = arith.constant 0 : index
    %c0_20 = arith.constant 0 : index
    %c0_21 = arith.constant 0 : index
    %37 = vector.load %arg8[%c0_18, %c0_19, %c0_20, %c0_21] : memref<2x3x32x32xbf16, #tpu.memory_space<vmem>>, vector<1x1x32x32xbf16>
    %38 = vector.shape_cast %37 : vector<1x1x32x32xbf16> to vector<32x32xbf16>
    %39 = arith.truncf %35 : vector<18x32xf32> to vector<18x32xbf16>
    %cst_22 = arith.constant dense<0.000000e+00> : vector<18x32xf32>
    %40 = tpu.matmul %39, %38, %cst_22 {dimension_numbers = #tpu.dot_dimension_numbers<[1], [0], [0], [1], [0, 0, 1, 1], [], []>} : vector<18x32xbf16>, vector<32x32xbf16>, vector<18x32xf32> -> vector<18x32xf32>
    %c0_23 = arith.constant 0 : index
    %c0_24 = arith.constant 0 : index
    %c0_25 = arith.constant 0 : index
    %c0_26 = arith.constant 0 : index
    %41 = vector.load %arg9[%c0_23, %c0_24, %c0_25, %c0_26] : memref<2x3x1x32xf32, #tpu.memory_space<vmem>>, vector<1x1x1x32xf32>
    %42 = vector.shape_cast %41 : vector<1x1x1x32xf32> to vector<1x32xf32>
    %43 = vector.broadcast %42 : vector<1x32xf32> to vector<18x32xf32>
    %44 = arith.addf %40, %43 : vector<18x32xf32>
    %c0_27 = arith.constant 0 : index
    %c1 = arith.constant 1 : index
    %c0_28 = arith.constant 0 : index
    %c0_29 = arith.constant 0 : index
    %45 = vector.load %arg8[%c0_27, %c1, %c0_28, %c0_29] : memref<2x3x32x32xbf16, #tpu.memory_space<vmem>>, vector<1x1x32x32xbf16>
    %46 = vector.shape_cast %45 : vector<1x1x32x32xbf16> to vector<32x32xbf16>
    %47 = arith.truncf %35 : vector<18x32xf32> to vector<18x32xbf16>
    %cst_30 = arith.constant dense<0.000000e+00> : vector<18x32xf32>
    %48 = tpu.matmul %47, %46, %cst_30 {dimension_numbers = #tpu.dot_dimension_numbers<[1], [0], [0], [1], [0, 0, 1, 1], [], []>} : vector<18x32xbf16>, vector<32x32xbf16>, vector<18x32xf32> -> vector<18x32xf32>
    %c0_31 = arith.constant 0 : index
    %c1_32 = arith.constant 1 : index
    %c0_33 = arith.constant 0 : index
    %c0_34 = arith.constant 0 : index
    %49 = vector.load %arg9[%c0_31, %c1_32, %c0_33, %c0_34] : memref<2x3x1x32xf32, #tpu.memory_space<vmem>>, vector<1x1x1x32xf32>
    %50 = vector.shape_cast %49 : vector<1x1x1x32xf32> to vector<1x32xf32>
    %51 = vector.broadcast %50 : vector<1x32xf32> to vector<18x32xf32>
    %52 = arith.addf %48, %51 : vector<18x32xf32>
    %c0_35 = arith.constant 0 : index
    %c2 = arith.constant 2 : index
    %c0_36 = arith.constant 0 : index
    %c0_37 = arith.constant 0 : index
    %53 = vector.load %arg8[%c0_35, %c2, %c0_36, %c0_37] : memref<2x3x32x32xbf16, #tpu.memory_space<vmem>>, vector<1x1x32x32xbf16>
    %54 = vector.shape_cast %53 : vector<1x1x32x32xbf16> to vector<32x32xbf16>
    %55 = arith.truncf %35 : vector<18x32xf32> to vector<18x32xbf16>
    %cst_38 = arith.constant dense<0.000000e+00> : vector<18x32xf32>
    %56 = tpu.matmul %55, %54, %cst_38 {dimension_numbers = #tpu.dot_dimension_numbers<[1], [0], [0], [1], [0, 0, 1, 1], [], []>} : vector<18x32xbf16>, vector<32x32xbf16>, vector<18x32xf32> -> vector<18x32xf32>
    %c0_39 = arith.constant 0 : index
    %c2_40 = arith.constant 2 : index
    %c0_41 = arith.constant 0 : index
    %c0_42 = arith.constant 0 : index
    %57 = vector.load %arg9[%c0_39, %c2_40, %c0_41, %c0_42] : memref<2x3x1x32xf32, #tpu.memory_space<vmem>>, vector<1x1x1x32xf32>
    %58 = vector.shape_cast %57 : vector<1x1x1x32xf32> to vector<1x32xf32>
    %59 = vector.broadcast %58 : vector<1x32xf32> to vector<18x32xf32>
    %60 = arith.addf %56, %59 : vector<18x32xf32>
    %cst_43 = arith.constant 0.000000e+00 : f32
    %61 = vector.broadcast %cst_43 : f32 to vector<18x32xf32>
    %62 = vector.extract_strided_slice %44 {offsets = [0, 0], sizes = [18, 8], strides = [1, 1]} : vector<18x32xf32> to vector<18x8xf32>
    %63 = vector.extract_strided_slice %52 {offsets = [0, 0], sizes = [18, 8], strides = [1, 1]} : vector<18x32xf32> to vector<18x8xf32>
    %64 = tpu.transpose %63, [1, 0] : vector<18x8xf32> -> vector<8x18xf32>
    %65 = arith.truncf %62 : vector<18x8xf32> to vector<18x8xbf16>
    %66 = arith.truncf %64 : vector<8x18xf32> to vector<8x18xbf16>
    %cst_44 = arith.constant dense<0.000000e+00> : vector<18x18xf32>
    %67 = tpu.matmul %65, %66, %cst_44 {dimension_numbers = #tpu.dot_dimension_numbers<[1], [0], [0], [1], [0, 0, 1, 1], [], []>} : vector<18x8xbf16>, vector<8x18xbf16>, vector<18x18xf32> -> vector<18x18xf32>
    %cst_45 = arith.constant 0.353553385 : f32
    %68 = vector.broadcast %cst_45 : f32 to vector<18x18xf32>
    %69 = arith.mulf %67, %68 : vector<18x18xf32>
    %70 = arith.addf %69, %36 : vector<18x18xf32>
    %cst_46 = arith.constant dense<0xFF800000> : vector<18xf32>
    %71 = vector.multi_reduction <maximumf>, %70, %cst_46 [1] : vector<18x18xf32> to vector<18xf32>
    %72 = vector.shape_cast %71 : vector<18xf32> to vector<18x1xf32>
    %73 = vector.broadcast %72 : vector<18x1xf32> to vector<18x18xf32>
    %74 = arith.subf %70, %73 : vector<18x18xf32>
    %75 = math.exp %74 : vector<18x18xf32>
    %cst_47 = arith.constant dense<0.000000e+00> : vector<18xf32>
    %76 = vector.multi_reduction <add>, %75, %cst_47 [1] : vector<18x18xf32> to vector<18xf32>
    %77 = vector.shape_cast %76 : vector<18xf32> to vector<18x1xf32>
    %78 = tpu.reciprocal %77 {approx = true} : vector<18x1xf32> -> vector<18x1xf32>
    %79 = vector.broadcast %78 : vector<18x1xf32> to vector<18x18xf32>
    %80 = arith.mulf %75, %79 : vector<18x18xf32>
    %81 = vector.extract_strided_slice %60 {offsets = [0, 0], sizes = [18, 8], strides = [1, 1]} : vector<18x32xf32> to vector<18x8xf32>
    %82 = arith.truncf %80 : vector<18x18xf32> to vector<18x18xbf16>
    %83 = arith.truncf %81 : vector<18x8xf32> to vector<18x8xbf16>
    %cst_48 = arith.constant dense<0.000000e+00> : vector<18x8xf32>
    %84 = tpu.matmul %82, %83, %cst_48 {dimension_numbers = #tpu.dot_dimension_numbers<[1], [0], [0], [1], [0, 0, 1, 1], [], []>} : vector<18x18xbf16>, vector<18x8xbf16>, vector<18x8xf32> -> vector<18x8xf32>
    %c0_49 = arith.constant 0 : index
    %c0_50 = arith.constant 0 : index
    %c0_51 = arith.constant 0 : index
    %c0_52 = arith.constant 0 : index
    %85 = vector.load %arg10[%c0_49, %c0_50, %c0_51, %c0_52] : memref<2x4x8x32xbf16, #tpu.memory_space<vmem>>, vector<1x1x8x32xbf16>
    %86 = vector.shape_cast %85 : vector<1x1x8x32xbf16> to vector<8x32xbf16>
    %87 = arith.truncf %84 : vector<18x8xf32> to vector<18x8xbf16>
    %cst_53 = arith.constant dense<0.000000e+00> : vector<18x32xf32>
    %88 = tpu.matmul %87, %86, %cst_53 {dimension_numbers = #tpu.dot_dimension_numbers<[1], [0], [0], [1], [0, 0, 1, 1], [], []>} : vector<18x8xbf16>, vector<8x32xbf16>, vector<18x32xf32> -> vector<18x32xf32>
    %89 = arith.addf %61, %88 : vector<18x32xf32>
    %90 = vector.extract_strided_slice %44 {offsets = [0, 8], sizes = [18, 8], strides = [1, 1]} : vector<18x32xf32> to vector<18x8xf32>
    %91 = vector.extract_strided_slice %52 {offsets = [0, 8], sizes = [18, 8], strides = [1, 1]} : vector<18x32xf32> to vector<18x8xf32>
    %92 = tpu.transpose %91, [1, 0] : vector<18x8xf32> -> vector<8x18xf32>
    %93 = arith.truncf %90 : vector<18x8xf32> to vector<18x8xbf16>
    %94 = arith.truncf %92 : vector<8x18xf32> to vector<8x18xbf16>
    %cst_54 = arith.constant dense<0.000000e+00> : vector<18x18xf32>
    %95 = tpu.matmul %93, %94, %cst_54 {dimension_numbers = #tpu.dot_dimension_numbers<[1], [0], [0], [1], [0, 0, 1, 1], [], []>} : vector<18x8xbf16>, vector<8x18xbf16>, vector<18x18xf32> -> vector<18x18xf32>
    %cst_55 = arith.constant 0.353553385 : f32
    %96 = vector.broadcast %cst_55 : f32 to vector<18x18xf32>
    %97 = arith.mulf %95, %96 : vector<18x18xf32>
    %98 = arith.addf %97, %36 : vector<18x18xf32>
    %cst_56 = arith.constant dense<0xFF800000> : vector<18xf32>
    %99 = vector.multi_reduction <maximumf>, %98, %cst_56 [1] : vector<18x18xf32> to vector<18xf32>
    %100 = vector.shape_cast %99 : vector<18xf32> to vector<18x1xf32>
    %101 = vector.broadcast %100 : vector<18x1xf32> to vector<18x18xf32>
    %102 = arith.subf %98, %101 : vector<18x18xf32>
    %103 = math.exp %102 : vector<18x18xf32>
    %cst_57 = arith.constant dense<0.000000e+00> : vector<18xf32>
    %104 = vector.multi_reduction <add>, %103, %cst_57 [1] : vector<18x18xf32> to vector<18xf32>
    %105 = vector.shape_cast %104 : vector<18xf32> to vector<18x1xf32>
    %106 = tpu.reciprocal %105 {approx = true} : vector<18x1xf32> -> vector<18x1xf32>
    %107 = vector.broadcast %106 : vector<18x1xf32> to vector<18x18xf32>
    %108 = arith.mulf %103, %107 : vector<18x18xf32>
    %109 = vector.extract_strided_slice %60 {offsets = [0, 8], sizes = [18, 8], strides = [1, 1]} : vector<18x32xf32> to vector<18x8xf32>
    %110 = arith.truncf %108 : vector<18x18xf32> to vector<18x18xbf16>
    %111 = arith.truncf %109 : vector<18x8xf32> to vector<18x8xbf16>
    %cst_58 = arith.constant dense<0.000000e+00> : vector<18x8xf32>
    %112 = tpu.matmul %110, %111, %cst_58 {dimension_numbers = #tpu.dot_dimension_numbers<[1], [0], [0], [1], [0, 0, 1, 1], [], []>} : vector<18x18xbf16>, vector<18x8xbf16>, vector<18x8xf32> -> vector<18x8xf32>
    %c0_59 = arith.constant 0 : index
    %c1_60 = arith.constant 1 : index
    %c0_61 = arith.constant 0 : index
    %c0_62 = arith.constant 0 : index
    %113 = vector.load %arg10[%c0_59, %c1_60, %c0_61, %c0_62] : memref<2x4x8x32xbf16, #tpu.memory_space<vmem>>, vector<1x1x8x32xbf16>
    %114 = vector.shape_cast %113 : vector<1x1x8x32xbf16> to vector<8x32xbf16>
    %115 = arith.truncf %112 : vector<18x8xf32> to vector<18x8xbf16>
    %cst_63 = arith.constant dense<0.000000e+00> : vector<18x32xf32>
    %116 = tpu.matmul %115, %114, %cst_63 {dimension_numbers = #tpu.dot_dimension_numbers<[1], [0], [0], [1], [0, 0, 1, 1], [], []>} : vector<18x8xbf16>, vector<8x32xbf16>, vector<18x32xf32> -> vector<18x32xf32>
    %117 = arith.addf %89, %116 : vector<18x32xf32>
    %118 = vector.extract_strided_slice %44 {offsets = [0, 16], sizes = [18, 8], strides = [1, 1]} : vector<18x32xf32> to vector<18x8xf32>
    %119 = vector.extract_strided_slice %52 {offsets = [0, 16], sizes = [18, 8], strides = [1, 1]} : vector<18x32xf32> to vector<18x8xf32>
    %120 = tpu.transpose %119, [1, 0] : vector<18x8xf32> -> vector<8x18xf32>
    %121 = arith.truncf %118 : vector<18x8xf32> to vector<18x8xbf16>
    %122 = arith.truncf %120 : vector<8x18xf32> to vector<8x18xbf16>
    %cst_64 = arith.constant dense<0.000000e+00> : vector<18x18xf32>
    %123 = tpu.matmul %121, %122, %cst_64 {dimension_numbers = #tpu.dot_dimension_numbers<[1], [0], [0], [1], [0, 0, 1, 1], [], []>} : vector<18x8xbf16>, vector<8x18xbf16>, vector<18x18xf32> -> vector<18x18xf32>
    %cst_65 = arith.constant 0.353553385 : f32
    %124 = vector.broadcast %cst_65 : f32 to vector<18x18xf32>
    %125 = arith.mulf %123, %124 : vector<18x18xf32>
    %126 = arith.addf %125, %36 : vector<18x18xf32>
    %cst_66 = arith.constant dense<0xFF800000> : vector<18xf32>
    %127 = vector.multi_reduction <maximumf>, %126, %cst_66 [1] : vector<18x18xf32> to vector<18xf32>
    %128 = vector.shape_cast %127 : vector<18xf32> to vector<18x1xf32>
    %129 = vector.broadcast %128 : vector<18x1xf32> to vector<18x18xf32>
    %130 = arith.subf %126, %129 : vector<18x18xf32>
    %131 = math.exp %130 : vector<18x18xf32>
    %cst_67 = arith.constant dense<0.000000e+00> : vector<18xf32>
    %132 = vector.multi_reduction <add>, %131, %cst_67 [1] : vector<18x18xf32> to vector<18xf32>
    %133 = vector.shape_cast %132 : vector<18xf32> to vector<18x1xf32>
    %134 = tpu.reciprocal %133 {approx = true} : vector<18x1xf32> -> vector<18x1xf32>
    %135 = vector.broadcast %134 : vector<18x1xf32> to vector<18x18xf32>
    %136 = arith.mulf %131, %135 : vector<18x18xf32>
    %137 = vector.extract_strided_slice %60 {offsets = [0, 16], sizes = [18, 8], strides = [1, 1]} : vector<18x32xf32> to vector<18x8xf32>
    %138 = arith.truncf %136 : vector<18x18xf32> to vector<18x18xbf16>
    %139 = arith.truncf %137 : vector<18x8xf32> to vector<18x8xbf16>
    %cst_68 = arith.constant dense<0.000000e+00> : vector<18x8xf32>
    %140 = tpu.matmul %138, %139, %cst_68 {dimension_numbers = #tpu.dot_dimension_numbers<[1], [0], [0], [1], [0, 0, 1, 1], [], []>} : vector<18x18xbf16>, vector<18x8xbf16>, vector<18x8xf32> -> vector<18x8xf32>
    %c0_69 = arith.constant 0 : index
    %c2_70 = arith.constant 2 : index
    %c0_71 = arith.constant 0 : index
    %c0_72 = arith.constant 0 : index
    %141 = vector.load %arg10[%c0_69, %c2_70, %c0_71, %c0_72] : memref<2x4x8x32xbf16, #tpu.memory_space<vmem>>, vector<1x1x8x32xbf16>
    %142 = vector.shape_cast %141 : vector<1x1x8x32xbf16> to vector<8x32xbf16>
    %143 = arith.truncf %140 : vector<18x8xf32> to vector<18x8xbf16>
    %cst_73 = arith.constant dense<0.000000e+00> : vector<18x32xf32>
    %144 = tpu.matmul %143, %142, %cst_73 {dimension_numbers = #tpu.dot_dimension_numbers<[1], [0], [0], [1], [0, 0, 1, 1], [], []>} : vector<18x8xbf16>, vector<8x32xbf16>, vector<18x32xf32> -> vector<18x32xf32>
    %145 = arith.addf %117, %144 : vector<18x32xf32>
    %146 = vector.extract_strided_slice %44 {offsets = [0, 24], sizes = [18, 8], strides = [1, 1]} : vector<18x32xf32> to vector<18x8xf32>
    %147 = vector.extract_strided_slice %52 {offsets = [0, 24], sizes = [18, 8], strides = [1, 1]} : vector<18x32xf32> to vector<18x8xf32>
    %148 = tpu.transpose %147, [1, 0] : vector<18x8xf32> -> vector<8x18xf32>
    %149 = arith.truncf %146 : vector<18x8xf32> to vector<18x8xbf16>
    %150 = arith.truncf %148 : vector<8x18xf32> to vector<8x18xbf16>
    %cst_74 = arith.constant dense<0.000000e+00> : vector<18x18xf32>
    %151 = tpu.matmul %149, %150, %cst_74 {dimension_numbers = #tpu.dot_dimension_numbers<[1], [0], [0], [1], [0, 0, 1, 1], [], []>} : vector<18x8xbf16>, vector<8x18xbf16>, vector<18x18xf32> -> vector<18x18xf32>
    %cst_75 = arith.constant 0.353553385 : f32
    %152 = vector.broadcast %cst_75 : f32 to vector<18x18xf32>
    %153 = arith.mulf %151, %152 : vector<18x18xf32>
    %154 = arith.addf %153, %36 : vector<18x18xf32>
    %cst_76 = arith.constant dense<0xFF800000> : vector<18xf32>
    %155 = vector.multi_reduction <maximumf>, %154, %cst_76 [1] : vector<18x18xf32> to vector<18xf32>
    %156 = vector.shape_cast %155 : vector<18xf32> to vector<18x1xf32>
    %157 = vector.broadcast %156 : vector<18x1xf32> to vector<18x18xf32>
    %158 = arith.subf %154, %157 : vector<18x18xf32>
    %159 = math.exp %158 : vector<18x18xf32>
    %cst_77 = arith.constant dense<0.000000e+00> : vector<18xf32>
    %160 = vector.multi_reduction <add>, %159, %cst_77 [1] : vector<18x18xf32> to vector<18xf32>
    %161 = vector.shape_cast %160 : vector<18xf32> to vector<18x1xf32>
    %162 = tpu.reciprocal %161 {approx = true} : vector<18x1xf32> -> vector<18x1xf32>
    %163 = vector.broadcast %162 : vector<18x1xf32> to vector<18x18xf32>
    %164 = arith.mulf %159, %163 : vector<18x18xf32>
    %165 = vector.extract_strided_slice %60 {offsets = [0, 24], sizes = [18, 8], strides = [1, 1]} : vector<18x32xf32> to vector<18x8xf32>
    %166 = arith.truncf %164 : vector<18x18xf32> to vector<18x18xbf16>
    %167 = arith.truncf %165 : vector<18x8xf32> to vector<18x8xbf16>
    %cst_78 = arith.constant dense<0.000000e+00> : vector<18x8xf32>
    %168 = tpu.matmul %166, %167, %cst_78 {dimension_numbers = #tpu.dot_dimension_numbers<[1], [0], [0], [1], [0, 0, 1, 1], [], []>} : vector<18x18xbf16>, vector<18x8xbf16>, vector<18x8xf32> -> vector<18x8xf32>
    %c0_79 = arith.constant 0 : index
    %c3 = arith.constant 3 : index
    %c0_80 = arith.constant 0 : index
    %c0_81 = arith.constant 0 : index
    %169 = vector.load %arg10[%c0_79, %c3, %c0_80, %c0_81] : memref<2x4x8x32xbf16, #tpu.memory_space<vmem>>, vector<1x1x8x32xbf16>
    %170 = vector.shape_cast %169 : vector<1x1x8x32xbf16> to vector<8x32xbf16>
    %171 = arith.truncf %168 : vector<18x8xf32> to vector<18x8xbf16>
    %cst_82 = arith.constant dense<0.000000e+00> : vector<18x32xf32>
    %172 = tpu.matmul %171, %170, %cst_82 {dimension_numbers = #tpu.dot_dimension_numbers<[1], [0], [0], [1], [0, 0, 1, 1], [], []>} : vector<18x8xbf16>, vector<8x32xbf16>, vector<18x32xf32> -> vector<18x32xf32>
    %173 = arith.addf %145, %172 : vector<18x32xf32>
    %c0_83 = arith.constant 0 : index
    %c0_84 = arith.constant 0 : index
    %c0_85 = arith.constant 0 : index
    %174 = vector.load %arg11[%c0_83, %c0_84, %c0_85] : memref<2x1x32xf32, #tpu.memory_space<vmem>>, vector<1x1x32xf32>
    %175 = vector.shape_cast %174 : vector<1x1x32xf32> to vector<1x32xf32>
    %176 = vector.broadcast %175 : vector<1x32xf32> to vector<18x32xf32>
    %177 = arith.addf %173, %176 : vector<18x32xf32>
    %178 = arith.addf %35, %177 : vector<18x32xf32>
    %c0_86 = arith.constant 0 : index
    %c0_87 = arith.constant 0 : index
    %c0_88 = arith.constant 0 : index
    %179 = vector.load %arg12[%c0_86, %c0_87, %c0_88] : memref<2x1x32xf32, #tpu.memory_space<vmem>>, vector<1x1x32xf32>
    %180 = vector.shape_cast %179 : vector<1x1x32xf32> to vector<1x32xf32>
    %c0_89 = arith.constant 0 : index
    %c0_90 = arith.constant 0 : index
    %c0_91 = arith.constant 0 : index
    %181 = vector.load %arg13[%c0_89, %c0_90, %c0_91] : memref<2x1x32xf32, #tpu.memory_space<vmem>>, vector<1x1x32xf32>
    %182 = vector.shape_cast %181 : vector<1x1x32xf32> to vector<1x32xf32>
    %cst_92 = arith.constant dense<0.000000e+00> : vector<18xf32>
    %183 = vector.multi_reduction <add>, %178, %cst_92 [1] : vector<18x32xf32> to vector<18xf32>
    %184 = vector.shape_cast %183 : vector<18xf32> to vector<18x1xf32>
    %cst_93 = arith.constant 3.200000e+01 : f32
    %185 = vector.broadcast %cst_93 : f32 to vector<18x1xf32>
    %186 = arith.divf %184, %185 : vector<18x1xf32>
    %187 = vector.broadcast %186 : vector<18x1xf32> to vector<18x32xf32>
    %188 = arith.subf %178, %187 : vector<18x32xf32>
    %189 = arith.mulf %188, %188 : vector<18x32xf32>
    %cst_94 = arith.constant dense<0.000000e+00> : vector<18xf32>
    %190 = vector.multi_reduction <add>, %189, %cst_94 [1] : vector<18x32xf32> to vector<18xf32>
    %191 = vector.shape_cast %190 : vector<18xf32> to vector<18x1xf32>
    %cst_95 = arith.constant 3.200000e+01 : f32
    %192 = vector.broadcast %cst_95 : f32 to vector<18x1xf32>
    %193 = arith.divf %191, %192 : vector<18x1xf32>
    %194 = vector.broadcast %186 : vector<18x1xf32> to vector<18x32xf32>
    %195 = arith.subf %178, %194 : vector<18x32xf32>
    %cst_96 = arith.constant 9.99999974E-6 : f32
    %196 = vector.broadcast %cst_96 : f32 to vector<18x1xf32>
    %197 = arith.addf %193, %196 : vector<18x1xf32>
    %198 = math.rsqrt %197 : vector<18x1xf32>
    %199 = vector.broadcast %198 : vector<18x1xf32> to vector<18x32xf32>
    %200 = arith.mulf %195, %199 : vector<18x32xf32>
    %201 = vector.broadcast %180 : vector<1x32xf32> to vector<18x32xf32>
    %202 = arith.mulf %200, %201 : vector<18x32xf32>
    %203 = vector.broadcast %182 : vector<1x32xf32> to vector<18x32xf32>
    %204 = arith.addf %202, %203 : vector<18x32xf32>
    %c0_97 = arith.constant 0 : index
    %c0_98 = arith.constant 0 : index
    %c0_99 = arith.constant 0 : index
    %205 = vector.load %arg14[%c0_97, %c0_98, %c0_99] : memref<2x32x64xbf16, #tpu.memory_space<vmem>>, vector<1x32x64xbf16>
    %206 = vector.shape_cast %205 : vector<1x32x64xbf16> to vector<32x64xbf16>
    %207 = arith.truncf %204 : vector<18x32xf32> to vector<18x32xbf16>
    %cst_100 = arith.constant dense<0.000000e+00> : vector<18x64xf32>
    %208 = tpu.matmul %207, %206, %cst_100 {dimension_numbers = #tpu.dot_dimension_numbers<[1], [0], [0], [1], [0, 0, 1, 1], [], []>} : vector<18x32xbf16>, vector<32x64xbf16>, vector<18x64xf32> -> vector<18x64xf32>
    %c0_101 = arith.constant 0 : index
    %c0_102 = arith.constant 0 : index
    %c0_103 = arith.constant 0 : index
    %209 = vector.load %arg15[%c0_101, %c0_102, %c0_103] : memref<2x1x64xf32, #tpu.memory_space<vmem>>, vector<1x1x64xf32>
    %210 = vector.shape_cast %209 : vector<1x1x64xf32> to vector<1x64xf32>
    %211 = vector.broadcast %210 : vector<1x64xf32> to vector<18x64xf32>
    %212 = arith.addf %208, %211 : vector<18x64xf32>
    %cst_104 = arith.constant 5.000000e-01 : f32
    %213 = vector.broadcast %cst_104 : f32 to vector<18x64xf32>
    %214 = arith.mulf %213, %212 : vector<18x64xf32>
    %cst_105 = arith.constant 0.707106769 : f32
    %215 = vector.broadcast %cst_105 : f32 to vector<18x64xf32>
    %216 = arith.mulf %212, %215 : vector<18x64xf32>
    %217 = math.absf %216 : vector<18x64xf32>
    %cst_106 = arith.constant 0.327591091 : f32
    %218 = vector.broadcast %cst_106 : f32 to vector<18x64xf32>
    %219 = arith.mulf %218, %217 : vector<18x64xf32>
    %cst_107 = arith.constant 1.000000e+00 : f32
    %220 = vector.broadcast %cst_107 : f32 to vector<18x64xf32>
    %221 = arith.addf %220, %219 : vector<18x64xf32>
    %cst_108 = arith.constant 1.000000e+00 : f32
    %222 = vector.broadcast %cst_108 : f32 to vector<18x64xf32>
    %223 = arith.divf %222, %221 : vector<18x64xf32>
    %cst_109 = arith.constant 1.06140542 : f32
    %224 = vector.broadcast %cst_109 : f32 to vector<18x64xf32>
    %225 = arith.mulf %224, %223 : vector<18x64xf32>
    %cst_110 = arith.constant -1.45315206 : f32
    %226 = vector.broadcast %cst_110 : f32 to vector<18x64xf32>
    %227 = arith.addf %225, %226 : vector<18x64xf32>
    %228 = arith.mulf %227, %223 : vector<18x64xf32>
    %cst_111 = arith.constant 1.42141378 : f32
    %229 = vector.broadcast %cst_111 : f32 to vector<18x64xf32>
    %230 = arith.addf %228, %229 : vector<18x64xf32>
    %231 = arith.mulf %230, %223 : vector<18x64xf32>
    %cst_112 = arith.constant -0.284496725 : f32
    %232 = vector.broadcast %cst_112 : f32 to vector<18x64xf32>
    %233 = arith.addf %231, %232 : vector<18x64xf32>
    %234 = arith.mulf %233, %223 : vector<18x64xf32>
    %cst_113 = arith.constant 0.254829586 : f32
    %235 = vector.broadcast %cst_113 : f32 to vector<18x64xf32>
    %236 = arith.addf %234, %235 : vector<18x64xf32>
    %237 = arith.mulf %236, %223 : vector<18x64xf32>
    %cst_114 = arith.constant 0.000000e+00 : f32
    %238 = vector.broadcast %cst_114 : f32 to vector<18x64xf32>
    %239 = arith.subf %238, %217 : vector<18x64xf32>
    %240 = arith.mulf %239, %217 : vector<18x64xf32>
    %241 = math.exp %240 : vector<18x64xf32>
    %242 = arith.mulf %237, %241 : vector<18x64xf32>
    %cst_115 = arith.constant 1.000000e+00 : f32
    %243 = vector.broadcast %cst_115 : f32 to vector<18x64xf32>
    %244 = arith.subf %243, %242 : vector<18x64xf32>
    %cst_116 = arith.constant 0.000000e+00 : f32
    %245 = vector.broadcast %cst_116 : f32 to vector<18x64xf32>
    %246 = arith.cmpf oge, %216, %245 : vector<18x64xf32>
    %cst_117 = arith.constant 0.000000e+00 : f32
    %247 = vector.broadcast %cst_117 : f32 to vector<18x64xf32>
    %248 = arith.subf %247, %244 : vector<18x64xf32>
    %249 = arith.select %246, %244, %248 : vector<18x64xi1>, vector<18x64xf32>
    %cst_118 = arith.constant 1.000000e+00 : f32
    %250 = vector.broadcast %cst_118 : f32 to vector<18x64xf32>
    %251 = arith.addf %250, %249 : vector<18x64xf32>
    %252 = arith.mulf %214, %251 : vector<18x64xf32>
    %c0_119 = arith.constant 0 : index
    %c0_120 = arith.constant 0 : index
    %c0_121 = arith.constant 0 : index
    %253 = vector.load %arg16[%c0_119, %c0_120, %c0_121] : memref<2x64x32xbf16, #tpu.memory_space<vmem>>, vector<1x64x32xbf16>
    %254 = vector.shape_cast %253 : vector<1x64x32xbf16> to vector<64x32xbf16>
    %255 = arith.truncf %252 : vector<18x64xf32> to vector<18x64xbf16>
    %cst_122 = arith.constant dense<0.000000e+00> : vector<18x32xf32>
    %256 = tpu.matmul %255, %254, %cst_122 {dimension_numbers = #tpu.dot_dimension_numbers<[1], [0], [0], [1], [0, 0, 1, 1], [], []>} : vector<18x64xbf16>, vector<64x32xbf16>, vector<18x32xf32> -> vector<18x32xf32>
    %c0_123 = arith.constant 0 : index
    %c0_124 = arith.constant 0 : index
    %c0_125 = arith.constant 0 : index
    %257 = vector.load %arg17[%c0_123, %c0_124, %c0_125] : memref<2x1x32xf32, #tpu.memory_space<vmem>>, vector<1x1x32xf32>
    %258 = vector.shape_cast %257 : vector<1x1x32xf32> to vector<1x32xf32>
    %259 = vector.broadcast %258 : vector<1x32xf32> to vector<18x32xf32>
    %260 = arith.addf %256, %259 : vector<18x32xf32>
    %261 = arith.addf %204, %260 : vector<18x32xf32>
    %c0_126 = arith.constant 0 : index
    %c0_127 = arith.constant 0 : index
    %c0_128 = arith.constant 0 : index
    %262 = vector.load %arg18[%c0_126, %c0_127, %c0_128] : memref<2x1x32xf32, #tpu.memory_space<vmem>>, vector<1x1x32xf32>
    %263 = vector.shape_cast %262 : vector<1x1x32xf32> to vector<1x32xf32>
    %c0_129 = arith.constant 0 : index
    %c0_130 = arith.constant 0 : index
    %c0_131 = arith.constant 0 : index
    %264 = vector.load %arg19[%c0_129, %c0_130, %c0_131] : memref<2x1x32xf32, #tpu.memory_space<vmem>>, vector<1x1x32xf32>
    %265 = vector.shape_cast %264 : vector<1x1x32xf32> to vector<1x32xf32>
    %cst_132 = arith.constant dense<0.000000e+00> : vector<18xf32>
    %266 = vector.multi_reduction <add>, %261, %cst_132 [1] : vector<18x32xf32> to vector<18xf32>
    %267 = vector.shape_cast %266 : vector<18xf32> to vector<18x1xf32>
    %cst_133 = arith.constant 3.200000e+01 : f32
    %268 = vector.broadcast %cst_133 : f32 to vector<18x1xf32>
    %269 = arith.divf %267, %268 : vector<18x1xf32>
    %270 = vector.broadcast %269 : vector<18x1xf32> to vector<18x32xf32>
    %271 = arith.subf %261, %270 : vector<18x32xf32>
    %272 = arith.mulf %271, %271 : vector<18x32xf32>
    %cst_134 = arith.constant dense<0.000000e+00> : vector<18xf32>
    %273 = vector.multi_reduction <add>, %272, %cst_134 [1] : vector<18x32xf32> to vector<18xf32>
    %274 = vector.shape_cast %273 : vector<18xf32> to vector<18x1xf32>
    %cst_135 = arith.constant 3.200000e+01 : f32
    %275 = vector.broadcast %cst_135 : f32 to vector<18x1xf32>
    %276 = arith.divf %274, %275 : vector<18x1xf32>
    %277 = vector.broadcast %269 : vector<18x1xf32> to vector<18x32xf32>
    %278 = arith.subf %261, %277 : vector<18x32xf32>
    %cst_136 = arith.constant 9.99999974E-6 : f32
    %279 = vector.broadcast %cst_136 : f32 to vector<18x1xf32>
    %280 = arith.addf %276, %279 : vector<18x1xf32>
    %281 = math.rsqrt %280 : vector<18x1xf32>
    %282 = vector.broadcast %281 : vector<18x1xf32> to vector<18x32xf32>
    %283 = arith.mulf %278, %282 : vector<18x32xf32>
    %284 = vector.broadcast %263 : vector<1x32xf32> to vector<18x32xf32>
    %285 = arith.mulf %283, %284 : vector<18x32xf32>
    %286 = vector.broadcast %265 : vector<1x32xf32> to vector<18x32xf32>
    %287 = arith.addf %285, %286 : vector<18x32xf32>
    %c1_137 = arith.constant 1 : index
    %c0_138 = arith.constant 0 : index
    %c0_139 = arith.constant 0 : index
    %c0_140 = arith.constant 0 : index
    %288 = vector.load %arg8[%c1_137, %c0_138, %c0_139, %c0_140] : memref<2x3x32x32xbf16, #tpu.memory_space<vmem>>, vector<1x1x32x32xbf16>
    %289 = vector.shape_cast %288 : vector<1x1x32x32xbf16> to vector<32x32xbf16>
    %290 = arith.truncf %287 : vector<18x32xf32> to vector<18x32xbf16>
    %cst_141 = arith.constant dense<0.000000e+00> : vector<18x32xf32>
    %291 = tpu.matmul %290, %289, %cst_141 {dimension_numbers = #tpu.dot_dimension_numbers<[1], [0], [0], [1], [0, 0, 1, 1], [], []>} : vector<18x32xbf16>, vector<32x32xbf16>, vector<18x32xf32> -> vector<18x32xf32>
    %c1_142 = arith.constant 1 : index
    %c0_143 = arith.constant 0 : index
    %c0_144 = arith.constant 0 : index
    %c0_145 = arith.constant 0 : index
    %292 = vector.load %arg9[%c1_142, %c0_143, %c0_144, %c0_145] : memref<2x3x1x32xf32, #tpu.memory_space<vmem>>, vector<1x1x1x32xf32>
    %293 = vector.shape_cast %292 : vector<1x1x1x32xf32> to vector<1x32xf32>
    %294 = vector.broadcast %293 : vector<1x32xf32> to vector<18x32xf32>
    %295 = arith.addf %291, %294 : vector<18x32xf32>
    %c1_146 = arith.constant 1 : index
    %c1_147 = arith.constant 1 : index
    %c0_148 = arith.constant 0 : index
    %c0_149 = arith.constant 0 : index
    %296 = vector.load %arg8[%c1_146, %c1_147, %c0_148, %c0_149] : memref<2x3x32x32xbf16, #tpu.memory_space<vmem>>, vector<1x1x32x32xbf16>
    %297 = vector.shape_cast %296 : vector<1x1x32x32xbf16> to vector<32x32xbf16>
    %298 = arith.truncf %287 : vector<18x32xf32> to vector<18x32xbf16>
    %cst_150 = arith.constant dense<0.000000e+00> : vector<18x32xf32>
    %299 = tpu.matmul %298, %297, %cst_150 {dimension_numbers = #tpu.dot_dimension_numbers<[1], [0], [0], [1], [0, 0, 1, 1], [], []>} : vector<18x32xbf16>, vector<32x32xbf16>, vector<18x32xf32> -> vector<18x32xf32>
    %c1_151 = arith.constant 1 : index
    %c1_152 = arith.constant 1 : index
    %c0_153 = arith.constant 0 : index
    %c0_154 = arith.constant 0 : index
    %300 = vector.load %arg9[%c1_151, %c1_152, %c0_153, %c0_154] : memref<2x3x1x32xf32, #tpu.memory_space<vmem>>, vector<1x1x1x32xf32>
    %301 = vector.shape_cast %300 : vector<1x1x1x32xf32> to vector<1x32xf32>
    %302 = vector.broadcast %301 : vector<1x32xf32> to vector<18x32xf32>
    %303 = arith.addf %299, %302 : vector<18x32xf32>
    %c1_155 = arith.constant 1 : index
    %c2_156 = arith.constant 2 : index
    %c0_157 = arith.constant 0 : index
    %c0_158 = arith.constant 0 : index
    %304 = vector.load %arg8[%c1_155, %c2_156, %c0_157, %c0_158] : memref<2x3x32x32xbf16, #tpu.memory_space<vmem>>, vector<1x1x32x32xbf16>
    %305 = vector.shape_cast %304 : vector<1x1x32x32xbf16> to vector<32x32xbf16>
    %306 = arith.truncf %287 : vector<18x32xf32> to vector<18x32xbf16>
    %cst_159 = arith.constant dense<0.000000e+00> : vector<18x32xf32>
    %307 = tpu.matmul %306, %305, %cst_159 {dimension_numbers = #tpu.dot_dimension_numbers<[1], [0], [0], [1], [0, 0, 1, 1], [], []>} : vector<18x32xbf16>, vector<32x32xbf16>, vector<18x32xf32> -> vector<18x32xf32>
    %c1_160 = arith.constant 1 : index
    %c2_161 = arith.constant 2 : index
    %c0_162 = arith.constant 0 : index
    %c0_163 = arith.constant 0 : index
    %308 = vector.load %arg9[%c1_160, %c2_161, %c0_162, %c0_163] : memref<2x3x1x32xf32, #tpu.memory_space<vmem>>, vector<1x1x1x32xf32>
    %309 = vector.shape_cast %308 : vector<1x1x1x32xf32> to vector<1x32xf32>
    %310 = vector.broadcast %309 : vector<1x32xf32> to vector<18x32xf32>
    %311 = arith.addf %307, %310 : vector<18x32xf32>
    %cst_164 = arith.constant 0.000000e+00 : f32
    %312 = vector.broadcast %cst_164 : f32 to vector<18x32xf32>
    %313 = vector.extract_strided_slice %295 {offsets = [0, 0], sizes = [18, 8], strides = [1, 1]} : vector<18x32xf32> to vector<18x8xf32>
    %314 = vector.extract_strided_slice %303 {offsets = [0, 0], sizes = [18, 8], strides = [1, 1]} : vector<18x32xf32> to vector<18x8xf32>
    %315 = tpu.transpose %314, [1, 0] : vector<18x8xf32> -> vector<8x18xf32>
    %316 = arith.truncf %313 : vector<18x8xf32> to vector<18x8xbf16>
    %317 = arith.truncf %315 : vector<8x18xf32> to vector<8x18xbf16>
    %cst_165 = arith.constant dense<0.000000e+00> : vector<18x18xf32>
    %318 = tpu.matmul %316, %317, %cst_165 {dimension_numbers = #tpu.dot_dimension_numbers<[1], [0], [0], [1], [0, 0, 1, 1], [], []>} : vector<18x8xbf16>, vector<8x18xbf16>, vector<18x18xf32> -> vector<18x18xf32>
    %cst_166 = arith.constant 0.353553385 : f32
    %319 = vector.broadcast %cst_166 : f32 to vector<18x18xf32>
    %320 = arith.mulf %318, %319 : vector<18x18xf32>
    %321 = arith.addf %320, %36 : vector<18x18xf32>
    %cst_167 = arith.constant dense<0xFF800000> : vector<18xf32>
    %322 = vector.multi_reduction <maximumf>, %321, %cst_167 [1] : vector<18x18xf32> to vector<18xf32>
    %323 = vector.shape_cast %322 : vector<18xf32> to vector<18x1xf32>
    %324 = vector.broadcast %323 : vector<18x1xf32> to vector<18x18xf32>
    %325 = arith.subf %321, %324 : vector<18x18xf32>
    %326 = math.exp %325 : vector<18x18xf32>
    %cst_168 = arith.constant dense<0.000000e+00> : vector<18xf32>
    %327 = vector.multi_reduction <add>, %326, %cst_168 [1] : vector<18x18xf32> to vector<18xf32>
    %328 = vector.shape_cast %327 : vector<18xf32> to vector<18x1xf32>
    %329 = tpu.reciprocal %328 {approx = true} : vector<18x1xf32> -> vector<18x1xf32>
    %330 = vector.broadcast %329 : vector<18x1xf32> to vector<18x18xf32>
    %331 = arith.mulf %326, %330 : vector<18x18xf32>
    %332 = vector.extract_strided_slice %311 {offsets = [0, 0], sizes = [18, 8], strides = [1, 1]} : vector<18x32xf32> to vector<18x8xf32>
    %333 = arith.truncf %331 : vector<18x18xf32> to vector<18x18xbf16>
    %334 = arith.truncf %332 : vector<18x8xf32> to vector<18x8xbf16>
    %cst_169 = arith.constant dense<0.000000e+00> : vector<18x8xf32>
    %335 = tpu.matmul %333, %334, %cst_169 {dimension_numbers = #tpu.dot_dimension_numbers<[1], [0], [0], [1], [0, 0, 1, 1], [], []>} : vector<18x18xbf16>, vector<18x8xbf16>, vector<18x8xf32> -> vector<18x8xf32>
    %c1_170 = arith.constant 1 : index
    %c0_171 = arith.constant 0 : index
    %c0_172 = arith.constant 0 : index
    %c0_173 = arith.constant 0 : index
    %336 = vector.load %arg10[%c1_170, %c0_171, %c0_172, %c0_173] : memref<2x4x8x32xbf16, #tpu.memory_space<vmem>>, vector<1x1x8x32xbf16>
    %337 = vector.shape_cast %336 : vector<1x1x8x32xbf16> to vector<8x32xbf16>
    %338 = arith.truncf %335 : vector<18x8xf32> to vector<18x8xbf16>
    %cst_174 = arith.constant dense<0.000000e+00> : vector<18x32xf32>
    %339 = tpu.matmul %338, %337, %cst_174 {dimension_numbers = #tpu.dot_dimension_numbers<[1], [0], [0], [1], [0, 0, 1, 1], [], []>} : vector<18x8xbf16>, vector<8x32xbf16>, vector<18x32xf32> -> vector<18x32xf32>
    %340 = arith.addf %312, %339 : vector<18x32xf32>
    %341 = vector.extract_strided_slice %295 {offsets = [0, 8], sizes = [18, 8], strides = [1, 1]} : vector<18x32xf32> to vector<18x8xf32>
    %342 = vector.extract_strided_slice %303 {offsets = [0, 8], sizes = [18, 8], strides = [1, 1]} : vector<18x32xf32> to vector<18x8xf32>
    %343 = tpu.transpose %342, [1, 0] : vector<18x8xf32> -> vector<8x18xf32>
    %344 = arith.truncf %341 : vector<18x8xf32> to vector<18x8xbf16>
    %345 = arith.truncf %343 : vector<8x18xf32> to vector<8x18xbf16>
    %cst_175 = arith.constant dense<0.000000e+00> : vector<18x18xf32>
    %346 = tpu.matmul %344, %345, %cst_175 {dimension_numbers = #tpu.dot_dimension_numbers<[1], [0], [0], [1], [0, 0, 1, 1], [], []>} : vector<18x8xbf16>, vector<8x18xbf16>, vector<18x18xf32> -> vector<18x18xf32>
    %cst_176 = arith.constant 0.353553385 : f32
    %347 = vector.broadcast %cst_176 : f32 to vector<18x18xf32>
    %348 = arith.mulf %346, %347 : vector<18x18xf32>
    %349 = arith.addf %348, %36 : vector<18x18xf32>
    %cst_177 = arith.constant dense<0xFF800000> : vector<18xf32>
    %350 = vector.multi_reduction <maximumf>, %349, %cst_177 [1] : vector<18x18xf32> to vector<18xf32>
    %351 = vector.shape_cast %350 : vector<18xf32> to vector<18x1xf32>
    %352 = vector.broadcast %351 : vector<18x1xf32> to vector<18x18xf32>
    %353 = arith.subf %349, %352 : vector<18x18xf32>
    %354 = math.exp %353 : vector<18x18xf32>
    %cst_178 = arith.constant dense<0.000000e+00> : vector<18xf32>
    %355 = vector.multi_reduction <add>, %354, %cst_178 [1] : vector<18x18xf32> to vector<18xf32>
    %356 = vector.shape_cast %355 : vector<18xf32> to vector<18x1xf32>
    %357 = tpu.reciprocal %356 {approx = true} : vector<18x1xf32> -> vector<18x1xf32>
    %358 = vector.broadcast %357 : vector<18x1xf32> to vector<18x18xf32>
    %359 = arith.mulf %354, %358 : vector<18x18xf32>
    %360 = vector.extract_strided_slice %311 {offsets = [0, 8], sizes = [18, 8], strides = [1, 1]} : vector<18x32xf32> to vector<18x8xf32>
    %361 = arith.truncf %359 : vector<18x18xf32> to vector<18x18xbf16>
    %362 = arith.truncf %360 : vector<18x8xf32> to vector<18x8xbf16>
    %cst_179 = arith.constant dense<0.000000e+00> : vector<18x8xf32>
    %363 = tpu.matmul %361, %362, %cst_179 {dimension_numbers = #tpu.dot_dimension_numbers<[1], [0], [0], [1], [0, 0, 1, 1], [], []>} : vector<18x18xbf16>, vector<18x8xbf16>, vector<18x8xf32> -> vector<18x8xf32>
    %c1_180 = arith.constant 1 : index
    %c1_181 = arith.constant 1 : index
    %c0_182 = arith.constant 0 : index
    %c0_183 = arith.constant 0 : index
    %364 = vector.load %arg10[%c1_180, %c1_181, %c0_182, %c0_183] : memref<2x4x8x32xbf16, #tpu.memory_space<vmem>>, vector<1x1x8x32xbf16>
    %365 = vector.shape_cast %364 : vector<1x1x8x32xbf16> to vector<8x32xbf16>
    %366 = arith.truncf %363 : vector<18x8xf32> to vector<18x8xbf16>
    %cst_184 = arith.constant dense<0.000000e+00> : vector<18x32xf32>
    %367 = tpu.matmul %366, %365, %cst_184 {dimension_numbers = #tpu.dot_dimension_numbers<[1], [0], [0], [1], [0, 0, 1, 1], [], []>} : vector<18x8xbf16>, vector<8x32xbf16>, vector<18x32xf32> -> vector<18x32xf32>
    %368 = arith.addf %340, %367 : vector<18x32xf32>
    %369 = vector.extract_strided_slice %295 {offsets = [0, 16], sizes = [18, 8], strides = [1, 1]} : vector<18x32xf32> to vector<18x8xf32>
    %370 = vector.extract_strided_slice %303 {offsets = [0, 16], sizes = [18, 8], strides = [1, 1]} : vector<18x32xf32> to vector<18x8xf32>
    %371 = tpu.transpose %370, [1, 0] : vector<18x8xf32> -> vector<8x18xf32>
    %372 = arith.truncf %369 : vector<18x8xf32> to vector<18x8xbf16>
    %373 = arith.truncf %371 : vector<8x18xf32> to vector<8x18xbf16>
    %cst_185 = arith.constant dense<0.000000e+00> : vector<18x18xf32>
    %374 = tpu.matmul %372, %373, %cst_185 {dimension_numbers = #tpu.dot_dimension_numbers<[1], [0], [0], [1], [0, 0, 1, 1], [], []>} : vector<18x8xbf16>, vector<8x18xbf16>, vector<18x18xf32> -> vector<18x18xf32>
    %cst_186 = arith.constant 0.353553385 : f32
    %375 = vector.broadcast %cst_186 : f32 to vector<18x18xf32>
    %376 = arith.mulf %374, %375 : vector<18x18xf32>
    %377 = arith.addf %376, %36 : vector<18x18xf32>
    %cst_187 = arith.constant dense<0xFF800000> : vector<18xf32>
    %378 = vector.multi_reduction <maximumf>, %377, %cst_187 [1] : vector<18x18xf32> to vector<18xf32>
    %379 = vector.shape_cast %378 : vector<18xf32> to vector<18x1xf32>
    %380 = vector.broadcast %379 : vector<18x1xf32> to vector<18x18xf32>
    %381 = arith.subf %377, %380 : vector<18x18xf32>
    %382 = math.exp %381 : vector<18x18xf32>
    %cst_188 = arith.constant dense<0.000000e+00> : vector<18xf32>
    %383 = vector.multi_reduction <add>, %382, %cst_188 [1] : vector<18x18xf32> to vector<18xf32>
    %384 = vector.shape_cast %383 : vector<18xf32> to vector<18x1xf32>
    %385 = tpu.reciprocal %384 {approx = true} : vector<18x1xf32> -> vector<18x1xf32>
    %386 = vector.broadcast %385 : vector<18x1xf32> to vector<18x18xf32>
    %387 = arith.mulf %382, %386 : vector<18x18xf32>
    %388 = vector.extract_strided_slice %311 {offsets = [0, 16], sizes = [18, 8], strides = [1, 1]} : vector<18x32xf32> to vector<18x8xf32>
    %389 = arith.truncf %387 : vector<18x18xf32> to vector<18x18xbf16>
    %390 = arith.truncf %388 : vector<18x8xf32> to vector<18x8xbf16>
    %cst_189 = arith.constant dense<0.000000e+00> : vector<18x8xf32>
    %391 = tpu.matmul %389, %390, %cst_189 {dimension_numbers = #tpu.dot_dimension_numbers<[1], [0], [0], [1], [0, 0, 1, 1], [], []>} : vector<18x18xbf16>, vector<18x8xbf16>, vector<18x8xf32> -> vector<18x8xf32>
    %c1_190 = arith.constant 1 : index
    %c2_191 = arith.constant 2 : index
    %c0_192 = arith.constant 0 : index
    %c0_193 = arith.constant 0 : index
    %392 = vector.load %arg10[%c1_190, %c2_191, %c0_192, %c0_193] : memref<2x4x8x32xbf16, #tpu.memory_space<vmem>>, vector<1x1x8x32xbf16>
    %393 = vector.shape_cast %392 : vector<1x1x8x32xbf16> to vector<8x32xbf16>
    %394 = arith.truncf %391 : vector<18x8xf32> to vector<18x8xbf16>
    %cst_194 = arith.constant dense<0.000000e+00> : vector<18x32xf32>
    %395 = tpu.matmul %394, %393, %cst_194 {dimension_numbers = #tpu.dot_dimension_numbers<[1], [0], [0], [1], [0, 0, 1, 1], [], []>} : vector<18x8xbf16>, vector<8x32xbf16>, vector<18x32xf32> -> vector<18x32xf32>
    %396 = arith.addf %368, %395 : vector<18x32xf32>
    %397 = vector.extract_strided_slice %295 {offsets = [0, 24], sizes = [18, 8], strides = [1, 1]} : vector<18x32xf32> to vector<18x8xf32>
    %398 = vector.extract_strided_slice %303 {offsets = [0, 24], sizes = [18, 8], strides = [1, 1]} : vector<18x32xf32> to vector<18x8xf32>
    %399 = tpu.transpose %398, [1, 0] : vector<18x8xf32> -> vector<8x18xf32>
    %400 = arith.truncf %397 : vector<18x8xf32> to vector<18x8xbf16>
    %401 = arith.truncf %399 : vector<8x18xf32> to vector<8x18xbf16>
    %cst_195 = arith.constant dense<0.000000e+00> : vector<18x18xf32>
    %402 = tpu.matmul %400, %401, %cst_195 {dimension_numbers = #tpu.dot_dimension_numbers<[1], [0], [0], [1], [0, 0, 1, 1], [], []>} : vector<18x8xbf16>, vector<8x18xbf16>, vector<18x18xf32> -> vector<18x18xf32>
    %cst_196 = arith.constant 0.353553385 : f32
    %403 = vector.broadcast %cst_196 : f32 to vector<18x18xf32>
    %404 = arith.mulf %402, %403 : vector<18x18xf32>
    %405 = arith.addf %404, %36 : vector<18x18xf32>
    %cst_197 = arith.constant dense<0xFF800000> : vector<18xf32>
    %406 = vector.multi_reduction <maximumf>, %405, %cst_197 [1] : vector<18x18xf32> to vector<18xf32>
    %407 = vector.shape_cast %406 : vector<18xf32> to vector<18x1xf32>
    %408 = vector.broadcast %407 : vector<18x1xf32> to vector<18x18xf32>
    %409 = arith.subf %405, %408 : vector<18x18xf32>
    %410 = math.exp %409 : vector<18x18xf32>
    %cst_198 = arith.constant dense<0.000000e+00> : vector<18xf32>
    %411 = vector.multi_reduction <add>, %410, %cst_198 [1] : vector<18x18xf32> to vector<18xf32>
    %412 = vector.shape_cast %411 : vector<18xf32> to vector<18x1xf32>
    %413 = tpu.reciprocal %412 {approx = true} : vector<18x1xf32> -> vector<18x1xf32>
    %414 = vector.broadcast %413 : vector<18x1xf32> to vector<18x18xf32>
    %415 = arith.mulf %410, %414 : vector<18x18xf32>
    %416 = vector.extract_strided_slice %311 {offsets = [0, 24], sizes = [18, 8], strides = [1, 1]} : vector<18x32xf32> to vector<18x8xf32>
    %417 = arith.truncf %415 : vector<18x18xf32> to vector<18x18xbf16>
    %418 = arith.truncf %416 : vector<18x8xf32> to vector<18x8xbf16>
    %cst_199 = arith.constant dense<0.000000e+00> : vector<18x8xf32>
    %419 = tpu.matmul %417, %418, %cst_199 {dimension_numbers = #tpu.dot_dimension_numbers<[1], [0], [0], [1], [0, 0, 1, 1], [], []>} : vector<18x18xbf16>, vector<18x8xbf16>, vector<18x8xf32> -> vector<18x8xf32>
    %c1_200 = arith.constant 1 : index
    %c3_201 = arith.constant 3 : index
    %c0_202 = arith.constant 0 : index
    %c0_203 = arith.constant 0 : index
    %420 = vector.load %arg10[%c1_200, %c3_201, %c0_202, %c0_203] : memref<2x4x8x32xbf16, #tpu.memory_space<vmem>>, vector<1x1x8x32xbf16>
    %421 = vector.shape_cast %420 : vector<1x1x8x32xbf16> to vector<8x32xbf16>
    %422 = arith.truncf %419 : vector<18x8xf32> to vector<18x8xbf16>
    %cst_204 = arith.constant dense<0.000000e+00> : vector<18x32xf32>
    %423 = tpu.matmul %422, %421, %cst_204 {dimension_numbers = #tpu.dot_dimension_numbers<[1], [0], [0], [1], [0, 0, 1, 1], [], []>} : vector<18x8xbf16>, vector<8x32xbf16>, vector<18x32xf32> -> vector<18x32xf32>
    %424 = arith.addf %396, %423 : vector<18x32xf32>
    %c1_205 = arith.constant 1 : index
    %c0_206 = arith.constant 0 : index
    %c0_207 = arith.constant 0 : index
    %425 = vector.load %arg11[%c1_205, %c0_206, %c0_207] : memref<2x1x32xf32, #tpu.memory_space<vmem>>, vector<1x1x32xf32>
    %426 = vector.shape_cast %425 : vector<1x1x32xf32> to vector<1x32xf32>
    %427 = vector.broadcast %426 : vector<1x32xf32> to vector<18x32xf32>
    %428 = arith.addf %424, %427 : vector<18x32xf32>
    %429 = arith.addf %287, %428 : vector<18x32xf32>
    %c1_208 = arith.constant 1 : index
    %c0_209 = arith.constant 0 : index
    %c0_210 = arith.constant 0 : index
    %430 = vector.load %arg12[%c1_208, %c0_209, %c0_210] : memref<2x1x32xf32, #tpu.memory_space<vmem>>, vector<1x1x32xf32>
    %431 = vector.shape_cast %430 : vector<1x1x32xf32> to vector<1x32xf32>
    %c1_211 = arith.constant 1 : index
    %c0_212 = arith.constant 0 : index
    %c0_213 = arith.constant 0 : index
    %432 = vector.load %arg13[%c1_211, %c0_212, %c0_213] : memref<2x1x32xf32, #tpu.memory_space<vmem>>, vector<1x1x32xf32>
    %433 = vector.shape_cast %432 : vector<1x1x32xf32> to vector<1x32xf32>
    %cst_214 = arith.constant dense<0.000000e+00> : vector<18xf32>
    %434 = vector.multi_reduction <add>, %429, %cst_214 [1] : vector<18x32xf32> to vector<18xf32>
    %435 = vector.shape_cast %434 : vector<18xf32> to vector<18x1xf32>
    %cst_215 = arith.constant 3.200000e+01 : f32
    %436 = vector.broadcast %cst_215 : f32 to vector<18x1xf32>
    %437 = arith.divf %435, %436 : vector<18x1xf32>
    %438 = vector.broadcast %437 : vector<18x1xf32> to vector<18x32xf32>
    %439 = arith.subf %429, %438 : vector<18x32xf32>
    %440 = arith.mulf %439, %439 : vector<18x32xf32>
    %cst_216 = arith.constant dense<0.000000e+00> : vector<18xf32>
    %441 = vector.multi_reduction <add>, %440, %cst_216 [1] : vector<18x32xf32> to vector<18xf32>
    %442 = vector.shape_cast %441 : vector<18xf32> to vector<18x1xf32>
    %cst_217 = arith.constant 3.200000e+01 : f32
    %443 = vector.broadcast %cst_217 : f32 to vector<18x1xf32>
    %444 = arith.divf %442, %443 : vector<18x1xf32>
    %445 = vector.broadcast %437 : vector<18x1xf32> to vector<18x32xf32>
    %446 = arith.subf %429, %445 : vector<18x32xf32>
    %cst_218 = arith.constant 9.99999974E-6 : f32
    %447 = vector.broadcast %cst_218 : f32 to vector<18x1xf32>
    %448 = arith.addf %444, %447 : vector<18x1xf32>
    %449 = math.rsqrt %448 : vector<18x1xf32>
    %450 = vector.broadcast %449 : vector<18x1xf32> to vector<18x32xf32>
    %451 = arith.mulf %446, %450 : vector<18x32xf32>
    %452 = vector.broadcast %431 : vector<1x32xf32> to vector<18x32xf32>
    %453 = arith.mulf %451, %452 : vector<18x32xf32>
    %454 = vector.broadcast %433 : vector<1x32xf32> to vector<18x32xf32>
    %455 = arith.addf %453, %454 : vector<18x32xf32>
    %c1_219 = arith.constant 1 : index
    %c0_220 = arith.constant 0 : index
    %c0_221 = arith.constant 0 : index
    %456 = vector.load %arg14[%c1_219, %c0_220, %c0_221] : memref<2x32x64xbf16, #tpu.memory_space<vmem>>, vector<1x32x64xbf16>
    %457 = vector.shape_cast %456 : vector<1x32x64xbf16> to vector<32x64xbf16>
    %458 = arith.truncf %455 : vector<18x32xf32> to vector<18x32xbf16>
    %cst_222 = arith.constant dense<0.000000e+00> : vector<18x64xf32>
    %459 = tpu.matmul %458, %457, %cst_222 {dimension_numbers = #tpu.dot_dimension_numbers<[1], [0], [0], [1], [0, 0, 1, 1], [], []>} : vector<18x32xbf16>, vector<32x64xbf16>, vector<18x64xf32> -> vector<18x64xf32>
    %c1_223 = arith.constant 1 : index
    %c0_224 = arith.constant 0 : index
    %c0_225 = arith.constant 0 : index
    %460 = vector.load %arg15[%c1_223, %c0_224, %c0_225] : memref<2x1x64xf32, #tpu.memory_space<vmem>>, vector<1x1x64xf32>
    %461 = vector.shape_cast %460 : vector<1x1x64xf32> to vector<1x64xf32>
    %462 = vector.broadcast %461 : vector<1x64xf32> to vector<18x64xf32>
    %463 = arith.addf %459, %462 : vector<18x64xf32>
    %cst_226 = arith.constant 5.000000e-01 : f32
    %464 = vector.broadcast %cst_226 : f32 to vector<18x64xf32>
    %465 = arith.mulf %464, %463 : vector<18x64xf32>
    %cst_227 = arith.constant 0.707106769 : f32
    %466 = vector.broadcast %cst_227 : f32 to vector<18x64xf32>
    %467 = arith.mulf %463, %466 : vector<18x64xf32>
    %468 = math.absf %467 : vector<18x64xf32>
    %cst_228 = arith.constant 0.327591091 : f32
    %469 = vector.broadcast %cst_228 : f32 to vector<18x64xf32>
    %470 = arith.mulf %469, %468 : vector<18x64xf32>
    %cst_229 = arith.constant 1.000000e+00 : f32
    %471 = vector.broadcast %cst_229 : f32 to vector<18x64xf32>
    %472 = arith.addf %471, %470 : vector<18x64xf32>
    %cst_230 = arith.constant 1.000000e+00 : f32
    %473 = vector.broadcast %cst_230 : f32 to vector<18x64xf32>
    %474 = arith.divf %473, %472 : vector<18x64xf32>
    %cst_231 = arith.constant 1.06140542 : f32
    %475 = vector.broadcast %cst_231 : f32 to vector<18x64xf32>
    %476 = arith.mulf %475, %474 : vector<18x64xf32>
    %cst_232 = arith.constant -1.45315206 : f32
    %477 = vector.broadcast %cst_232 : f32 to vector<18x64xf32>
    %478 = arith.addf %476, %477 : vector<18x64xf32>
    %479 = arith.mulf %478, %474 : vector<18x64xf32>
    %cst_233 = arith.constant 1.42141378 : f32
    %480 = vector.broadcast %cst_233 : f32 to vector<18x64xf32>
    %481 = arith.addf %479, %480 : vector<18x64xf32>
    %482 = arith.mulf %481, %474 : vector<18x64xf32>
    %cst_234 = arith.constant -0.284496725 : f32
    %483 = vector.broadcast %cst_234 : f32 to vector<18x64xf32>
    %484 = arith.addf %482, %483 : vector<18x64xf32>
    %485 = arith.mulf %484, %474 : vector<18x64xf32>
    %cst_235 = arith.constant 0.254829586 : f32
    %486 = vector.broadcast %cst_235 : f32 to vector<18x64xf32>
    %487 = arith.addf %485, %486 : vector<18x64xf32>
    %488 = arith.mulf %487, %474 : vector<18x64xf32>
    %cst_236 = arith.constant 0.000000e+00 : f32
    %489 = vector.broadcast %cst_236 : f32 to vector<18x64xf32>
    %490 = arith.subf %489, %468 : vector<18x64xf32>
    %491 = arith.mulf %490, %468 : vector<18x64xf32>
    %492 = math.exp %491 : vector<18x64xf32>
    %493 = arith.mulf %488, %492 : vector<18x64xf32>
    %cst_237 = arith.constant 1.000000e+00 : f32
    %494 = vector.broadcast %cst_237 : f32 to vector<18x64xf32>
    %495 = arith.subf %494, %493 : vector<18x64xf32>
    %cst_238 = arith.constant 0.000000e+00 : f32
    %496 = vector.broadcast %cst_238 : f32 to vector<18x64xf32>
    %497 = arith.cmpf oge, %467, %496 : vector<18x64xf32>
    %cst_239 = arith.constant 0.000000e+00 : f32
    %498 = vector.broadcast %cst_239 : f32 to vector<18x64xf32>
    %499 = arith.subf %498, %495 : vector<18x64xf32>
    %500 = arith.select %497, %495, %499 : vector<18x64xi1>, vector<18x64xf32>
    %cst_240 = arith.constant 1.000000e+00 : f32
    %501 = vector.broadcast %cst_240 : f32 to vector<18x64xf32>
    %502 = arith.addf %501, %500 : vector<18x64xf32>
    %503 = arith.mulf %465, %502 : vector<18x64xf32>
    %c1_241 = arith.constant 1 : index
    %c0_242 = arith.constant 0 : index
    %c0_243 = arith.constant 0 : index
    %504 = vector.load %arg16[%c1_241, %c0_242, %c0_243] : memref<2x64x32xbf16, #tpu.memory_space<vmem>>, vector<1x64x32xbf16>
    %505 = vector.shape_cast %504 : vector<1x64x32xbf16> to vector<64x32xbf16>
    %506 = arith.truncf %503 : vector<18x64xf32> to vector<18x64xbf16>
    %cst_244 = arith.constant dense<0.000000e+00> : vector<18x32xf32>
    %507 = tpu.matmul %506, %505, %cst_244 {dimension_numbers = #tpu.dot_dimension_numbers<[1], [0], [0], [1], [0, 0, 1, 1], [], []>} : vector<18x64xbf16>, vector<64x32xbf16>, vector<18x32xf32> -> vector<18x32xf32>
    %c1_245 = arith.constant 1 : index
    %c0_246 = arith.constant 0 : index
    %c0_247 = arith.constant 0 : index
    %508 = vector.load %arg17[%c1_245, %c0_246, %c0_247] : memref<2x1x32xf32, #tpu.memory_space<vmem>>, vector<1x1x32xf32>
    %509 = vector.shape_cast %508 : vector<1x1x32xf32> to vector<1x32xf32>
    %510 = vector.broadcast %509 : vector<1x32xf32> to vector<18x32xf32>
    %511 = arith.addf %507, %510 : vector<18x32xf32>
    %512 = arith.addf %455, %511 : vector<18x32xf32>
    %c1_248 = arith.constant 1 : index
    %c0_249 = arith.constant 0 : index
    %c0_250 = arith.constant 0 : index
    %513 = vector.load %arg18[%c1_248, %c0_249, %c0_250] : memref<2x1x32xf32, #tpu.memory_space<vmem>>, vector<1x1x32xf32>
    %514 = vector.shape_cast %513 : vector<1x1x32xf32> to vector<1x32xf32>
    %c1_251 = arith.constant 1 : index
    %c0_252 = arith.constant 0 : index
    %c0_253 = arith.constant 0 : index
    %515 = vector.load %arg19[%c1_251, %c0_252, %c0_253] : memref<2x1x32xf32, #tpu.memory_space<vmem>>, vector<1x1x32xf32>
    %516 = vector.shape_cast %515 : vector<1x1x32xf32> to vector<1x32xf32>
    %cst_254 = arith.constant dense<0.000000e+00> : vector<18xf32>
    %517 = vector.multi_reduction <add>, %512, %cst_254 [1] : vector<18x32xf32> to vector<18xf32>
    %518 = vector.shape_cast %517 : vector<18xf32> to vector<18x1xf32>
    %cst_255 = arith.constant 3.200000e+01 : f32
    %519 = vector.broadcast %cst_255 : f32 to vector<18x1xf32>
    %520 = arith.divf %518, %519 : vector<18x1xf32>
    %521 = vector.broadcast %520 : vector<18x1xf32> to vector<18x32xf32>
    %522 = arith.subf %512, %521 : vector<18x32xf32>
    %523 = arith.mulf %522, %522 : vector<18x32xf32>
    %cst_256 = arith.constant dense<0.000000e+00> : vector<18xf32>
    %524 = vector.multi_reduction <add>, %523, %cst_256 [1] : vector<18x32xf32> to vector<18xf32>
    %525 = vector.shape_cast %524 : vector<18xf32> to vector<18x1xf32>
    %cst_257 = arith.constant 3.200000e+01 : f32
    %526 = vector.broadcast %cst_257 : f32 to vector<18x1xf32>
    %527 = arith.divf %525, %526 : vector<18x1xf32>
    %528 = vector.broadcast %520 : vector<18x1xf32> to vector<18x32xf32>
    %529 = arith.subf %512, %528 : vector<18x32xf32>
    %cst_258 = arith.constant 9.99999974E-6 : f32
    %530 = vector.broadcast %cst_258 : f32 to vector<18x1xf32>
    %531 = arith.addf %527, %530 : vector<18x1xf32>
    %532 = math.rsqrt %531 : vector<18x1xf32>
    %533 = vector.broadcast %532 : vector<18x1xf32> to vector<18x32xf32>
    %534 = arith.mulf %529, %533 : vector<18x32xf32>
    %535 = vector.broadcast %514 : vector<1x32xf32> to vector<18x32xf32>
    %536 = arith.mulf %534, %535 : vector<18x32xf32>
    %537 = vector.broadcast %516 : vector<1x32xf32> to vector<18x32xf32>
    %538 = arith.addf %536, %537 : vector<18x32xf32>
    %539 = vector.extract_strided_slice %538 {offsets = [0, 0], sizes = [8, 32], strides = [1, 1]} : vector<18x32xf32> to vector<8x32xf32>
    %c0_259 = arith.constant 0 : index
    %c0_260 = arith.constant 0 : index
    %c0_261 = arith.constant 0 : index
    %540 = vector.load %arg20[%c0_259, %c0_260, %c0_261] : memref<2x8x32xf32, #tpu.memory_space<vmem>>, vector<1x8x32xf32>
    %541 = vector.shape_cast %540 : vector<1x8x32xf32> to vector<8x32xf32>
    %542 = vector.shape_cast %539 : vector<8x32xf32> to vector<1x8x32xf32>
    tpu.vector_store %arg20[%c0_259, %c0_260, %c0_261], %542 {strides = array<i32>} : memref<2x8x32xf32, #tpu.memory_space<vmem>>, vector<1x8x32xf32>,
    %543 = vector.extract_strided_slice %538 {offsets = [9, 0], sizes = [8, 32], strides = [1, 1]} : vector<18x32xf32> to vector<8x32xf32>
    %c1_262 = arith.constant 1 : index
    %c0_263 = arith.constant 0 : index
    %c0_264 = arith.constant 0 : index
    %544 = vector.load %arg20[%c1_262, %c0_263, %c0_264] : memref<2x8x32xf32, #tpu.memory_space<vmem>>, vector<1x8x32xf32>
    %545 = vector.shape_cast %544 : vector<1x8x32xf32> to vector<8x32xf32>
    %546 = vector.shape_cast %543 : vector<8x32xf32> to vector<1x8x32xf32>
    tpu.vector_store %arg20[%c1_262, %c0_263, %c0_264], %546 {strides = array<i32>} : memref<2x8x32xf32, #tpu.memory_space<vmem>>, vector<1x8x32xf32>,
    return
  }
}

</mosaic_0001>

<bundles_post_ra>
// kernel: mld_denoiser_forward.1
= control target key start
LH: loop header
LB: loop body
LE: loop exit
PB: predicated region body
PF: predicated region fallthrough
CT: control target
= control target key end

     0   :  { %s4547_s0 = inlined_call_operand.hbm [shape: f32[2,8,32], index: 0, kind: input, shape index: {}]   ;;  %s4548_s1 = inlined_call_operand.vmem [shape: f32[2,16], index: 1, kind: input, shape index: {}]   ;;  %s4549_s2 = inlined_call_operand.hbm [shape: f32[18,18], index: 2, kind: input, shape index: {}]   ;;  %s4550_s3 = inlined_call_operand.vmem [shape: f32[9,32], index: 3, kind: input, shape index: {}]   ;;  %s4551_s4 = inlined_call_operand.vmem [shape: bf16[16,32], index: 4, kind: input, shape index: {}]   ;;  %s4552_s5 = inlined_call_operand.hbm [shape: f32[1,32], index: 5, kind: input, shape index: {}]   ;;  %s4553_s6 = inlined_call_operand.hbm [shape: bf16[32,32], index: 6, kind: input, shape index: {}]   ;;  %s4554_s7 = inlined_call_operand.hbm [shape: f32[1,32], index: 7, kind: input, shape index: {}]   ;;  %s4555_s8 = inlined_call_operand.vmem [shape: bf16[2,3,32,32], index: 8, kind: input, shape index: {}]   ;;  %s4556_s9 = inlined_call_operand.hbm [shape: f32[2,3,1,32], index: 9, kind: input, shape index: {}]   ;;  %s4557_s10 = inlined_call_operand.vmem [shape: bf16[2,4,8,32], index: 10, kind: input, shape index: {}]   ;;  %s4558_s11 = inlined_call_operand.hbm [shape: f32[2,1,32], index: 11, kind: input, shape index: {}]   ;;  %s4559_s12 = inlined_call_operand.hbm [shape: f32[2,1,32], index: 12, kind: input, shape index: {}]   ;;  %s4560_s13 = inlined_call_operand.hbm [shape: f32[2,1,32], index: 13, kind: input, shape index: {}]   ;;  %s4561_s14 = inlined_call_operand.hbm [shape: bf16[2,32,64], index: 14, kind: input, shape index: {}]   ;;  %s4562_s15 = inlined_call_operand.hbm [shape: f32[2,1,64], index: 15, kind: input, shape index: {}]   ;;  %s4563_s16 = inlined_call_operand.vmem [shape: bf16[2,64,32], index: 16, kind: input, shape index: {}]   ;;  %s4564_s17 = inlined_call_operand.hbm [shape: f32[2,1,32], index: 17, kind: input, shape index: {}]   ;;  %s4565_s18 = inlined_call_operand.hbm [shape: f32[2,1,32], index: 18, kind: input, shape index: {}]   ;;  %s4566_s19 = inlined_call_operand.hbm [shape: f32[2,1,32], index: 19, kind: input, shape index: {}]   ;;  %s4567_s20 = inlined_call_operand.vmem [shape: f32[2,8,32], index: 20, kind: output, shape index: {}]  }
   0x1   :  { %4570 = sst [smem:[#allocation32_spill]] %s4547_s0 }
   0x2   :  { %4571 = sst [smem:[#allocation33_spill]] %s4548_s1 }
   0x3   :  { %4572 = sst [smem:[#allocation34_spill]] %s4549_s2 }
   0x4   :  { %4573 = sst [smem:[#allocation35_spill]] %s4550_s3 }
   0x5   :  { %4574 = sst [smem:[#allocation36_spill]] %s4551_s4 }
   0x6   :  { %4575 = sst [smem:[#allocation37_spill]] %s4567_s20 }
   0x7   :  { %25 = vsyncpa [#allocation3], 0 }
   0x8   :  { %26 = vsyncpa [#allocation5], 0 }
   0x9   :  { %27 = vsyncpa [#allocation8], 0 }
   0xa   :  { %28 = vsyncpa [#allocation11], 0 }
   0xb   :  { %29 = vsyncpa [#allocation14], 0 }
   0xc   :  { %30 = vsyncpa [#allocation17], 0 }
   0xd   :  { %31 = vsyncpa [#allocation20], 0 }
   0xe   :  { %32 = vsyncpa [#allocation23], 0  ;;  %s4576_s23 = sld [smem:[#allocation34_spill]]  ;;  %s3747_s2 = smov [#allocation4]  }
   0xf   :  { %s54_s25 = sshll.u32 %s3747_s2, 4  ;;  %s80_s27 = sshll.u32 %s4553_s6, 4  ;;  %s55_s25 = int_to_ptr.vmem [resolvable:$true] %s54_s25  ;;  %s81_s27 = int_to_ptr.hbm [resolvable:$true] %s80_s27 }
  0x10   :  { %s3748_s28 = smov 128   ;;  %s3749_s4 = smov 8  }
  0x11   :  { %s3750_s29 = smov [#allocation7]   ;;  %s3751_s0 = smov 64  }
  0x12   :  { %s82_s30 = sshll.u32 %s3750_s29, 4  ;;  %s3752_s21 = smov 4   ;;  %s83_s30 = int_to_ptr.vmem [resolvable:$true] %s82_s30 }
  0x13   :  { %88 = dma.hbm_to_vmem [thread:$0]  %s81_s27, 256, %s83_s30, [#allocation8], %s3751_s0, %s3751_s0, %s3752_s21  }
  0x14   :  { %s52_s24 = sshll.u32 %s4576_s23, 4  ;;  %s106_s23 = sshll.u32 %s4556_s9, 4  ;;  %s53_s24 = int_to_ptr.hbm [resolvable:$true] %s52_s24  ;;  %s107_s23 = int_to_ptr.hbm [resolvable:$true] %s106_s23 }
  0x15   :  { %60 = dma.hbm_to_vmem [thread:$0]  %s53_s24, 384, %s55_s25, [#allocation5], %s3748_s28, %s3748_s28, %s3749_s4  }
  0x16   :  { %s3753_s2 = smov [#allocation10]   ;;  %s134_s20 = sshll.u32 %s4559_s12, 4  ;;  %s135_s20 = int_to_ptr.hbm [resolvable:$true] %s134_s20 }
  0x17   :  { %s108_s6 = sshll.u32 %s3753_s2, 4  ;;  %s3754_s24 = smov 16   ;;  %s109_s6 = int_to_ptr.vmem [resolvable:$true] %s108_s6 }
  0x18   :  { %s3755_s25 = smov 1   ;;  %s3756_s27 = smov [#allocation13]  }
  0x19   :  { %114 = dma.hbm_to_vmem [thread:$0]  %s107_s23, 96, %s109_s6, [#allocation11], %s3754_s24, %s3754_s24, %s3755_s25  }
  0x1a   :  { %s136_s29 = sshll.u32 %s3756_s27, 4  ;;  %s160_s9 = sshll.u32 %s4561_s14, 4  ;;  %s137_s29 = int_to_ptr.vmem [resolvable:$true] %s136_s29  ;;  %s161_s9 = int_to_ptr.hbm [resolvable:$true] %s160_s9 }
  0x1b   :  { %142 = dma.hbm_to_vmem [thread:$0]  %s135_s20, 32, %s137_s29, [#allocation14], %s3754_s24, %s3754_s24, %s3755_s25  }
  0x1c   :  { %s188_s2 = sshll.u32 %s4564_s17, 4  ;;  %s3757_s3 = smov [#allocation16]   ;;  %s189_s2 = int_to_ptr.hbm [resolvable:$true] %s188_s2 }
  0x1d   :  { %s162_s26 = sshll.u32 %s3757_s3, 4  ;;  %s3758_s23 = smov [#allocation19]   ;;  %s163_s26 = int_to_ptr.vmem [resolvable:$true] %s162_s26 }
  0x1e   :  { %168 = dma.hbm_to_vmem [thread:$0]  %s161_s9, 512, %s163_s26, [#allocation17], %s3751_s0, %s3751_s0, %s3752_s21  }
  0x1f   :  { %s190_s6 = sshll.u32 %s3758_s23, 4  ;;  %s4577_s14 = sld [smem:[#allocation32_spill]]  ;;  %s191_s6 = int_to_ptr.vmem [resolvable:$true] %s190_s6 }
  0x20   :  { %196 = dma.hbm_to_vmem [thread:$0]  %s189_s2, 32, %s191_s6, [#allocation20], %s3754_s24, %s3754_s24, %s3755_s25  }
  0x21   :  { %s70_s17 = sshll.u32 %s4552_s5, 4  ;;  %s3759_s12 = smov [#allocation2]   ;;  %s71_s17 = int_to_ptr.hbm [resolvable:$true] %s70_s17 }
  0x22   :  { %s39_s22 = sshll.u32 %s3759_s12, 4  ;;  %s3760_s0 = smov [#allocation6]   ;;  %s40_s22 = int_to_ptr.vmem [resolvable:$true] %s39_s22 }
  0x23   :  { %s72_s21 = sshll.u32 %s3760_s0, 4  ;;  %s94_s26 = sshll.u32 %s4554_s7, 4  ;;  %s73_s21 = int_to_ptr.vmem [resolvable:$true] %s72_s21  ;;  %s95_s26 = int_to_ptr.hbm [resolvable:$true] %s94_s26 }
  0x24   :  { %75 = dma.hbm_to_vmem [thread:$0]  %s71_s17, 16, %s73_s21, [#allocation5]  }
  0x25   :  { %s37_s1 = sshll.u32 %s4577_s14, 4  ;;  %s121_s5 = sshll.u32 %s4558_s11, 4  ;;  %s38_s1 = int_to_ptr.hbm [resolvable:$true] %s37_s1  ;;  %s122_s5 = int_to_ptr.hbm [resolvable:$true] %s121_s5 }
  0x26   :  { %45 = dma.hbm_to_vmem [thread:$0]  %s38_s1, 256, %s40_s22, [#allocation3], %s3748_s28, %s3748_s28, %s3749_s4  }
  0x27   :  { %s3761_s6 = smov [#allocation9]   ;;  %s3762_s30 = smov [#allocation12]  }
  0x28   :  { %s96_s27 = sshll.u32 %s3761_s6, 4  ;;  %s123_s28 = sshll.u32 %s3762_s30, 4  ;;  %s97_s27 = int_to_ptr.vmem [resolvable:$true] %s96_s27  ;;  %s124_s28 = int_to_ptr.vmem [resolvable:$true] %s123_s28 }
  0x29   :  { %99 = dma.hbm_to_vmem [thread:$0]  %s95_s26, 16, %s97_s27, [#allocation8]  }
  0x2a   :  { %s147_s1 = sshll.u32 %s4560_s13, 4  ;;  %s173_s11 = sshll.u32 %s4562_s15, 4  ;;  %s148_s1 = int_to_ptr.hbm [resolvable:$true] %s147_s1  ;;  %s174_s11 = int_to_ptr.hbm [resolvable:$true] %s173_s11 }
  0x2b   :  { %129 = dma.hbm_to_vmem [thread:$0]  %s122_s5, 32, %s124_s28, [#allocation11], %s3754_s24, %s3754_s24, %s3755_s25  }
  0x2c   :  { %s3763_s29 = smov [#allocation15]   ;;  %s3764_s12 = smov [#allocation18]  }
  0x2d   :  { %s149_s17 = sshll.u32 %s3763_s29, 4  ;;  %s175_s13 = sshll.u32 %s3764_s12, 4  ;;  %s150_s17 = int_to_ptr.vmem [resolvable:$true] %s149_s17  ;;  %s176_s13 = int_to_ptr.vmem [resolvable:$true] %s175_s13 }
  0x2e   :  { %155 = dma.hbm_to_vmem [thread:$0]  %s148_s1, 32, %s150_s17, [#allocation14], %s3754_s24, %s3754_s24, %s3755_s25  }
  0x2f   :  { %s201_s21 = sshll.u32 %s4565_s18, 4  ;;  %s214_s3 = sshll.u32 %s4566_s19, 4  ;;  %s202_s21 = int_to_ptr.hbm [resolvable:$true] %s201_s21  ;;  %s215_s3 = int_to_ptr.hbm [resolvable:$true] %s214_s3 }
  0x30   :  { %181 = dma.hbm_to_vmem [thread:$0]  %s174_s11, 32, %s176_s13, [#allocation17], %s3754_s24, %s3754_s24, %s3755_s25  }
  0x31   :  { %s3765_s26 = smov [#allocation21]   ;;  %s3766_s23 = smov [#allocation22]  }
  0x32   :  { %s203_s2 = sshll.u32 %s3765_s26, 4  ;;  %s216_s18 = sshll.u32 %s3766_s23, 4  ;;  %s204_s2 = int_to_ptr.vmem [resolvable:$true] %s203_s2  ;;  %s217_s18 = int_to_ptr.vmem [resolvable:$true] %s216_s18 }
  0x33   :  { %209 = dma.hbm_to_vmem [thread:$0]  %s202_s21, 32, %s204_s2, [#allocation20], %s3754_s24, %s3754_s24, %s3755_s25  }
  0x34   :  { %222 = dma.hbm_to_vmem [thread:$0]  %s215_s3, 32, %s217_s18, [#allocation23], %s3754_s24, %s3754_s24, %s3755_s25  }
  0x35   :  { %3731 = dma.done.wait [#allocation3], 256  }
  0x36   :  { %3732 = vsyncadd [#allocation3], 4294967040 }
  0x37   :  { %3733 = dma.done.wait [#allocation5], 400  }
  0x38   :  { %3734 = vsyncadd [#allocation5], 4294966896 }
  0x39   :  { %3735 = dma.done.wait [#allocation8], 272  }
  0x3a   :  { %3736 = vsyncadd [#allocation8], 4294967024 }
  0x3b   :  { %3737 = dma.done.wait [#allocation11], 128  }
  0x3c   :  { %3738 = vsyncadd [#allocation11], 4294967168 }
  0x3d   :  { %3739 = dma.done.wait [#allocation14], 64  }
  0x3e   :  { %3740 = vsyncadd [#allocation14], 4294967232 }
  0x3f   :  { %3741 = dma.done.wait [#allocation17], 544  }
  0x40   :  { %3742 = vsyncadd [#allocation17], 4294966752 }
  0x41   :  { %3743 = dma.done.wait [#allocation20], 64  }
  0x42   :  { %3744 = vsyncadd [#allocation20], 4294967232 }
  0x43   :  { %3745 = dma.done.wait [#allocation23], 32  }
  0x44   :  { %3746 = vsyncadd [#allocation23], 4294967264  ;;  %s4578_s6 = sld [smem:[#allocation36_spill]]  ;;  %vm294_vm0 = vcmask 130048   ;;  %v3116_v3 = vld [vmem:[#allocation7 + $0x8] sm:$0xff]  ;;  %v3115_v5 = vld [vmem:[#allocation7] sm:$0xff] }
  0x45   :  { %s4579_s27 = sld [smem:[#allocation33_spill]]  ;;  %362 = vmatpush.bf16.msra.mxu1 %v3116_v3  ;;  %v3220_v4 = vld [vmem:[#allocation6] ss:$0 sm:$0xff]  ;;  %vm352_vm5 = vcmask 261120   ;;  %v3120_v25 = vld [vmem:[%s4555_s8 + $0x18] sm:$0xff]  ;;  %v3117_v26 = vld [vmem:[%s4555_s8] sm:$0xff] }
  0x46   :  { %v3118_v24 = vld [vmem:[%s4555_s8 + $0x8] sm:$0xff]  ;;  %463 = vmatpush.bf16.msra.mxu3 %v3120_v25  ;;  %v3119_v27 = vld [vmem:[%s4555_s8 + $0x10] sm:$0xff]  ;;  %v3121_v29 = vld [vmem:[%s4555_s8 + $0x20] sm:$0xff]  ;;  %s4580_s21 = sld [smem:[#allocation35_spill]]  ;;  %vm383_vm6 = vcmask 1040384   ;;  %s3767_s3 = smov 120  }
  0x47   :  { %3141 = vmatpush.bf16.msra.mxu2 %v3118_v24  ;;  %v3122_v28 = vld [vmem:[%s4555_s8 + $0x28] sm:$0xff]  ;;  %v3221_v33 = vld [vmem:[#allocation9] ss:$0 sm:$0xff]  ;;  %v369_v36 = vld [vmem:[#allocation2] sm:$0xff]  ;;  %s3768_s26 = smov 104   ;;  %vm557_vm7 = vcmask 1043456  }
  0x48   :  { %v370_v30 = vld [vmem:[#allocation2 + $0x8] sm:$0xff]  ;;  %v3223_v49 = vld [vmem:[#allocation10 + $0x1] ss:$0 sm:$0xff]  ;;  %v3224_v62 = vld [vmem:[#allocation10 + $0x2] ss:$0 sm:$0xff]  ;;  %vm550_vm8 = vcmask 64512  }
  0x49   :  { %363 = vmatpush.bf16.msra.mxu1 %v3115_v5  ;;  %vm585_vm9 = vcmask 146432   ;;  %vm592_vm10 = vcmask 140288   ;;  %s3769_s2 = smov 112   ;;  %vm1243_vm11 = vcmask 254976   ;;  %s4581_s11 = sld [smem:[#allocation37_spill]] }
  0x4a   :  { %v3114_v0 = vld [vmem:[%s4578_s6] sm:$0xff]  ;;  %464 = vmatpush.bf16.msra.mxu3 %v3119_v27 }
  0x4b   :  { %v280_v1 = vld [vmem:[%s4579_s27] sm:$0x3]  ;;  %305 = vmatpush.bf16.msra.mxu0 %v3114_v0  ;;  %3142 = vmatpush.bf16.msra.mxu2 %v3117_v26 }
  0x4c   :  { %v283_v2 = vpack.c.bf16 %v280_v1, %v280_v1  ;;  %v371_v31 = vld [vmem:[%s4580_s21] sm:$0xff]  ;;  %v372_v32 = vld [vmem:[%s4580_s21 + $0x8] sm:$0x1] }
  0x4d   :  { %v375_v34 = vadd.f32 %v371_v31, %v370_v30  ;;  %v377_v35 = vrot.slane %v372_v32, 7  ;;  %v3979_v40 = vadd.f32 %v371_v31, %v369_v36 }
  0x4e   :  { %2902 = vmatmul.msk.bf16.vlgmr.msra.gmra.mxu0 %vm294_vm0, %v283_v2 }
  0x4f   :  { %423 = vmatpush.bf16.msrb.mxu0 %v3118_v24  ;;  %v381_v39 = vrot.slane %v375_v34, 7 }
  0x53   :  { %424 = vmatpush.bf16.msrb.mxu0 %v3117_v26 }
  0x57   :  { %503 = vmatpush.bf16.msra.mxu0 %v3122_v28  ;;  %v4027_v28 = vld [vmem:[#allocation4 + $0x10] sm:$0x3] }
  0x5b   :  { %504 = vmatpush.bf16.msra.mxu0 %v3121_v29 }
  0xcb   :  { %v307_v6 = vpop.f32.mrf.mxu0 }
  0xcc   :  { %v308_v7 = vadd.f32 %v3220_v4, %v307_v6 }
  0xce   :  { %v2903_v8 = vmul.f32 -1.442695, %v308_v7 }
  0xd0   :  { %3242 = vpow2.f32 %v2903_v8  ;;  %v3222_v8 = vld [vmem:[#allocation10] ss:$0 sm:$0xff] }
  0xd3   :  { %v309_v9 = vpop.f32.mrf.mxu0 }
  0xd6   :  { %v3243_v10 = vpop.eup %3242 }
  0xd7   :  { %v314_v11 = vadd.f32 1.0, %v3243_v10 }
  0xd9   :  { %3244 = vrcp.f32 %v314_v11  ;;  %v326_v15 = vand.u32 2147483648, %v314_v11  ;;  %v324_v17 = vand.u32 2147483647, %v314_v11  ;;  %vm320_vm2 = vweird.f32 %v314_v11 }
  0xdb   :  { %v327_v19 = vor.u32 1.1754944e-38, %v326_v15  ;;  %vm325_vm4 = vcmp.eq.f32.partialorder %v324_v17, 8.507059e+37 }
  0xdf   :  { %v3245_v12 = vpop.eup %3244 }
  0xe0   :  { %v316_v13 = vmul.f32 %v3245_v12, %v314_v11  ;;  %vm321_vm1 = vweird.f32 %v3245_v12 }
  0xe1   :  { %vm322_vm3 = vmor %vm320_vm2, %vm321_vm1 }
  0xe2   :  { %v317_v14 = vsub.f32 1.0, %v316_v13 }
  0xe4   :  { %v318_v16 = vmul.f32 %v3245_v12, %v317_v14 }
  0xe6   :  { %v319_v18 = vadd.f32 %v3245_v12, %v318_v16 }
  0xe8   :  { %v323_v20 = vsel %vm322_vm3, %v3245_v12, %v319_v18  ;;  %v4019_v18 = vld [vmem:[#allocation4] sm:$0xff] }
  0xe9   :  { %v328_v21 = vsel %vm325_vm4, %v327_v19, %v323_v20 }
  0xea   :  { %v330_v22 = vmul.f32 %v328_v21, %v308_v7 }
  0xec   :  { %v335_v23 = vpack.c.bf16 %v330_v22, %v330_v22 }
  0xee   :  { %2912 = vmatmul.msk.bf16.vlgmr.msra.gmra.mxu1 %vm352_vm5, %v335_v23  ;;  %v4023_v23 = vld [vmem:[#allocation4 + $0x8] sm:$0xff] }
 0x16b   :  { %v365_v37 = vpop.f32.mrf.mxu1 }
 0x16c   :  { %v366_v38 = vadd.f32 %v3221_v33, %v365_v37 }
 0x16e   :  { %v374_v41 = vadd.f32 %v372_v32, %v366_v38  ;;  %v379_v42 = vadd.f32 %v377_v35, %v366_v38 }
 0x170   :  { %v3982_v43 = vsel %vm383_vm6, %v374_v41, %v381_v39  ;;  %v3985_v44 = vsel %vm383_vm6, %v381_v39, %v379_v42 }
 0x171   :  { %v393_v45 = vpack.c.bf16 %v3982_v43, %v3979_v40  ;;  %v394_v46 = vpack.c.bf16 %v3985_v44, %v3985_v44 }
 0x173   :  { %v367_v47 = vpop.f32.mrf.mxu1  ;;  %2921 = vmatmul.msk.bf16.vlgmr.msrb.gmra.mxu0 %vm352_vm5, %v393_v45  ;;  %2922 = vmatmul.msk.bf16.vlgmr.msra.gmra.mxu2 %vm352_vm5, %v394_v46 }
 0x174   :  { %2935 = vmatmul.msk.bf16.vlgmr.msra.gmra.mxu3 %vm352_vm5, %v393_v45 }
 0x183   :  { %2949 = vmatmul.msk.bf16.vlgmr.msra.gmra.mxu0 %vm352_vm5, %v393_v45 }
 0x184   :  { %2936 = vmatmul.msk.bf16.gmra.mxu3 %vm352_vm5, %v394_v46 }
 0x193   :  { %2950 = vmatmul.msk.bf16.gmra.mxu0 %vm352_vm5, %v394_v46 }
 0x1f0   :  { %v426_v48 = vpop.f32.mrf.mxu0 }
 0x1f1   :  { %v427_v14 = vadd.f32 %v3222_v8, %v426_v48 }
 0x1f6   :  { %v431_v50 = vpop.f32.mrf.mxu2 }
 0x1f7   :  { %v466_v51 = vpop.f32.mrf.mxu3  ;;  %v432_v9 = vadd.f32 %v3222_v8, %v431_v50 }
 0x1f8   :  { %v467_v52 = vadd.f32 %v3223_v49, %v466_v51  ;;  %v428_v53 = vpop.f32.mrf.mxu0 }
 0x1f9   :  { %v4011_v10 = vpack.c.bf16 %v432_v9, %v432_v9  ;;  %v429_v12 = vadd.f32 %v3222_v8, %v428_v53 }
 0x1fa   :  { %515 = vxpose.xlu0.b32.start [1/3] (short) (narrow) %v467_v52, 8 }
 0x1fb   :  { %v547_v16 = vpack.c.bf16 %v429_v12, %v427_v14 }
 0x1fe   :  { %v433_v54 = vpop.f32.mrf.mxu2 }
 0x1ff   :  { %v468_v55 = vpop.f32.mrf.mxu3 }
 0x200   :  { %v469_v56 = vadd.f32 %v3223_v49, %v468_v55  ;;  %v506_v57 = vpop.f32.mrf.mxu0 }
 0x201   :  { %v507_v5 = vadd.f32 %v3224_v62, %v506_v57 }
 0x202   :  { %516 = vxpose.xlu0.b32.cont [2/3] (short) (narrow) %v469_v56, 8  ;;  %v3997_v58 = vpack.i.bf16 %v469_v56, %v467_v52 }
 0x207   :  { %v471_v59 = vpop.f32.mrf.mxu3 }
 0x208   :  { %v3999_v60 = vadd.f32 %v3223_v49, %v471_v59  ;;  %v508_v61 = vpop.f32.mrf.mxu0 }
 0x209   :  { %v509_v3 = vadd.f32 %v3224_v62, %v508_v61 }
 0x20a   :  { %517 = vxpose.xlu0.b32.end [3/3] (short) (narrow) %v3999_v60, 8 }
 0x20b   :  { %v4006_v6 = vpack.c.bf16 %v509_v3, %v507_v5 }
 0x20f   :  { %v473_v63 = vpop.f32.mrf.mxu3 }
 0x210   :  { %v511_v0 = vpop.f32.mrf.mxu0 }
 0x211   :  { %v512_v1 = vadd.f32 %v3224_v62, %v511_v0 }
 0x213   :  { %v4002_v2 = vpack.c.bf16 %v512_v1, %v512_v1 }
 0x215   :  { %v631_v4 = vsel %vm383_vm6, %v4002_v2, 0 }
 0x216   :  { %639 = vmatpush.bf16.msrb.mxu2 %v631_v4 }
 0x218   :  { %v513_v7 = vpop.f32.mrf.mxu0 }
 0x21a   :  { %640 = vmatpush.bf16.msrb.mxu2 %v4006_v6 }
 0x278   :  { %3169 = vrot.lane.b32.xlu0 %v3997_v58, %s3767_s3 }
 0x280   :  { %1089 = vrot.lane.b32.xlu0 %v4011_v10, %s3768_s26 }
 0x29e   :  { %v531_v11 = vpop.trf.xlu0 }
 0x29f   :  { %v549_v13 = vpack.c.bf16 %v531_v11, %v531_v11 }
 0x2a1   :  { %v559_v15 = vsel %vm557_vm7, %v549_v13, 0 }
 0x2a2   :  { %568 = vmatpush.bf16.msrb.mxu1 %v559_v15 }
 0x2a5   :  { %2951 = vmatmul.msk.bf16.vlgmr.msrb.gmra.mxu1 %vm550_vm8, %v547_v16 }
 0x2b5   :  { %2952 = vmatmul.msk.bf16.gmra.mxu1 %vm550_vm8, %v4011_v10 }
 0x2ea   :  { %v3170_v51 = vpop.permute.xlu0 %3169 }
 0x2eb   :  { %v3171_v52 = vunpack.i.l.bf16 %v3170_v51  ;;  %v3172_v53 = vunpack.i.h.bf16 %v3170_v51 }
 0x322   :  { %v570_v17 = vpop.f32.mrf.mxu1 }
 0x323   :  { %v579_v19 = vmul.f32 0.35355338, %v570_v17  ;;  %v651_v17 = vld [vmem:[%s4557_s10] sm:$0xf] }
 0x325   :  { %v582_v20 = vadd.f32 %v579_v19, %v4019_v18  ;;  %v845_v19 = vsel %vm557_vm7, %v651_v17, 0 }
 0x326   :  { %854 = vmatpush.bf16.msra.mxu2 %v845_v19 }
 0x327   :  { %v586_v21 = vsel %vm585_vm9, %v582_v20, -inf }
 0x328   :  { %587 = vmax.xlane.f32.xlu1 %v586_v21 }
 0x32a   :  { %v572_v22 = vpop.f32.mrf.mxu1 }
 0x32b   :  { %v580_v24 = vmul.f32 0.35355338, %v572_v22 }
 0x32d   :  { %v583_v25 = vadd.f32 %v580_v24, %v4023_v23 }
 0x32f   :  { %v589_v26 = vsel %vm585_vm9, %v583_v25, -inf }
 0x330   :  { %590 = vmax.xlane.f32.xlu1 %v589_v26 }
 0x332   :  { %v575_v27 = vpop.f32.mrf.mxu1 }
 0x333   :  { %v581_v29 = vmul.f32 0.35355338, %v575_v27 }
 0x335   :  { %v584_v30 = vadd.f32 %v581_v29, %v4027_v28 }
 0x337   :  { %v593_v31 = vsel %vm592_vm10, %v584_v30, -inf }
 0x338   :  { %594 = vmax.xlane.f32.xlu2 %v593_v31 }
 0x33a   :  { %v577_v32 = vpop.f32.mrf.mxu1 }
 0x39b   :  { %v588_v33 = vpop.xlane.xlu1 %587 }
 0x39c   :  { %v596_v34 = vsub.f32 %v582_v20, %v588_v33 }
 0x39e   :  { %v599_v35 = vmul.f32 1.442695, %v596_v34 }
 0x3a0   :  { %3246 = vpow2.f32 %v599_v35 }
 0x3a3   :  { %v591_v36 = vpop.xlane.xlu1 %590 }
 0x3a4   :  { %v597_v37 = vsub.f32 %v583_v25, %v591_v36 }
 0x3a6   :  { %v3247_v38 = vpop.eup %3246  ;;  %v601_v39 = vmul.f32 1.442695, %v597_v37 }
 0x3a7   :  { %v605_v41 = vsel %vm585_vm9, %v3247_v38, 0.0 }
 0x3a8   :  { %3248 = vpow2.f32 %v601_v39  ;;  %606 = vadd.xlane.f32.xlu2 %v605_v41  ;;  %v1090_v41 = vpop.permute.xlu0 %1089 }
 0x3ab   :  { %v595_v42 = vpop.xlane.xlu2 %594 }
 0x3ac   :  { %v598_v45 = vsub.f32 %v584_v30, %v595_v42 }
 0x3ae   :  { %v3249_v46 = vpop.eup %3248  ;;  %v603_v47 = vmul.f32 1.442695, %v598_v45 }
 0x3af   :  { %v608_v48 = vsel %vm585_vm9, %v3249_v46, 0.0 }
 0x3b0   :  { %3250 = vpow2.f32 %v603_v47  ;;  %609 = vadd.xlane.f32.xlu1 %v608_v48 }
 0x3b6   :  { %v3251_v49 = vpop.eup %3250 }
 0x3b7   :  { %v611_v50 = vsel %vm592_vm10, %v3251_v49, 0.0 }
 0x3b8   :  { %612 = vadd.xlane.f32.xlu2 %v611_v50 }
 0x3c9   :  { %661 = vrot.lane.b32.xlu1 %v3999_v60, %s3767_s3 }
 0x3d0   :  { %701 = vrot.lane.b32.xlu2 %v547_v16, %s3767_s3 }
 0x3d1   :  { %3179 = vrot.lane.b32.xlu1 %v3997_v58, %s3769_s2 }
 0x3d8   :  { %3174 = vrot.lane.b32.xlu2 %v3997_v58, %s3768_s26 }
 0x3d9   :  { %869 = vrot.lane.b32.xlu1 %v3999_v60, %s3769_s2 }
 0x3e0   :  { %1049 = vrot.lane.b32.xlu2 %v3999_v60, %s3768_s26 }
 0x3e8   :  { %703 = vrot.lane.b32.xlu2 %v4011_v10, %s3767_s3 }
 0x3f0   :  { %1087 = vrot.lane.b32.xlu2 %v547_v16, %s3768_s26 }
 0x3f8   :  { %907 = vrot.lane.b32.xlu2 %v547_v16, %s3769_s2 }
 0x40e   :  { %666 = vxpose.xlu1.b32.start [1/3] (short) (narrow) %v3171_v52, 8 }
 0x416   :  { %667 = vxpose.xlu1.b32.cont [2/3] (short) (narrow) %v3172_v53, 8 }
 0x41b   :  { %v607_v54 = vpop.xlane.xlu2 %606 }
 0x41c   :  { %3252 = vrcp.f32 %v607_v54 }
 0x422   :  { %v3253_v56 = vpop.eup %3252 }
 0x423   :  { %v610_v55 = vpop.xlane.xlu1 %609  ;;  %v617_v58 = vmul.f32 %v3253_v56, %v3247_v38 }
 0x424   :  { %3254 = vrcp.f32 %v610_v55 }
 0x42a   :  { %v3255_v57 = vpop.eup %3254 }
 0x42b   :  { %v618_v59 = vmul.f32 %v3255_v57, %v3249_v46  ;;  %v613_v60 = vpop.xlane.xlu2 %612 }
 0x42c   :  { %3256 = vrcp.f32 %v613_v60 }
 0x42d   :  { %v620_v61 = vpack.c.bf16 %v618_v59, %v617_v58 }
 0x42f   :  { %2953 = vmatmul.msk.bf16.vlgmr.msrb.gmra.mxu2 %vm585_vm9, %v620_v61 }
 0x432   :  { %v3257_v62 = vpop.eup %3256 }
 0x433   :  { %v702_v63 = vpop.permute.xlu2 %701  ;;  %v619_v0 = vmul.f32 %v3257_v62, %v3251_v49 }
 0x435   :  { %v621_v3 = vpack.c.bf16 %v619_v0, %v619_v0 }
 0x43b   :  { %v662_v1 = vpop.permute.xlu1 %661  ;;  %v3175_v4 = vpop.permute.xlu2 %3174 }
 0x43c   :  { %668 = vxpose.xlu1.b32.end [3/3] (short) (narrow) %v662_v1, 8  ;;  %v3176_v7 = vunpack.i.l.bf16 %v3175_v4  ;;  %v3177_v12 = vunpack.i.h.bf16 %v3175_v4 }
 0x43f   :  { %2954 = vmatmul.msk.bf16.gmra.mxu2 %vm585_vm9, %v621_v3 }
 0x443   :  { %v3180_v5 = vpop.permute.xlu1 %3179  ;;  %v1050_v15 = vpop.permute.xlu2 %1049 }
 0x444   :  { %v3181_v8 = vunpack.i.l.bf16 %v3180_v5  ;;  %v3182_v11 = vunpack.i.h.bf16 %v3180_v5 }
 0x446   :  { %v3183_v9 = vpack.i.bf16 %v3181_v8, %v3176_v7  ;;  %v3185_v13 = vpack.i.bf16 %v3182_v11, %v3177_v12 }
 0x448   :  { %3184 = vxpose.xlu2.b32.start [1/3] (short) (narrow) %v3183_v9, 8 }
 0x44b   :  { %v870_v14 = vpop.permute.xlu1 %869  ;;  %v704_v25 = vpop.permute.xlu2 %703 }
 0x44c   :  { %v3187_v16 = vpack.i.bf16 %v870_v14, %v1050_v15 }
 0x450   :  { %3186 = vxpose.xlu2.b32.cont [2/3] (short) (narrow) %v3185_v13, 8 }
 0x453   :  { %v1088_v29 = vpop.permute.xlu2 %1087 }
 0x458   :  { %3188 = vxpose.xlu2.b32.end [3/3] (short) (narrow) %v3187_v16, 8 }
 0x45b   :  { %v908_v32 = vpop.permute.xlu2 %907 }
 0x496   :  { %909 = vrot.lane.b32.xlu1 %v4011_v10, %s3769_s2 }
 0x4b2   :  { %v642_v20 = vpop.f32.mrf.mxu2 }
 0x4ba   :  { %v644_v21 = vpop.f32.mrf.mxu2 }
 0x4bb   :  { %v652_v22 = vpack.c.bf16 %v644_v21, %v642_v20 }
 0x4bd   :  { %2962 = vmatmul.msk.bf16.vlgmr.msra.gmra.mxu2 %vm550_vm8, %v652_v22 }
 0x4c2   :  { %v647_v24 = vpop.f32.mrf.mxu2 }
 0x4c3   :  { %v653_v27 = vpack.c.bf16 %v647_v24, %v647_v24 }
 0x4ca   :  { %v649_v26 = vpop.f32.mrf.mxu2 }
 0x4cd   :  { %2963 = vmatmul.msk.bf16.gmra.mxu2 %vm550_vm8, %v653_v27 }
 0x4d0   :  { %v682_v10 = vpop.trf.xlu1 }
 0x4d1   :  { %v698_v30 = vpack.c.bf16 %v682_v10, %v682_v10 }
 0x4d3   :  { %v712_v31 = vsel %vm557_vm7, %v698_v30, 0 }
 0x4d4   :  { %721 = vmatpush.bf16.msrb.mxu3 %v712_v31 }
 0x4d7   :  { %2955 = vmatmul.msk.bf16.vlgmr.msrb.gmra.mxu3 %vm550_vm8, %v702_v63 }
 0x4e1   :  { %v3189_v33 = vpop.trf.xlu2 }
 0x4e2   :  { %v3193_v34 = vunpack.i.h.bf16 %v3189_v33  ;;  %v3190_v35 = vunpack.i.l.bf16 %v3189_v33 }
 0x4e4   :  { %v1086_v36 = vpack.c.bf16 %v3190_v35, %v3190_v35  ;;  %v906_v37 = vpack.c.bf16 %v3193_v34, %v3193_v34 }
 0x4e6   :  { %v1098_v38 = vsel %vm557_vm7, %v1086_v36, 0  ;;  %v918_v39 = vsel %vm557_vm7, %v906_v37, 0 }
 0x4e7   :  { %2956 = vmatmul.msk.bf16.gmra.mxu3 %vm550_vm8, %v704_v25  ;;  %1107 = vmatpush.bf16.msrb.mxu2 %v1098_v38 }
 0x4e8   :  { %927 = vmatpush.bf16.msra.mxu3 %v918_v39 }
 0x4ea   :  { %2971 = vmatmul.msk.bf16.vlgmr.msrb.gmra.mxu2 %vm550_vm8, %v1088_v29 }
 0x4f7   :  { %2964 = vmatmul.msk.bf16.vlgmr.msra.gmra.mxu3 %vm550_vm8, %v908_v32 }
 0x4fa   :  { %2972 = vmatmul.msk.bf16.gmra.mxu2 %vm550_vm8, %v1090_v41 }
 0x508   :  { %v910_v42 = vpop.permute.xlu1 %909 }
 0x509   :  { %2965 = vmatmul.msk.bf16.gmra.mxu3 %vm550_vm8, %v910_v42 }
 0x540   :  { %v4068_v45 = vpop.f32.mrf.mxu2 }
 0x548   :  { %v4070_v46 = vpop.f32.mrf.mxu2 }
 0x550   :  { %v4072_v47 = vpop.f32.mrf.mxu2 }
 0x558   :  { %v863_v48 = vpop.f32.mrf.mxu2 }
 0x55a   :  { %v723_v49 = vpop.f32.mrf.mxu3 }
 0x55b   :  { %v732_v50 = vmul.f32 0.35355338, %v723_v49 }
 0x55d   :  { %v735_v51 = vadd.f32 %v732_v50, %v4019_v18 }
 0x55f   :  { %v738_v52 = vsel %vm585_vm9, %v735_v51, -inf }
 0x560   :  { %739 = vmax.xlane.f32.xlu0 %v738_v52 }
 0x562   :  { %v725_v53 = vpop.f32.mrf.mxu3 }
 0x563   :  { %v733_v54 = vmul.f32 0.35355338, %v725_v53 }
 0x565   :  { %v736_v55 = vadd.f32 %v733_v54, %v4023_v23 }
 0x567   :  { %v741_v56 = vsel %vm585_vm9, %v736_v55, -inf }
 0x568   :  { %742 = vmax.xlane.f32.xlu2 %v741_v56 }
 0x56a   :  { %v728_v57 = vpop.f32.mrf.mxu3 }
 0x56b   :  { %v734_v58 = vmul.f32 0.35355338, %v728_v57 }
 0x56d   :  { %v1109_v59 = vpop.f32.mrf.mxu2  ;;  %v737_v60 = vadd.f32 %v734_v58, %v4027_v28 }
 0x56e   :  { %v1118_v24 = vmul.f32 0.35355338, %v1109_v59 }
 0x56f   :  { %v744_v61 = vsel %vm592_vm10, %v737_v60, -inf }
 0x570   :  { %745 = vmax.xlane.f32.xlu0 %v744_v61  ;;  %v1121_v27 = vadd.f32 %v1118_v24, %v4019_v18 }
 0x572   :  { %v730_v62 = vpop.f32.mrf.mxu3  ;;  %v1124_v33 = vsel %vm585_vm9, %v1121_v27, -inf }
 0x575   :  { %v1111_v63 = vpop.f32.mrf.mxu2 }
 0x576   :  { %v1119_v31 = vmul.f32 0.35355338, %v1111_v63 }
 0x578   :  { %v1122_v34 = vadd.f32 %v1119_v31, %v4023_v23 }
 0x57a   :  { %v929_v0 = vpop.f32.mrf.mxu3  ;;  %v1127_v38 = vsel %vm585_vm9, %v1122_v34, -inf }
 0x57b   :  { %v938_v8 = vmul.f32 0.35355338, %v929_v0 }
 0x57d   :  { %v1114_v1 = vpop.f32.mrf.mxu2  ;;  %v941_v9 = vadd.f32 %v938_v8, %v4019_v18 }
 0x57e   :  { %v1120_v50 = vmul.f32 0.35355338, %v1114_v1 }
 0x57f   :  { %v944_v12 = vsel %vm585_vm9, %v941_v9, -inf }
 0x580   :  { %v1123_v52 = vadd.f32 %v1120_v50, %v4027_v28 }
 0x582   :  { %v931_v3 = vpop.f32.mrf.mxu3  ;;  %v1130_v57 = vsel %vm592_vm10, %v1123_v52, -inf }
 0x583   :  { %v939_v11 = vmul.f32 0.35355338, %v931_v3 }
 0x584   :  { %777 = vrot.lane.b32.xlu0 %v4002_v2, %s3767_s3 }
 0x585   :  { %v1116_v4 = vpop.f32.mrf.mxu2  ;;  %v942_v13 = vadd.f32 %v939_v11, %v4023_v23 }
 0x587   :  { %v947_v14 = vsel %vm585_vm9, %v942_v13, -inf }
 0x58c   :  { %v934_v5 = vpop.f32.mrf.mxu3 }
 0x58d   :  { %v940_v36 = vmul.f32 0.35355338, %v934_v5 }
 0x58f   :  { %v4097_v18 = vadd.f32 %v940_v36, %v4027_v28 }
 0x591   :  { %v950_v42 = vsel %vm592_vm10, %v4097_v18, -inf }
 0x594   :  { %v936_v7 = vpop.f32.mrf.mxu3 }
 0x5ae   :  { %945 = vmax.xlane.f32.xlu0 %v944_v12 }
 0x5b6   :  { %948 = vmax.xlane.f32.xlu0 %v947_v14 }
 0x5d3   :  { %v740_v15 = vpop.xlane.xlu0 %739 }
 0x5d4   :  { %v747_v16 = vsub.f32 %v735_v51, %v740_v15 }
 0x5d6   :  { %v750_v17 = vmul.f32 1.442695, %v747_v16 }
 0x5d8   :  { %3258 = vpow2.f32 %v750_v17 }
 0x5db   :  { %v743_v19 = vpop.xlane.xlu2 %742 }
 0x5dc   :  { %v748_v20 = vsub.f32 %v736_v55, %v743_v19 }
 0x5de   :  { %v4086_v21 = vpop.eup %3258  ;;  %v752_v22 = vmul.f32 1.442695, %v748_v20 }
 0x5df   :  { %v756_v25 = vsel %vm585_vm9, %v4086_v21, 0.0 }
 0x5e0   :  { %3260 = vpow2.f32 %v752_v22  ;;  %757 = vadd.xlane.f32.xlu0 %v756_v25 }
 0x5e3   :  { %v746_v26 = vpop.xlane.xlu0 %745 }
 0x5e4   :  { %v749_v29 = vsub.f32 %v737_v60, %v746_v26 }
 0x5e6   :  { %v3261_v10 = vpop.eup %3260  ;;  %v754_v30 = vmul.f32 1.442695, %v749_v29 }
 0x5e7   :  { %v759_v32 = vsel %vm585_vm9, %v3261_v10, 0.0 }
 0x5e8   :  { %3262 = vpow2.f32 %v754_v30  ;;  %760 = vadd.xlane.f32.xlu1 %v759_v32  ;;  %1125 = vmax.xlane.f32.xlu0 %v1124_v33 }
 0x5ee   :  { %v3263_v35 = vpop.eup %3262 }
 0x5ef   :  { %v762_v37 = vsel %vm592_vm10, %v3263_v35, 0.0 }
 0x5f0   :  { %763 = vadd.xlane.f32.xlu2 %v762_v37  ;;  %1128 = vmax.xlane.f32.xlu0 %v1127_v38 }
 0x5f6   :  { %v778_v39 = vpop.permute.xlu0 %777 }
 0x5f7   :  { %v787_v41 = vsel %vm383_vm6, %v778_v39, 0 }
 0x5f8   :  { %795 = vmatpush.bf16.msrb.mxu0 %v787_v41  ;;  %951 = vmax.xlane.f32.xlu2 %v950_v42 }
 0x604   :  { %775 = vrot.lane.b32.xlu0 %v4006_v6, %s3767_s3 }
 0x621   :  { %v946_v23 = vpop.xlane.xlu0 %945 }
 0x622   :  { %v953_v48 = vsub.f32 %v941_v9, %v946_v23 }
 0x624   :  { %v956_v49 = vmul.f32 1.442695, %v953_v48 }
 0x626   :  { %3264 = vpow2.f32 %v956_v49 }
 0x629   :  { %v949_v51 = vpop.xlane.xlu0 %948 }
 0x62a   :  { %v954_v53 = vsub.f32 %v942_v13, %v949_v51 }
 0x62c   :  { %v4105_v54 = vpop.eup %3264  ;;  %v958_v55 = vmul.f32 1.442695, %v954_v53 }
 0x62d   :  { %v962_v56 = vsel %vm585_vm9, %v4105_v54, 0.0 }
 0x62e   :  { %3266 = vpow2.f32 %v958_v55  ;;  %963 = vadd.xlane.f32.xlu1 %v962_v56  ;;  %1131 = vmax.xlane.f32.xlu0 %v1130_v57 }
 0x634   :  { %v4110_v58 = vpop.eup %3266 }
 0x635   :  { %v965_v59 = vsel %vm585_vm9, %v4110_v58, 0.0 }
 0x636   :  { %966 = vadd.xlane.f32.xlu2 %v965_v59 }
 0x642   :  { %1159 = vrot.lane.b32.xlu0 %v4006_v6, %s3768_s26 }
 0x647   :  { %1161 = vrot.lane.b32.xlu1 %v4002_v2, %s3768_s26 }
 0x653   :  { %v758_v28 = vpop.xlane.xlu0 %757 }
 0x65b   :  { %v1126_v60 = vpop.xlane.xlu0 %1125  ;;  %v761_v3 = vpop.xlane.xlu1 %760 }
 0x65c   :  { %v1133_v61 = vsub.f32 %v1121_v27, %v1126_v60 }
 0x65e   :  { %v1136_v62 = vmul.f32 1.442695, %v1133_v61 }
 0x660   :  { %3268 = vpow2.f32 %v1136_v62 }
 0x663   :  { %v1129_v63 = vpop.xlane.xlu0 %1128  ;;  %v764_v16 = vpop.xlane.xlu2 %763 }
 0x664   :  { %v1134_v0 = vsub.f32 %v1122_v34, %v1129_v63 }
 0x666   :  { %v1138_v1 = vmul.f32 1.442695, %v1134_v0  ;;  %v3269_v4 = vpop.eup %3268 }
 0x667   :  { %v1142_v8 = vsel %vm585_vm9, %v3269_v4, 0.0 }
 0x668   :  { %3270 = vpow2.f32 %v1138_v1 }
 0x669   :  { %3272 = vrcp.f32 %v761_v3 }
 0x66a   :  { %3274 = vrcp.f32 %v758_v28 }
 0x66b   :  { %3276 = vrcp.f32 %v764_v16  ;;  %v952_v22 = vpop.xlane.xlu2 %951 }
 0x66c   :  { %v955_v24 = vsub.f32 %v4097_v18, %v952_v22 }
 0x66e   :  { %v3271_v5 = vpop.eup %3270  ;;  %v960_v27 = vmul.f32 1.442695, %v955_v24 }
 0x66f   :  { %v1145_v7 = vsel %vm585_vm9, %v3271_v5, 0.0  ;;  %v3273_v9 = vpop.eup %3272 }
 0x670   :  { %1146 = vadd.xlane.f32.xlu2 %v1145_v7  ;;  %v3275_v11 = vpop.eup %3274  ;;  %v769_v12 = vmul.f32 %v3273_v9, %v3261_v10  ;;  %v2975_v7 = vld [vmem:[%s4557_s10 + $0xc] sm:$0xf]  ;;  %v2968_v9 = vld [vmem:[%s4557_s10 + $0x8] sm:$0xf] }
 0x671   :  { %1143 = vadd.xlane.f32.xlu1 %v1142_v8  ;;  %v768_v13 = vmul.f32 %v3275_v11, %v4086_v21  ;;  %v3277_v17 = vpop.eup %3276  ;;  %v1202_v8 = vsel %vm557_vm7, %v2975_v7, 0  ;;  %v1022_v11 = vsel %vm557_vm7, %v2968_v9, 0 }
 0x672   :  { %v770_v19 = vmul.f32 %v3277_v17, %v3263_v35  ;;  %v2959_v35 = vld [vmem:[%s4557_s10 + $0x4] sm:$0xf] }
 0x673   :  { %v771_v15 = vpack.c.bf16 %v769_v12, %v768_v13  ;;  %v818_v36 = vsel %vm557_vm7, %v2959_v35, 0 }
 0x674   :  { %v772_v20 = vpack.c.bf16 %v770_v19, %v770_v19  ;;  %827 = vmatpush.bf16.msra.mxu1 %v818_v36 }
 0x676   :  { %v776_v14 = vpop.permute.xlu0 %775 }
 0x677   :  { %796 = vmatpush.bf16.msrb.mxu0 %v776_v14 }
 0x678   :  { %1031 = vmatpush.bf16.msrb.mxu1 %v1022_v11 }
 0x67a   :  { %2957 = vmatmul.msk.bf16.vlgmr.msrb.gmra.mxu0 %vm585_vm9, %v771_v15 }
 0x688   :  { %981 = vrot.lane.b32.xlu2 %v4002_v2, %s3769_s2 }
 0x68a   :  { %979 = vrot.lane.b32.xlu1 %v4006_v6, %s3769_s2  ;;  %2958 = vmatmul.msk.bf16.gmra.mxu0 %vm585_vm9, %v772_v20 }
 0x6a1   :  { %v1132_v21 = vpop.xlane.xlu0 %1131  ;;  %v964_v2 = vpop.xlane.xlu1 %963 }
 0x6a2   :  { %v1135_v25 = vsub.f32 %v1123_v52, %v1132_v21 }
 0x6a4   :  { %v1140_v26 = vmul.f32 1.442695, %v1135_v25 }
 0x6a6   :  { %3278 = vpow2.f32 %v1140_v26 }
 0x6a7   :  { %3280 = vpow2.f32 %v960_v27 }
 0x6a9   :  { %v967_v34 = vpop.xlane.xlu2 %966 }
 0x6ac   :  { %v3279_v29 = vpop.eup %3278 }
 0x6ad   :  { %v3281_v10 = vpop.eup %3280  ;;  %v1148_v30 = vsel %vm592_vm10, %v3279_v29, 0.0 }
 0x6ae   :  { %v968_v31 = vsel %vm592_vm10, %v3281_v10, 0.0 }
 0x6b1   :  { %1149 = vadd.xlane.f32.xlu2 %v1148_v30 }
 0x6b4   :  { %969 = vadd.xlane.f32.xlu1 %v968_v31  ;;  %v1160_v33 = vpop.permute.xlu0 %1159 }
 0x6b9   :  { %v1162_v6 = vpop.permute.xlu1 %1161 }
 0x6ba   :  { %v1171_v32 = vsel %vm383_vm6, %v1162_v6, 0 }
 0x6bb   :  { %1179 = vmatpush.bf16.msrb.mxu3 %v1171_v32  ;;  %v3225_v32 = vld [vmem:[#allocation12] ss:$0 sm:$0xff] }
 0x6bf   :  { %1180 = vmatpush.bf16.msrb.mxu3 %v1160_v33 }
 0x6e3   :  { %v1147_v37 = vpop.xlane.xlu2 %1146 }
 0x6e4   :  { %3282 = vrcp.f32 %v1147_v37  ;;  %v1144_v38 = vpop.xlane.xlu1 %1143 }
 0x6e5   :  { %3284 = vrcp.f32 %v1144_v38 }
 0x6e6   :  { %3286 = vrcp.f32 %v967_v34 }
 0x6e7   :  { %3288 = vrcp.f32 %v964_v2 }
 0x6ea   :  { %v3283_v18 = vpop.eup %3282 }
 0x6eb   :  { %v3285_v39 = vpop.eup %3284  ;;  %v1155_v41 = vmul.f32 %v3283_v18, %v3271_v5  ;;  %v982_v42 = vpop.permute.xlu2 %981 }
 0x6ec   :  { %v1154_v23 = vmul.f32 %v3285_v39, %v3269_v4  ;;  %v991_v48 = vsel %vm383_vm6, %v982_v42, 0  ;;  %v3287_v50 = vpop.eup %3286 }
 0x6ed   :  { %999 = vmatpush.bf16.msra.mxu0 %v991_v48  ;;  %v3289_v52 = vpop.eup %3288  ;;  %v975_v53 = vmul.f32 %v3287_v50, %v4110_v58 }
 0x6ee   :  { %v1157_v49 = vpack.c.bf16 %v1155_v41, %v1154_v23  ;;  %v974_v55 = vmul.f32 %v3289_v52, %v4105_v54 }
 0x6f0   :  { %2973 = vmatmul.msk.bf16.vlgmr.msrb.gmra.mxu3 %vm585_vm9, %v1157_v49  ;;  %v977_v57 = vpack.c.bf16 %v975_v53, %v974_v55 }
 0x6f7   :  { %v798_v51 = vpop.f32.mrf.mxu0 }
 0x6fc   :  { %v980_v56 = vpop.permute.xlu1 %979 }
 0x6fd   :  { %1000 = vmatpush.bf16.msra.mxu0 %v980_v56 }
 0x6ff   :  { %v800_v59 = vpop.f32.mrf.mxu0 }
 0x700   :  { %v809_v28 = vpack.c.bf16 %v800_v59, %v798_v51  ;;  %2966 = vmatmul.msk.bf16.vlgmr.msra.gmra.mxu0 %vm585_vm9, %v977_v57  ;;  %v3770_v57 = vmov 32.0  }
 0x701   :  { %1211 = vmatpush.bf16.msrb.mxu0 %v1202_v8 }
 0x702   :  { %2960 = vmatmul.msk.bf16.vlgmr.msra.gmra.mxu1 %vm550_vm8, %v809_v28 }
 0x707   :  { %v803_v60 = vpop.f32.mrf.mxu0 }
 0x708   :  { %v810_v62 = vpack.c.bf16 %v803_v60, %v803_v60 }
 0x70f   :  { %v805_v61 = vpop.f32.mrf.mxu0 }
 0x712   :  { %2961 = vmatmul.msk.bf16.gmra.mxu1 %vm550_vm8, %v810_v62 }
 0x724   :  { %v1150_v63 = vpop.xlane.xlu2 %1149 }
 0x725   :  { %3290 = vrcp.f32 %v1150_v63 }
 0x727   :  { %v970_v0 = vpop.xlane.xlu1 %969 }
 0x728   :  { %3292 = vrcp.f32 %v970_v0 }
 0x729   :  { %3294 = vrcp.f32 %v3770_v57 }
 0x72b   :  { %v3291_v58 = vpop.eup %3290 }
 0x72c   :  { %v1156_v54 = vmul.f32 %v3291_v58, %v3279_v29 }
 0x72e   :  { %v3293_v1 = vpop.eup %3292  ;;  %v1158_v3 = vpack.c.bf16 %v1156_v54, %v1156_v54 }
 0x72f   :  { %v976_v4 = vmul.f32 %v3293_v1, %v3281_v10 }
 0x730   :  { %2974 = vmatmul.msk.bf16.gmra.mxu3 %vm585_vm9, %v1158_v3 }
 0x731   :  { %v978_v5 = vpack.c.bf16 %v976_v4, %v976_v4 }
 0x733   :  { %2967 = vmatmul.msk.bf16.gmra.mxu0 %vm585_vm9, %v978_v5 }
 0x773   :  { %v1182_v12 = vpop.f32.mrf.mxu3 }
 0x77b   :  { %v1184_v13 = vpop.f32.mrf.mxu3 }
 0x77c   :  { %v1193_v14 = vpack.c.bf16 %v1184_v13, %v1182_v12  ;;  %v3124_v13 = vld [vmem:[#allocation16 + $0x8] sm:$0xff] }
 0x77d   :  { %v1002_v15 = vpop.f32.mrf.mxu0  ;;  %1357 = vmatpush.bf16.msra.mxu1 %v3124_v13 }
 0x77e   :  { %2976 = vmatmul.msk.bf16.vlgmr.msrb.gmra.mxu0 %vm550_vm8, %v1193_v14 }
 0x77f   :  { %v829_v16 = vpop.f32.mrf.mxu1 }
 0x780   :  { %v857_v30 = vadd.f32 %v4068_v45, %v829_v16  ;;  %v3123_v16 = vld [vmem:[#allocation16] sm:$0xff] }
 0x781   :  { %1358 = vmatpush.bf16.msra.mxu1 %v3123_v16  ;;  %v3127_v16 = vld [vmem:[%s4563_s16 + $0x10] sm:$0xff] }
 0x785   :  { %v1004_v17 = vpop.f32.mrf.mxu0 }
 0x786   :  { %v1013_v19 = vpack.c.bf16 %v1004_v17, %v1002_v15 }
 0x787   :  { %v831_v20 = vpop.f32.mrf.mxu1 }
 0x788   :  { %2969 = vmatmul.msk.bf16.vlgmr.msrb.gmra.mxu1 %vm550_vm8, %v1013_v19  ;;  %v859_v35 = vadd.f32 %v4070_v46, %v831_v20 }
 0x78f   :  { %v834_v22 = vpop.f32.mrf.mxu1 }
 0x790   :  { %v862_v48 = vadd.f32 %v4072_v47, %v834_v22 }
 0x797   :  { %v836_v21 = vpop.f32.mrf.mxu1 }
 0x7b0   :  { %v1007_v24 = vpop.f32.mrf.mxu0 }
 0x7b1   :  { %v1014_v25 = vpack.c.bf16 %v1007_v24, %v1007_v24 }
 0x7b3   :  { %2970 = vmatmul.msk.bf16.gmra.mxu1 %vm550_vm8, %v1014_v25  ;;  %v1187_v26 = vpop.f32.mrf.mxu3 }
 0x7b4   :  { %v1194_v27 = vpack.c.bf16 %v1187_v26, %v1187_v26 }
 0x7b6   :  { %2977 = vmatmul.msk.bf16.gmra.mxu0 %vm550_vm8, %v1194_v27 }
 0x7b8   :  { %v1009_v29 = vpop.f32.mrf.mxu0 }
 0x7bb   :  { %v1189_v10 = vpop.f32.mrf.mxu3 }
 0x7fb   :  { %v1213_v2 = vpop.f32.mrf.mxu0 }
 0x803   :  { %v1215_v39 = vpop.f32.mrf.mxu0 }
 0x805   :  { %v1033_v31 = vpop.f32.mrf.mxu1 }
 0x806   :  { %v1042_v6 = vadd.f32 %v1033_v31, %v857_v30 }
 0x808   :  { %v1222_v33 = vadd.f32 %v1213_v2, %v1042_v6 }
 0x80a   :  { %v1229_v34 = vadd.f32 %v3225_v32, %v1222_v33  ;;  %v3226_v33 = vld [vmem:[#allocation13] ss:$0 sm:$0xff] }
 0x80c   :  { %v1232_v36 = vadd.f32 %v1229_v34, %v3979_v40 }
 0x80d   :  { %v1035_v37 = vpop.f32.mrf.mxu1 }
 0x80e   :  { %v1043_v38 = vadd.f32 %v1035_v37, %v859_v35  ;;  %v1237_v18 = vsel %vm352_vm5, %v1232_v36, 0.0  ;;  %v3227_v37 = vld [vmem:[#allocation15] ss:$0 sm:$0xff] }
 0x80f   :  { %1238 = vadd.xlane.f32.xlu0 %v1237_v18 }
 0x810   :  { %v1223_v41 = vadd.f32 %v1215_v39, %v1043_v38 }
 0x812   :  { %v1230_v42 = vadd.f32 %v3225_v32, %v1223_v41 }
 0x814   :  { %v1233_v45 = vadd.f32 %v1230_v42, %v3982_v43  ;;  %v3295_v43 = vpop.eup %3294 }
 0x815   :  { %v1248_v59 = vmul.f32 32.0, %v3295_v43  ;;  %vm1252_vm12 = vweird.f32 %v3295_v43 }
 0x816   :  { %v1240_v23 = vsel %vm352_vm5, %v1233_v45, 0.0 }
 0x817   :  { %1241 = vadd.xlane.f32.xlu2 %v1240_v23  ;;  %v1249_v28 = vsub.f32 1.0, %v1248_v59 }
 0x819   :  { %v1250_v60 = vmul.f32 %v3295_v43, %v1249_v28  ;;  %v3228_v28 = vld [vmem:[#allocation18] ss:$0 sm:$0xff] }
 0x81b   :  { %v1251_v47 = vadd.f32 %v3295_v43, %v1250_v60 }
 0x81d   :  { %v4165_v61 = vsel %vm1252_vm12, %v3295_v43, %v1251_v47 }
 0x830   :  { %v1038_v49 = vpop.f32.mrf.mxu1 }
 0x831   :  { %v1044_v50 = vadd.f32 %v1038_v49, %v862_v48 }
 0x833   :  { %v1218_v46 = vpop.f32.mrf.mxu0 }
 0x834   :  { %v1224_v51 = vadd.f32 %v1218_v46, %v1044_v50 }
 0x836   :  { %v1231_v40 = vadd.f32 %v3225_v32, %v1224_v51 }
 0x838   :  { %v1040_v52 = vpop.f32.mrf.mxu1  ;;  %v1234_v53 = vadd.f32 %v1231_v40, %v3985_v44 }
 0x83a   :  { %v1244_v55 = vsel %vm1243_vm11, %v1234_v53, 0.0 }
 0x83b   :  { %v1220_v56 = vpop.f32.mrf.mxu0  ;;  %1245 = vadd.xlane.f32.xlu1 %v1244_v55 }
 0x882   :  { %v1239_v62 = vpop.xlane.xlu0 %1238 }
 0x883   :  { %v1254_v63 = vmul.f32 %v4165_v61, %v1239_v62 }
 0x885   :  { %v1257_v0 = vsub.f32 %v1232_v36, %v1254_v63 }
 0x887   :  { %v1260_v58 = vmul.f32 %v1257_v0, %v1257_v0 }
 0x889   :  { %v1263_v44 = vsel %vm352_vm5, %v1260_v58, 0.0 }
 0x88a   :  { %1264 = vadd.xlane.f32.xlu2 %v1263_v44  ;;  %v1242_v54 = vpop.xlane.xlu2 %1241 }
 0x88b   :  { %v1255_v1 = vmul.f32 %v4165_v61, %v1242_v54 }
 0x88d   :  { %v1258_v3 = vsub.f32 %v1233_v45, %v1255_v1 }
 0x88f   :  { %v1261_v4 = vmul.f32 %v1258_v3, %v1258_v3 }
 0x891   :  { %v1266_v5 = vsel %vm352_vm5, %v1261_v4, 0.0 }
 0x892   :  { %1267 = vadd.xlane.f32.xlu0 %v1266_v5 }
 0x8ae   :  { %v1246_v7 = vpop.xlane.xlu1 %1245 }
 0x8af   :  { %v1256_v8 = vmul.f32 %v4165_v61, %v1246_v7 }
 0x8b1   :  { %v1259_v9 = vsub.f32 %v1234_v53, %v1256_v8 }
 0x8b3   :  { %v1262_v11 = vmul.f32 %v1259_v9, %v1259_v9 }
 0x8b5   :  { %v1269_v12 = vsel %vm1243_vm11, %v1262_v11, 0.0  ;;  %v3128_v11 = vld [vmem:[%s4563_s16 + $0x18] sm:$0xff] }
 0x8b6   :  { %1270 = vadd.xlane.f32.xlu1 %v1269_v12  ;;  %1538 = vmatpush.bf16.msra.mxu2 %v3128_v11 }
 0x8ba   :  { %1539 = vmatpush.bf16.msra.mxu2 %v3127_v16 }
 0x8fd   :  { %v1265_v14 = vpop.xlane.xlu2 %1264 }
 0x8fe   :  { %v1272_v15 = vmul.f32 %v1265_v14, %v4165_v61 }
 0x900   :  { %v1275_v17 = vadd.f32 1e-05, %v1272_v15 }
 0x902   :  { %3296 = vrsqrt.f32 %v1275_v17  ;;  %vm1284_vm14 = vweird.f32 %v1275_v17 }
 0x905   :  { %v1268_v19 = vpop.xlane.xlu0 %1267 }
 0x906   :  { %v1273_v20 = vmul.f32 %v1268_v19, %v4165_v61 }
 0x908   :  { %v3297_v22 = vpop.eup %3296  ;;  %v1276_v21 = vadd.f32 1e-05, %v1273_v20 }
 0x909   :  { %v1279_v24 = vmul.f32 %v3297_v22, %v1275_v17  ;;  %vm1285_vm13 = vweird.f32 %v3297_v22 }
 0x90a   :  { %3298 = vrsqrt.f32 %v1276_v21  ;;  %vm1286_vm15 = vmor %vm1284_vm14, %vm1285_vm13  ;;  %vm1294_vm1 = vweird.f32 %v1276_v21 }
 0x90b   :  { %v1280_v25 = vmul.f32 %v3297_v22, %v1279_v24 }
 0x90d   :  { %v1281_v26 = vmul.f32 0.5, %v1280_v25 }
 0x90f   :  { %v1282_v27 = vsub.f32 1.5, %v1281_v26  ;;  %v3126_v26 = vld [vmem:[%s4563_s16 + $0x8] sm:$0xff] }
 0x910   :  { %v3299_v29 = vpop.eup %3298  ;;  %1540 = vmatpush.bf16.msra.mxu2 %v3126_v26 }
 0x911   :  { %v1283_v10 = vmul.f32 %v3297_v22, %v1282_v27  ;;  %v1289_v30 = vmul.f32 %v3299_v29, %v1276_v21  ;;  %vm1295_vm0 = vweird.f32 %v3299_v29 }
 0x912   :  { %vm1296_vm2 = vmor %vm1294_vm1, %vm1295_vm0 }
 0x913   :  { %v1290_v2 = vmul.f32 %v3299_v29, %v1289_v30  ;;  %v1287_v31 = vsel %vm1286_vm15, %v3297_v22, %v1283_v10 }
 0x914   :  { %v1308_v34 = vmul.f32 %v1287_v31, %v1257_v0 }
 0x915   :  { %v1291_v6 = vmul.f32 0.5, %v1290_v2 }
 0x916   :  { %v1314_v38 = vmul.f32 %v3226_v33, %v1308_v34 }
 0x917   :  { %v1292_v32 = vsub.f32 1.5, %v1291_v6 }
 0x918   :  { %v4175_v41 = vadd.f32 %v3227_v37, %v1314_v38 }
 0x919   :  { %v1293_v35 = vmul.f32 %v3299_v29, %v1292_v32  ;;  %v3125_v32 = vld [vmem:[%s4563_s16] sm:$0xff] }
 0x91a   :  { %1541 = vmatpush.bf16.msra.mxu2 %v3125_v32 }
 0x91b   :  { %v1297_v36 = vsel %vm1296_vm2, %v3299_v29, %v1293_v35 }
 0x91c   :  { %v1309_v18 = vmul.f32 %v1297_v36, %v1258_v3 }
 0x91e   :  { %v1315_v39 = vmul.f32 %v3226_v33, %v1309_v18 }
 0x920   :  { %v4177_v42 = vadd.f32 %v3227_v37, %v1315_v39 }
 0x922   :  { %v1327_v45 = vpack.c.bf16 %v4177_v42, %v4175_v41 }
 0x924   :  { %2986 = vmatmul.msk.bf16.vlgmr.msra.gmra.mxu1 %vm352_vm5, %v1327_v45 }
 0x929   :  { %v1271_v23 = vpop.xlane.xlu1 %1270 }
 0x92a   :  { %v1274_v48 = vmul.f32 %v1271_v23, %v4165_v61 }
 0x92c   :  { %v1277_v49 = vadd.f32 1e-05, %v1274_v48 }
 0x92e   :  { %3300 = vrsqrt.f32 %v1277_v49  ;;  %vm1304_vm4 = vweird.f32 %v1277_v49 }
 0x934   :  { %v3301_v50 = vpop.eup %3300 }
 0x935   :  { %v1299_v46 = vmul.f32 %v3301_v50, %v1277_v49  ;;  %vm1305_vm3 = vweird.f32 %v3301_v50 }
 0x936   :  { %vm1306_vm12 = vmor %vm1304_vm4, %vm1305_vm3 }
 0x937   :  { %v1300_v51 = vmul.f32 %v3301_v50, %v1299_v46 }
 0x939   :  { %v1301_v40 = vmul.f32 0.5, %v1300_v51 }
 0x93b   :  { %v1302_v52 = vsub.f32 1.5, %v1301_v40 }
 0x93d   :  { %v1303_v53 = vmul.f32 %v3301_v50, %v1302_v52 }
 0x93f   :  { %v1307_v55 = vsel %vm1306_vm12, %v3301_v50, %v1303_v53 }
 0x940   :  { %v1310_v56 = vmul.f32 %v1307_v55, %v1259_v9 }
 0x942   :  { %v1316_v57 = vmul.f32 %v3226_v33, %v1310_v56 }
 0x944   :  { %v4183_v43 = vadd.f32 %v3227_v37, %v1316_v57 }
 0x946   :  { %v1328_v59 = vpack.c.bf16 %v4183_v43, %v4183_v43 }
 0x948   :  { %2987 = vmatmul.msk.bf16.gmra.mxu1 %vm352_vm5, %v1328_v59 }
 0x9a1   :  { %v1360_v60 = vpop.f32.mrf.mxu1 }
 0x9a2   :  { %v4188_v47 = vadd.f32 %v3228_v28, %v1360_v60 }
 0x9a4   :  { %v4191_v62 = vmul.f32 0.70710677, %v4188_v47  ;;  %v1369_v26 = vmul.f32 0.5, %v4188_v47 }
 0x9a6   :  { %v1375_v63 = vand.u32 2147483647, %v4191_v62  ;;  %vm1474_vm12 = vcmp.ge.f32.partialorder %v4191_v62, 0.0 }
 0x9a8   :  { %v1378_v0 = vmul.f32 0.3275911, %v1375_v63  ;;  %v1456_v21 = vsub.f32 0.0, %v1375_v63 }
 0x9a9   :  { %v1362_v58 = vpop.f32.mrf.mxu1 }
 0x9aa   :  { %v1381_v44 = vadd.f32 1.0, %v1378_v0  ;;  %v4194_v54 = vadd.f32 %v3228_v28, %v1362_v58  ;;  %v1459_v30 = vmul.f32 %v1456_v21, %v1375_v63 }
 0x9ac   :  { %3302 = vrcp.f32 %v1381_v44  ;;  %v4197_v1 = vmul.f32 0.70710677, %v4194_v54  ;;  %v1395_v12 = vand.u32 2147483648, %v1381_v44  ;;  %v1393_v14 = vand.u32 2147483647, %v1381_v44 }
 0x9ad   :  { %vm1389_vm14 = vweird.f32 %v1381_v44  ;;  %v1462_v36 = vmul.f32 1.442695, %v1459_v30  ;;  %v1370_v62 = vmul.f32 0.5, %v4194_v54 }
 0x9ae   :  { %v1376_v3 = vand.u32 2147483647, %v4197_v1  ;;  %v1396_v17 = vor.u32 1.1754944e-38, %v1395_v12  ;;  %vm1394_vm0 = vcmp.eq.f32.partialorder %v1393_v14, 8.507059e+37 }
 0x9b0   :  { %v1379_v4 = vmul.f32 0.3275911, %v1376_v3  ;;  %v1457_v39 = vsub.f32 0.0, %v1376_v3 }
 0x9b2   :  { %v3303_v5 = vpop.eup %3302  ;;  %v1382_v8 = vadd.f32 1.0, %v1379_v4  ;;  %v1460_v40 = vmul.f32 %v1457_v39, %v1376_v3 }
 0x9b3   :  { %v1385_v7 = vmul.f32 %v3303_v5, %v1381_v44  ;;  %vm1390_vm13 = vweird.f32 %v3303_v5 }
 0x9b4   :  { %3304 = vrcp.f32 %v1382_v8  ;;  %vm1391_vm15 = vmor %vm1389_vm14, %vm1390_vm13  ;;  %v1410_v10 = vand.u32 2147483648, %v1382_v8  ;;  %v1408_v31 = vand.u32 2147483647, %v1382_v8  ;;  %vm1404_vm2 = vweird.f32 %v1382_v8 }
 0x9b5   :  { %v1386_v9 = vsub.f32 1.0, %v1385_v7  ;;  %3306 = vpow2.f32 %v1462_v36  ;;  %v1464_v60 = vmul.f32 1.442695, %v1460_v40  ;;  %vm1475_vm14 = vcmp.ge.f32.partialorder %v4197_v1, 0.0 }
 0x9b6   :  { %v1411_v35 = vor.u32 1.1754944e-38, %v1410_v10  ;;  %vm1409_vm4 = vcmp.eq.f32.partialorder %v1408_v31, 8.507059e+37 }
 0x9b7   :  { %v1387_v13 = vmul.f32 %v3303_v5, %v1386_v9 }
 0x9b9   :  { %v1388_v15 = vadd.f32 %v3303_v5, %v1387_v13 }
 0x9ba   :  { %v3305_v19 = vpop.eup %3304 }
 0x9bb   :  { %v1392_v20 = vsel %vm1391_vm15, %v3303_v5, %v1388_v15  ;;  %v1400_v24 = vmul.f32 %v3305_v19, %v1382_v8  ;;  %vm1405_vm1 = vweird.f32 %v3305_v19  ;;  %v3307_v0 = vpop.eup %3306 }
 0x9bc   :  { %v1397_v22 = vsel %vm1394_vm0, %v1396_v17, %v1392_v20  ;;  %vm1406_vm3 = vmor %vm1404_vm2, %vm1405_vm1  ;;  %vm1527_vm2 = vcmask 523264  }
 0x9bd   :  { %v1429_v25 = vmul.f32 1.0614054, %v1397_v22  ;;  %v1401_v27 = vsub.f32 1.0, %v1400_v24 }
 0x9bf   :  { %v1432_v29 = vadd.f32 -1.4531521, %v1429_v25  ;;  %v1402_v2 = vmul.f32 %v3305_v19, %v1401_v27 }
 0x9c1   :  { %v1435_v6 = vmul.f32 %v1432_v29, %v1397_v22  ;;  %v1403_v33 = vadd.f32 %v3305_v19, %v1402_v2 }
 0x9c3   :  { %v1438_v34 = vadd.f32 1.4214138, %v1435_v6  ;;  %v1407_v37 = vsel %vm1406_vm3, %v3305_v19, %v1403_v33 }
 0x9c4   :  { %v1412_v18 = vsel %vm1409_vm4, %v1411_v35, %v1407_v37 }
 0x9c5   :  { %v1441_v38 = vmul.f32 %v1438_v34, %v1397_v22  ;;  %v1365_v45 = vpop.f32.mrf.mxu1  ;;  %v1430_v23 = vmul.f32 1.0614054, %v1412_v18 }
 0x9c6   :  { %v4212_v48 = vadd.f32 %v3228_v28, %v1365_v45 }
 0x9c7   :  { %v1444_v49 = vadd.f32 -0.28449672, %v1441_v38  ;;  %v1433_v50 = vadd.f32 -1.4531521, %v1430_v23 }
 0x9c8   :  { %v4215_v46 = vmul.f32 0.70710677, %v4212_v48 }
 0x9c9   :  { %v1447_v51 = vmul.f32 %v1444_v49, %v1397_v22  ;;  %v1436_v52 = vmul.f32 %v1433_v50, %v1412_v18 }
 0x9ca   :  { %v1377_v53 = vand.u32 2147483647, %v4215_v46  ;;  %vm1476_vm3 = vcmp.ge.f32.partialorder %v4215_v46, 0.0 }
 0x9cb   :  { %v1450_v55 = vadd.f32 0.2548296, %v1447_v51  ;;  %v1439_v56 = vadd.f32 1.4214138, %v1436_v52  ;;  %v1371_v52 = vmul.f32 0.5, %v4212_v48 }
 0x9cc   :  { %v1380_v57 = vmul.f32 0.3275911, %v1377_v53  ;;  %v1458_v2 = vsub.f32 0.0, %v1377_v53 }
 0x9cd   :  { %v1453_v59 = vmul.f32 %v1450_v55, %v1397_v22  ;;  %v1367_v63 = vpop.f32.mrf.mxu1  ;;  %v1442_v28 = vmul.f32 %v1439_v56, %v1412_v18 }
 0x9ce   :  { %v1383_v58 = vadd.f32 1.0, %v1380_v57  ;;  %v1461_v35 = vmul.f32 %v1458_v2, %v1377_v53  ;;  %v3229_v57 = vld [vmem:[#allocation19] ss:$0 sm:$0xff] }
 0x9cf   :  { %v1468_v44 = vmul.f32 %v3307_v0, %v1453_v59  ;;  %v1445_v4 = vadd.f32 -0.28449672, %v1442_v28 }
 0x9d0   :  { %3308 = vrcp.f32 %v1383_v58  ;;  %v1425_v19 = vand.u32 2147483648, %v1383_v58  ;;  %v1423_v22 = vand.u32 2147483647, %v1383_v58  ;;  %vm1419_vm15 = vweird.f32 %v1383_v58 }
 0x9d1   :  { %3310 = vpow2.f32 %v1464_v60  ;;  %v1471_v5 = vsub.f32 1.0, %v1468_v44  ;;  %v1448_v7 = vmul.f32 %v1445_v4, %v1412_v18  ;;  %v1466_v37 = vmul.f32 1.442695, %v1461_v35 }
 0x9d2   :  { %v1426_v29 = vor.u32 1.1754944e-38, %v1425_v19  ;;  %vm1424_vm1 = vcmp.eq.f32.partialorder %v1423_v22, 8.507059e+37 }
 0x9d3   :  { %v1451_v8 = vadd.f32 0.2548296, %v1448_v7  ;;  %v1477_v9 = vsub.f32 0.0, %v1471_v5  ;;  %3312 = vpow2.f32 %v1466_v37 }
 0x9d5   :  { %v1454_v11 = vmul.f32 %v1451_v8, %v1412_v18  ;;  %v1480_v16 = vsel %vm1474_vm12, %v1471_v5, %v1477_v9 }
 0x9d6   :  { %v3309_v3 = vpop.eup %3308  ;;  %v1483_v24 = vadd.f32 1.0, %v1480_v16 }
 0x9d7   :  { %v3311_v12 = vpop.eup %3310  ;;  %v1415_v13 = vmul.f32 %v3309_v3, %v1383_v58  ;;  %vm1420_vm13 = vweird.f32 %v3309_v3 }
 0x9d8   :  { %v1469_v14 = vmul.f32 %v3311_v12, %v1454_v11  ;;  %vm1421_vm0 = vmor %vm1419_vm15, %vm1420_vm13  ;;  %v1486_v6 = vmul.f32 %v1483_v24, %v1369_v26  ;;  %v3132_v24 = vld [vmem:[%s4555_s8 + $0x48] sm:$0xff] }
 0x9d9   :  { %v1416_v15 = vsub.f32 1.0, %v1415_v13  ;;  %v3313_v23 = vpop.eup %3312  ;;  %1711 = vmatpush.bf16.msra.mxu0 %v3132_v24 }
 0x9da   :  { %v1472_v17 = vsub.f32 1.0, %v1469_v14 }
 0x9db   :  { %v1417_v20 = vmul.f32 %v3309_v3, %v1416_v15 }
 0x9dc   :  { %v1478_v21 = vsub.f32 0.0, %v1472_v17 }
 0x9dd   :  { %v1418_v25 = vadd.f32 %v3309_v3, %v1417_v20 }
 0x9de   :  { %v1481_v27 = vsel %vm1475_vm14, %v1472_v17, %v1478_v21  ;;  %v3130_v21 = vld [vmem:[%s4555_s8 + $0x38] sm:$0xff] }
 0x9df   :  { %v1484_v10 = vadd.f32 1.0, %v1481_v27  ;;  %v1422_v30 = vsel %vm1421_vm0, %v3309_v3, %v1418_v25  ;;  %v3134_v25 = vld [vmem:[%s4555_s8 + $0x58] sm:$0xff]  ;;  %1671 = vmatpush.bf16.msra.mxu3 %v3130_v21  ;;  %v3233_v21 = vld [vmem:[#allocation10 + $0x5] ss:$0 sm:$0xff] }
 0x9e0   :  { %v1427_v31 = vsel %vm1424_vm1, %v1426_v29, %v1422_v30  ;;  %1751 = vmatpush.bf16.msrb.mxu1 %v3134_v25  ;;  %v3133_v30 = vld [vmem:[%s4555_s8 + $0x50] sm:$0xff] }
 0x9e1   :  { %v1487_v32 = vmul.f32 %v1484_v10, %v1370_v62  ;;  %v1431_v33 = vmul.f32 1.0614054, %v1427_v31  ;;  %v3129_v62 = vld [vmem:[%s4555_s8 + $0x30] sm:$0xff]  ;;  %v3131_v10 = vld [vmem:[%s4555_s8 + $0x40] sm:$0xff] }
 0x9e2   :  { %1712 = vmatpush.bf16.msra.mxu0 %v3131_v10 }
 0x9e3   :  { %v1497_v34 = vpack.c.bf16 %v1487_v32, %v1486_v6  ;;  %v1434_v1 = vadd.f32 -1.4531521, %v1431_v33  ;;  %1672 = vmatpush.bf16.msra.mxu3 %v3129_v62 }
 0x9e4   :  { %1752 = vmatpush.bf16.msrb.mxu1 %v3133_v30 }
 0x9e5   :  { %3004 = vmatmul.msk.bf16.vlgmr.msra.gmra.mxu2 %vm1527_vm2, %v1497_v34  ;;  %v1437_v47 = vmul.f32 %v1434_v1, %v1427_v31 }
 0x9e7   :  { %v1440_v36 = vadd.f32 1.4214138, %v1437_v47 }
 0x9e9   :  { %v1443_v38 = vmul.f32 %v1440_v36, %v1427_v31 }
 0x9eb   :  { %v1446_v18 = vadd.f32 -0.28449672, %v1443_v38 }
 0x9ed   :  { %v1449_v54 = vmul.f32 %v1446_v18, %v1427_v31 }
 0x9ef   :  { %v1452_v39 = vadd.f32 0.2548296, %v1449_v54 }
 0x9f1   :  { %v1455_v45 = vmul.f32 %v1452_v39, %v1427_v31 }
 0x9f3   :  { %v1470_v49 = vmul.f32 %v3313_v23, %v1455_v45  ;;  %v3230_v45 = vld [vmem:[#allocation21] ss:$0 sm:$0xff] }
 0x9f5   :  { %v1473_v50 = vsub.f32 1.0, %v1470_v49 }
 0x9f7   :  { %v1479_v51 = vsub.f32 0.0, %v1473_v50 }
 0x9f9   :  { %v1482_v40 = vsel %vm1476_vm3, %v1473_v50, %v1479_v51 }
 0x9fa   :  { %v1485_v53 = vadd.f32 1.0, %v1482_v40 }
 0x9fc   :  { %v1488_v55 = vmul.f32 %v1485_v53, %v1371_v52  ;;  %v3231_v53 = vld [vmem:[#allocation22] ss:$0 sm:$0xff] }
 0x9fe   :  { %v1498_v56 = vpack.c.bf16 %v1488_v55, %v1488_v55 }
 0xa00   :  { %3005 = vmatmul.msk.bf16.gmra.mxu2 %vm1527_vm2, %v1498_v56 }
 0xa68   :  { %v1543_v59 = vpop.f32.mrf.mxu2 }
 0xa69   :  { %v1544_v60 = vadd.f32 %v3229_v57, %v1543_v59 }
 0xa6b   :  { %v1552_v63 = vadd.f32 %v1544_v60, %v4175_v41 }
 0xa6d   :  { %v1557_v0 = vsel %vm352_vm5, %v1552_v63, 0.0 }
 0xa6e   :  { %1558 = vadd.xlane.f32.xlu2 %v1557_v0 }
 0xa70   :  { %v1545_v28 = vpop.f32.mrf.mxu2 }
 0xa71   :  { %v1546_v58 = vadd.f32 %v3229_v57, %v1545_v28 }
 0xa73   :  { %v1553_v46 = vadd.f32 %v1546_v58, %v4177_v42 }
 0xa75   :  { %v1560_v44 = vsel %vm352_vm5, %v1553_v46, 0.0 }
 0xa76   :  { %1561 = vadd.xlane.f32.xlu0 %v1560_v44 }
 0xa83   :  { %v1548_v48 = vpop.f32.mrf.mxu2 }
 0xa84   :  { %v1549_v4 = vadd.f32 %v3229_v57, %v1548_v48 }
 0xa86   :  { %v1554_v5 = vadd.f32 %v1549_v4, %v4183_v43 }
 0xa88   :  { %v1563_v7 = vsel %vm1243_vm11, %v1554_v5, 0.0 }
 0xa89   :  { %1564 = vadd.xlane.f32.xlu1 %v1563_v7 }
 0xa8b   :  { %v1550_v8 = vpop.f32.mrf.mxu2 }
 0xae1   :  { %v1559_v3 = vpop.xlane.xlu2 %1558 }
 0xae2   :  { %v1566_v41 = vmul.f32 %v1559_v3, %v4165_v61 }
 0xae4   :  { %v1569_v9 = vsub.f32 %v1552_v63, %v1566_v41  ;;  %v3232_v41 = vld [vmem:[#allocation10 + $0x4] ss:$0 sm:$0xff] }
 0xae6   :  { %v1572_v11 = vmul.f32 %v1569_v9, %v1569_v9 }
 0xae8   :  { %v1575_v12 = vsel %vm352_vm5, %v1572_v11, 0.0 }
 0xae9   :  { %v1562_v13 = vpop.xlane.xlu0 %1561  ;;  %1576 = vadd.xlane.f32.xlu2 %v1575_v12 }
 0xaea   :  { %v1567_v42 = vmul.f32 %v1562_v13, %v4165_v61 }
 0xaec   :  { %v1570_v14 = vsub.f32 %v1553_v46, %v1567_v42 }
 0xaee   :  { %v1573_v15 = vmul.f32 %v1570_v14, %v1570_v14 }
 0xaf0   :  { %v1578_v16 = vsel %vm352_vm5, %v1573_v15, 0.0  ;;  %v3234_v15 = vld [vmem:[#allocation10 + $0x3] ss:$0 sm:$0xff] }
 0xaf1   :  { %1579 = vadd.xlane.f32.xlu0 %v1578_v16 }
 0xafc   :  { %v1565_v43 = vpop.xlane.xlu1 %1564 }
 0xafd   :  { %v1568_v17 = vmul.f32 %v1565_v43, %v4165_v61 }
 0xaff   :  { %v4237_v19 = vsub.f32 %v1554_v5, %v1568_v17 }
 0xb01   :  { %v1574_v20 = vmul.f32 %v4237_v19, %v4237_v19 }
 0xb03   :  { %v1581_v22 = vsel %vm1243_vm11, %v1574_v20, 0.0 }
 0xb04   :  { %1582 = vadd.xlane.f32.xlu1 %v1581_v22 }
 0xb5c   :  { %v1577_v26 = vpop.xlane.xlu2 %1576 }
 0xb5d   :  { %v1584_v27 = vmul.f32 %v1577_v26, %v4165_v61 }
 0xb5f   :  { %v1587_v29 = vadd.f32 1e-05, %v1584_v27 }
 0xb61   :  { %3314 = vrsqrt.f32 %v1587_v29  ;;  %vm1596_vm12 = vweird.f32 %v1587_v29 }
 0xb64   :  { %v1580_v2 = vpop.xlane.xlu0 %1579 }
 0xb65   :  { %v1585_v31 = vmul.f32 %v1580_v2, %v4165_v61 }
 0xb67   :  { %v3315_v6 = vpop.eup %3314  ;;  %v1588_v32 = vadd.f32 1e-05, %v1585_v31 }
 0xb68   :  { %v1591_v33 = vmul.f32 %v3315_v6, %v1587_v29  ;;  %vm1597_vm4 = vweird.f32 %v3315_v6 }
 0xb69   :  { %3316 = vrsqrt.f32 %v1588_v32  ;;  %vm1598_vm13 = vmor %vm1596_vm12, %vm1597_vm4  ;;  %vm1606_vm15 = vweird.f32 %v1588_v32 }
 0xb6a   :  { %v1592_v34 = vmul.f32 %v3315_v6, %v1591_v33 }
 0xb6c   :  { %v1593_v1 = vmul.f32 0.5, %v1592_v34 }
 0xb6e   :  { %v1594_v35 = vsub.f32 1.5, %v1593_v1 }
 0xb6f   :  { %v3317_v47 = vpop.eup %3316 }
 0xb70   :  { %v1595_v36 = vmul.f32 %v3315_v6, %v1594_v35  ;;  %v1601_v37 = vmul.f32 %v3317_v47, %v1588_v32  ;;  %vm1607_vm14 = vweird.f32 %v3317_v47 }
 0xb71   :  { %vm1608_vm0 = vmor %vm1606_vm15, %vm1607_vm14 }
 0xb72   :  { %v1602_v38 = vmul.f32 %v3317_v47, %v1601_v37  ;;  %v1599_v18 = vsel %vm1598_vm13, %v3315_v6, %v1595_v36 }
 0xb73   :  { %v1620_v23 = vmul.f32 %v1599_v18, %v1569_v9  ;;  %v4303_v18 = vld [vmem:[#allocation4] sm:$0xff] }
 0xb74   :  { %v1603_v54 = vmul.f32 0.5, %v1602_v38 }
 0xb75   :  { %v1626_v55 = vmul.f32 %v3230_v45, %v1620_v23 }
 0xb76   :  { %v1604_v39 = vsub.f32 1.5, %v1603_v54 }
 0xb77   :  { %v1583_v49 = vpop.xlane.xlu1 %1582  ;;  %v4263_v59 = vadd.f32 %v3231_v53, %v1626_v55 }
 0xb78   :  { %v1605_v50 = vmul.f32 %v3317_v47, %v1604_v39  ;;  %v1586_v51 = vmul.f32 %v1583_v49, %v4165_v61  ;;  %v4307_v49 = vld [vmem:[#allocation4 + $0x8] sm:$0xff] }
 0xb7a   :  { %v1609_v40 = vsel %vm1608_vm0, %v3317_v47, %v1605_v50  ;;  %v1589_v52 = vadd.f32 1e-05, %v1586_v51 }
 0xb7b   :  { %v1621_v56 = vmul.f32 %v1609_v40, %v1570_v14 }
 0xb7c   :  { %3318 = vrsqrt.f32 %v1589_v52  ;;  %vm1616_vm3 = vweird.f32 %v1589_v52 }
 0xb7d   :  { %v1627_v57 = vmul.f32 %v3230_v45, %v1621_v56 }
 0xb7f   :  { %v4265_v60 = vadd.f32 %v3231_v53, %v1627_v57 }
 0xb81   :  { %v1640_v63 = vpack.c.bf16 %v4265_v60, %v4263_v59 }
 0xb82   :  { %v3319_v0 = vpop.eup %3318 }
 0xb83   :  { %v1611_v28 = vmul.f32 %v3319_v0, %v1589_v52  ;;  %3018 = vmatmul.msk.bf16.vlgmr.msra.gmra.mxu3 %vm352_vm5, %v1640_v63  ;;  %3032 = vmatmul.msk.bf16.vlgmr.msra.gmra.mxu0 %vm352_vm5, %v1640_v63  ;;  %vm1617_vm1 = vweird.f32 %v3319_v0 }
 0xb84   :  { %3046 = vmatmul.msk.bf16.vlgmr.msrb.gmra.mxu1 %vm352_vm5, %v1640_v63  ;;  %vm1618_vm4 = vmor %vm1616_vm3, %vm1617_vm1 }
 0xb85   :  { %v1612_v58 = vmul.f32 %v3319_v0, %v1611_v28 }
 0xb87   :  { %v1613_v46 = vmul.f32 0.5, %v1612_v58 }
 0xb89   :  { %v1614_v44 = vsub.f32 1.5, %v1613_v46 }
 0xb8b   :  { %v1615_v48 = vmul.f32 %v3319_v0, %v1614_v44 }
 0xb8d   :  { %v1619_v4 = vsel %vm1618_vm4, %v3319_v0, %v1615_v48 }
 0xb8e   :  { %v1622_v5 = vmul.f32 %v1619_v4, %v4237_v19 }
 0xb90   :  { %v1628_v7 = vmul.f32 %v3230_v45, %v1622_v5 }
 0xb92   :  { %v4273_v8 = vadd.f32 %v3231_v53, %v1628_v7  ;;  %v4311_v53 = vld [vmem:[#allocation4 + $0x10] sm:$0x3] }
 0xb94   :  { %v1641_v3 = vpack.c.bf16 %v4273_v8, %v4273_v8 }
 0xb96   :  { %3019 = vmatmul.msk.bf16.gmra.mxu3 %vm352_vm5, %v1641_v3  ;;  %3033 = vmatmul.msk.bf16.gmra.mxu0 %vm352_vm5, %v1641_v3 }
 0xb97   :  { %3047 = vmatmul.msk.bf16.gmra.mxu1 %vm352_vm5, %v1641_v3 }
 0xc00   :  { %v1714_v9 = vpop.f32.mrf.mxu0 }
 0xc01   :  { %v1715_v11 = vadd.f32 %v3232_v41, %v1714_v9  ;;  %v1754_v12 = vpop.f32.mrf.mxu1 }
 0xc02   :  { %v1755_v2 = vadd.f32 %v3233_v21, %v1754_v12 }
 0xc03   :  { %1763 = vxpose.xlu2.b32.start [1/3] (short) (narrow) %v1715_v11, 8 }
 0xc06   :  { %v1674_v13 = vpop.f32.mrf.mxu3 }
 0xc07   :  { %v1675_v19 = vadd.f32 %v3234_v15, %v1674_v13 }
 0xc08   :  { %v1716_v42 = vpop.f32.mrf.mxu0 }
 0xc09   :  { %v1717_v14 = vadd.f32 %v3232_v41, %v1716_v42  ;;  %v1756_v43 = vpop.f32.mrf.mxu1 }
 0xc0a   :  { %v1757_v62 = vadd.f32 %v3233_v21, %v1756_v43 }
 0xc0b   :  { %1764 = vxpose.xlu2.b32.cont [2/3] (short) (narrow) %v1717_v14, 8  ;;  %v4280_v16 = vpack.i.bf16 %v1717_v14, %v1715_v11 }
 0xc0c   :  { %v4291_v6 = vpack.c.bf16 %v1757_v62, %v1755_v2 }
 0xc0e   :  { %v1676_v17 = vpop.f32.mrf.mxu3 }
 0xc0f   :  { %v1677_v20 = vadd.f32 %v3234_v15, %v1676_v17 }
 0xc11   :  { %v4282_v22 = vpack.c.bf16 %v1677_v20, %v1675_v19 }
 0xc13   :  { %v1719_v24 = vpop.f32.mrf.mxu0 }
 0xc14   :  { %v4284_v25 = vadd.f32 %v3232_v41, %v1719_v24  ;;  %v1759_v26 = vpop.f32.mrf.mxu1 }
 0xc15   :  { %v1760_v27 = vadd.f32 %v3233_v21, %v1759_v26 }
 0xc16   :  { %1765 = vxpose.xlu2.b32.end [3/3] (short) (narrow) %v4284_v25, 8 }
 0xc17   :  { %v4287_v29 = vpack.c.bf16 %v1760_v27, %v1760_v27 }
 0xc19   :  { %v1679_v10 = vpop.f32.mrf.mxu3  ;;  %v1875_v30 = vsel %vm383_vm6, %v4287_v29, 0 }
 0xc1a   :  { %1883 = vmatpush.bf16.msrb.mxu3 %v1875_v30  ;;  %v1680_v47 = vadd.f32 %v3234_v15, %v1679_v10 }
 0xc1b   :  { %v1721_v31 = vpop.f32.mrf.mxu0 }
 0xc1c   :  { %v1761_v32 = vpop.f32.mrf.mxu1  ;;  %v4299_v36 = vpack.c.bf16 %v1680_v47, %v1680_v47 }
 0xc1e   :  { %1884 = vmatpush.bf16.msrb.mxu3 %v4291_v6 }
 0xc21   :  { %v1681_v33 = vpop.f32.mrf.mxu3 }
 0xc7f   :  { %2114 = vrot.lane.b32.xlu2 %v4284_v25, %s3769_s2 }
 0xc9f   :  { %v1779_v34 = vpop.trf.xlu2 }
 0xca0   :  { %v1797_v1 = vpack.c.bf16 %v1779_v34, %v1779_v34 }
 0xca2   :  { %v1805_v35 = vsel %vm557_vm7, %v1797_v1, 0 }
 0xca3   :  { %1814 = vmatpush.bf16.msrb.mxu2 %v1805_v35 }
 0xca6   :  { %3048 = vmatmul.msk.bf16.vlgmr.msrb.gmra.mxu2 %vm550_vm8, %v4282_v22 }
 0xcb6   :  { %3049 = vmatmul.msk.bf16.gmra.mxu2 %vm550_vm8, %v4299_v36 }
 0xcd9   :  { %v2115_v47 = vpop.permute.xlu2 %2114 }
 0xd29   :  { %v1816_v37 = vpop.f32.mrf.mxu2 }
 0xd2a   :  { %v1825_v38 = vmul.f32 0.35355338, %v1816_v37 }
 0xd2c   :  { %v1828_v54 = vadd.f32 %v4303_v18, %v1825_v38  ;;  %v3052_v38 = vld [vmem:[%s4557_s10 + $0x10] sm:$0xf] }
 0xd2e   :  { %v1831_v39 = vsel %vm585_vm9, %v1828_v54, -inf }
 0xd2f   :  { %1832 = vmax.xlane.f32.xlu0 %v1831_v39 }
 0xd31   :  { %v1818_v45 = vpop.f32.mrf.mxu2 }
 0xd32   :  { %v1826_v23 = vmul.f32 0.35355338, %v1818_v45 }
 0xd34   :  { %v1829_v50 = vadd.f32 %v4307_v49, %v1826_v23 }
 0xd36   :  { %v1834_v51 = vsel %vm585_vm9, %v1829_v50, -inf }
 0xd37   :  { %1835 = vmax.xlane.f32.xlu1 %v1834_v51 }
 0xd39   :  { %v1821_v40 = vpop.f32.mrf.mxu2 }
 0xd3a   :  { %v1827_v52 = vmul.f32 0.35355338, %v1821_v40 }
 0xd3c   :  { %v1830_v55 = vadd.f32 %v4311_v53, %v1827_v52 }
 0xd3e   :  { %v1837_v56 = vsel %vm592_vm10, %v1830_v55, -inf }
 0xd3f   :  { %1838 = vmax.xlane.f32.xlu0 %v1837_v56 }
 0xd41   :  { %v1823_v57 = vpop.f32.mrf.mxu2 }
 0xd53   :  { %3195 = vrot.lane.b32.xlu0 %v4280_v16, %s3767_s3 }
 0xda2   :  { %v1833_v63 = vpop.xlane.xlu0 %1832 }
 0xda3   :  { %v1840_v0 = vsub.f32 %v1828_v54, %v1833_v63  ;;  %v2090_v54 = vsel %vm557_vm7, %v3052_v38, 0 }
 0xda4   :  { %2099 = vmatpush.bf16.msra.mxu3 %v2090_v54 }
 0xda5   :  { %v1843_v28 = vmul.f32 1.442695, %v1840_v0 }
 0xda7   :  { %3320 = vpow2.f32 %v1843_v28 }
 0xdaa   :  { %v1836_v58 = vpop.xlane.xlu1 %1835 }
 0xdab   :  { %v1841_v46 = vsub.f32 %v1829_v50, %v1836_v58 }
 0xdad   :  { %v3321_v44 = vpop.eup %3320  ;;  %v1845_v48 = vmul.f32 1.442695, %v1841_v46 }
 0xdae   :  { %v1849_v4 = vsel %vm585_vm9, %v3321_v44, 0.0 }
 0xdaf   :  { %3322 = vpow2.f32 %v1845_v48  ;;  %1850 = vadd.xlane.f32.xlu1 %v1849_v4 }
 0xdb2   :  { %v1839_v5 = vpop.xlane.xlu0 %1838 }
 0xdb3   :  { %v1842_v7 = vsub.f32 %v1830_v55, %v1839_v5 }
 0xdb5   :  { %v3323_v3 = vpop.eup %3322  ;;  %v1847_v41 = vmul.f32 1.442695, %v1842_v7 }
 0xdb6   :  { %v1852_v9 = vsel %vm585_vm9, %v3323_v3, 0.0 }
 0xdb7   :  { %3324 = vpow2.f32 %v1847_v41  ;;  %1853 = vadd.xlane.f32.xlu0 %v1852_v9 }
 0xdbd   :  { %v3325_v11 = vpop.eup %3324 }
 0xdbe   :  { %v1855_v12 = vsel %vm592_vm10, %v3325_v11, 0.0 }
 0xdbf   :  { %1856 = vadd.xlane.f32.xlu1 %v1855_v12 }
 0xdc5   :  { %v3196_v13 = vpop.permute.xlu0 %3195 }
 0xdc6   :  { %v3197_v2 = vunpack.i.l.bf16 %v3196_v13  ;;  %v3198_v1 = vunpack.i.h.bf16 %v3196_v13 }
 0xdcb   :  { %1946 = vrot.lane.b32.xlu0 %v4282_v22, %s3767_s3 }
 0xdd3   :  { %3205 = vrot.lane.b32.xlu0 %v4280_v16, %s3768_s26 }
 0xdd8   :  { %1906 = vrot.lane.b32.xlu1 %v4284_v25, %s3767_s3 }
 0xddb   :  { %1948 = vrot.lane.b32.xlu0 %v4299_v36, %s3767_s3 }
 0xde0   :  { %3200 = vrot.lane.b32.xlu1 %v4280_v16, %s3769_s2 }
 0xde3   :  { %2152 = vrot.lane.b32.xlu0 %v4282_v22, %s3769_s2 }
 0xde8   :  { %2294 = vrot.lane.b32.xlu1 %v4284_v25, %s3768_s26 }
 0xdeb   :  { %2332 = vrot.lane.b32.xlu0 %v4282_v22, %s3768_s26 }
 0xe22   :  { %v1851_v42 = vpop.xlane.xlu1 %1850 }
 0xe23   :  { %3326 = vrcp.f32 %v1851_v42 }
 0xe29   :  { %v3327_v15 = vpop.eup %3326 }
 0xe2a   :  { %v1854_v14 = vpop.xlane.xlu0 %1853  ;;  %v1861_v17 = vmul.f32 %v3327_v15, %v3321_v44 }
 0xe2b   :  { %3328 = vrcp.f32 %v1854_v14 }
 0xe31   :  { %v3329_v43 = vpop.eup %3328 }
 0xe32   :  { %v1862_v19 = vmul.f32 %v3329_v43, %v3323_v3  ;;  %v1857_v16 = vpop.xlane.xlu1 %1856 }
 0xe33   :  { %3330 = vrcp.f32 %v1857_v16 }
 0xe34   :  { %v1864_v20 = vpack.c.bf16 %v1862_v19, %v1861_v17 }
 0xe36   :  { %3050 = vmatmul.msk.bf16.vlgmr.msrb.gmra.mxu3 %vm585_vm9, %v1864_v20 }
 0xe39   :  { %v3331_v21 = vpop.eup %3330 }
 0xe3a   :  { %v1863_v25 = vmul.f32 %v3331_v21, %v3325_v11 }
 0xe3c   :  { %v1865_v26 = vpack.c.bf16 %v1863_v25, %v1863_v25 }
 0xe3d   :  { %v1947_v24 = vpop.permute.xlu0 %1946 }
 0xe45   :  { %v3206_v27 = vpop.permute.xlu0 %3205 }
 0xe46   :  { %v3207_v22 = vunpack.i.l.bf16 %v3206_v27  ;;  %3051 = vmatmul.msk.bf16.gmra.mxu3 %vm585_vm9, %v1865_v26  ;;  %v3208_v10 = vunpack.i.h.bf16 %v3206_v27 }
 0xe48   :  { %2299 = vxpose.xlu0.b32.start [1/3] (short) (narrow) %v3207_v22, 8 }
 0xe4a   :  { %v1907_v62 = vpop.permute.xlu1 %1906 }
 0xe4b   :  { %v3213_v37 = vpack.i.bf16 %v2115_v47, %v1907_v62 }
 0xe4d   :  { %v1949_v52 = vpop.permute.xlu0 %1948 }
 0xe50   :  { %2300 = vxpose.xlu0.b32.cont [2/3] (short) (narrow) %v3208_v10, 8 }
 0xe52   :  { %v3201_v30 = vpop.permute.xlu1 %3200 }
 0xe53   :  { %v3202_v31 = vunpack.i.l.bf16 %v3201_v30  ;;  %v3203_v33 = vunpack.i.h.bf16 %v3201_v30 }
 0xe55   :  { %v3209_v32 = vpack.i.bf16 %v3202_v31, %v3197_v2  ;;  %v3211_v35 = vpack.i.bf16 %v3203_v33, %v3198_v1  ;;  %v2153_v55 = vpop.permute.xlu0 %2152 }
 0xe57   :  { %3210 = vxpose.xlu1.b32.start [1/3] (short) (narrow) %v3209_v32, 8 }
 0xe5a   :  { %v2295_v34 = vpop.permute.xlu1 %2294 }
 0xe5b   :  { %2301 = vxpose.xlu0.b32.end [3/3] (short) (narrow) %v2295_v34, 8 }
 0xe5d   :  { %v2333_v56 = vpop.permute.xlu0 %2332 }
 0xe5f   :  { %3212 = vxpose.xlu1.b32.cont [2/3] (short) (narrow) %v3211_v35, 8 }
 0xe67   :  { %3214 = vxpose.xlu1.b32.end [3/3] (short) (narrow) %v3213_v37, 8 }
 0xeb9   :  { %v1886_v39 = vpop.f32.mrf.mxu3 }
 0xec1   :  { %v1888_v45 = vpop.f32.mrf.mxu3  ;;  %2334 = vrot.lane.b32.xlu1 %v4299_v36, %s3768_s26 }
 0xec2   :  { %v1897_v23 = vpack.c.bf16 %v1888_v45, %v1886_v39 }
 0xec4   :  { %3060 = vmatmul.msk.bf16.vlgmr.msra.gmra.mxu3 %vm550_vm8, %v1897_v23 }
 0xec9   :  { %v1891_v50 = vpop.f32.mrf.mxu3  ;;  %2154 = vrot.lane.b32.xlu0 %v4299_v36, %s3769_s2 }
 0xeca   :  { %v1898_v40 = vpack.c.bf16 %v1891_v50, %v1891_v50 }
 0xed1   :  { %v1893_v51 = vpop.f32.mrf.mxu3 }
 0xed4   :  { %3061 = vmatmul.msk.bf16.gmra.mxu3 %vm550_vm8, %v1898_v40 }
 0xeef   :  { %v2315_v57 = vpop.trf.xlu0 }
 0xef0   :  { %v2331_v63 = vpack.c.bf16 %v2315_v57, %v2315_v57 }
 0xef2   :  { %v2343_v0 = vsel %vm557_vm7, %v2331_v63, 0 }
 0xef3   :  { %2352 = vmatpush.bf16.msrb.mxu3 %v2343_v0 }
 0xef6   :  { %3069 = vmatmul.msk.bf16.vlgmr.msrb.gmra.mxu3 %vm550_vm8, %v2333_v56 }
 0xefb   :  { %v3215_v28 = vpop.trf.xlu1 }
 0xefc   :  { %v3219_v58 = vunpack.i.h.bf16 %v3215_v28  ;;  %v3216_v46 = vunpack.i.l.bf16 %v3215_v28 }
 0xefe   :  { %v1943_v44 = vpack.c.bf16 %v3216_v46, %v3216_v46  ;;  %v2151_v48 = vpack.c.bf16 %v3219_v58, %v3219_v58 }
 0xf00   :  { %v1957_v36 = vsel %vm557_vm7, %v1943_v44, 0  ;;  %v2163_v4 = vsel %vm557_vm7, %v2151_v48, 0 }
 0xf01   :  { %1966 = vmatpush.bf16.msrb.mxu0 %v1957_v36 }
 0xf04   :  { %3053 = vmatmul.msk.bf16.vlgmr.msrb.gmra.mxu0 %vm550_vm8, %v1947_v24 }
 0xf05   :  { %2172 = vmatpush.bf16.msra.mxu0 %v2163_v4 }
 0xf14   :  { %3054 = vmatmul.msk.bf16.gmra.mxu0 %vm550_vm8, %v1949_v52 }
 0xf24   :  { %3062 = vmatmul.msk.bf16.vlgmr.msra.gmra.mxu0 %vm550_vm8, %v2153_v55 }
 0xf33   :  { %v2335_v5 = vpop.permute.xlu1 %2334 }
 0xf34   :  { %3070 = vmatmul.msk.bf16.gmra.mxu3 %vm550_vm8, %v2335_v5 }
 0xf3b   :  { %v2155_v7 = vpop.permute.xlu0 %2154 }
 0xf3c   :  { %3063 = vmatmul.msk.bf16.gmra.mxu0 %vm550_vm8, %v2155_v7 }
 0xf47   :  { %v4357_v3 = vpop.f32.mrf.mxu3 }
 0xf4f   :  { %v4359_v41 = vpop.f32.mrf.mxu3 }
 0xf57   :  { %v4361_v9 = vpop.f32.mrf.mxu3 }
 0xf5f   :  { %v2108_v11 = vpop.f32.mrf.mxu3 }
 0xf79   :  { %v2354_v12 = vpop.f32.mrf.mxu3 }
 0xf7a   :  { %v2363_v13 = vmul.f32 0.35355338, %v2354_v12 }
 0xf7c   :  { %v4364_v42 = vadd.f32 %v4303_v18, %v2363_v13 }
 0xf7e   :  { %v2369_v14 = vsel %vm585_vm9, %v4364_v42, -inf }
 0xf7f   :  { %2370 = vmax.xlane.f32.xlu1 %v2369_v14 }
 0xf81   :  { %v1968_v15 = vpop.f32.mrf.mxu0  ;;  %v2356_v32 = vpop.f32.mrf.mxu3 }
 0xf82   :  { %v1977_v43 = vmul.f32 0.35355338, %v1968_v15  ;;  %v2364_v7 = vmul.f32 0.35355338, %v2356_v32 }
 0xf84   :  { %v1980_v17 = vadd.f32 %v4303_v18, %v1977_v43  ;;  %v2367_v15 = vadd.f32 %v4307_v49, %v2364_v7 }
 0xf86   :  { %v1983_v19 = vsel %vm585_vm9, %v1980_v17, -inf }
 0xf87   :  { %1984 = vmax.xlane.f32.xlu2 %v1983_v19  ;;  %v2372_v19 = vsel %vm585_vm9, %v2367_v15, -inf }
 0xf89   :  { %v1970_v20 = vpop.f32.mrf.mxu0 }
 0xf8a   :  { %v1978_v16 = vmul.f32 0.35355338, %v1970_v20 }
 0xf8c   :  { %v1981_v21 = vadd.f32 %v4307_v49, %v1978_v16 }
 0xf8e   :  { %v1986_v24 = vsel %vm585_vm9, %v1981_v21, -inf }
 0xf8f   :  { %1987 = vmax.xlane.f32.xlu2 %v1986_v24 }
 0xf91   :  { %v1973_v25 = vpop.f32.mrf.mxu0 }
 0xf92   :  { %v1979_v26 = vmul.f32 0.35355338, %v1973_v25 }
 0xf94   :  { %v1982_v27 = vadd.f32 %v4311_v53, %v1979_v26 }
 0xf96   :  { %v1989_v22 = vsel %vm592_vm10, %v1982_v27, -inf }
 0xf97   :  { %1990 = vmax.xlane.f32.xlu2 %v1989_v22 }
 0xf98   :  { %2020 = vrot.lane.b32.xlu1 %v4291_v6, %s3767_s3 }
 0xf99   :  { %v1975_v62 = vpop.f32.mrf.mxu0 }
 0xfa1   :  { %v2174_v10 = vpop.f32.mrf.mxu0 }
 0xfa2   :  { %v2183_v30 = vmul.f32 0.35355338, %v2174_v10 }
 0xfa4   :  { %v2186_v2 = vadd.f32 %v4303_v18, %v2183_v30 }
 0xfa6   :  { %v2189_v31 = vsel %vm585_vm9, %v2186_v2, -inf }
 0xfa7   :  { %2190 = vmax.xlane.f32.xlu2 %v2189_v31 }
 0xfa9   :  { %v2176_v33 = vpop.f32.mrf.mxu0 }
 0xfaa   :  { %v2184_v18 = vmul.f32 0.35355338, %v2176_v33 }
 0xfac   :  { %v2187_v39 = vadd.f32 %v4307_v49, %v2184_v18 }
 0xfae   :  { %v2192_v45 = vsel %vm585_vm9, %v2187_v39, -inf }
 0xfb7   :  { %v2359_v34 = vpop.f32.mrf.mxu3 }
 0xfb8   :  { %v2365_v1 = vmul.f32 0.35355338, %v2359_v34 }
 0xfb9   :  { %v2179_v35 = vpop.f32.mrf.mxu0 }
 0xfba   :  { %v4379_v47 = vadd.f32 %v4311_v53, %v2365_v1  ;;  %v2185_v46 = vmul.f32 0.35355338, %v2179_v35 }
 0xfbc   :  { %v2375_v54 = vsel %vm592_vm10, %v4379_v47, -inf  ;;  %v2188_v36 = vadd.f32 %v4311_v53, %v2185_v46 }
 0xfbe   :  { %v2195_v12 = vsel %vm592_vm10, %v2188_v36, -inf }
 0xfbf   :  { %v2361_v37 = vpop.f32.mrf.mxu3  ;;  %2022 = vrot.lane.b32.xlu2 %v4287_v29, %s3767_s3 }
 0xfc1   :  { %v2181_v38 = vpop.f32.mrf.mxu0 }
 0xfc2   :  { %2376 = vmax.xlane.f32.xlu1 %v2375_v54 }
 0xfdb   :  { %2404 = vrot.lane.b32.xlu1 %v4291_v6, %s3768_s26 }
 0xfe8   :  { %2193 = vmax.xlane.f32.xlu2 %v2192_v45 }
 0xff2   :  { %v2371_v48 = vpop.xlane.xlu1 %2370 }
 0xff3   :  { %v2378_v5 = vsub.f32 %v4364_v42, %v2371_v48  ;;  %v3057_v48 = vld [vmem:[%s4557_s10 + $0x14] sm:$0xf] }
 0xff5   :  { %v2381_v13 = vmul.f32 1.442695, %v2378_v5 }
 0xffa   :  { %v1985_v23 = vpop.xlane.xlu2 %1984 }
 0xffb   :  { %v1992_v50 = vsub.f32 %v1980_v17, %v1985_v23 }
 0xffd   :  { %v1995_v51 = vmul.f32 1.442695, %v1992_v50 }
 0xfff   :  { %3332 = vpow2.f32 %v1995_v51 }
0x1002   :  { %v1988_v40 = vpop.xlane.xlu2 %1987 }
0x1003   :  { %v1993_v52 = vsub.f32 %v1981_v21, %v1988_v40 }
0x1005   :  { %v3333_v55 = vpop.eup %3332  ;;  %v1997_v56 = vmul.f32 1.442695, %v1993_v52 }
0x1006   :  { %v2001_v57 = vsel %vm585_vm9, %v3333_v55, 0.0 }
0x1007   :  { %3334 = vpow2.f32 %v1997_v56  ;;  %2002 = vadd.xlane.f32.xlu2 %v2001_v57 }
0x100a   :  { %v1991_v63 = vpop.xlane.xlu2 %1990  ;;  %v2021_v24 = vpop.permute.xlu1 %2020 }
0x100b   :  { %v1994_v0 = vsub.f32 %v1982_v27, %v1991_v63 }
0x100d   :  { %v3335_v28 = vpop.eup %3334  ;;  %v1999_v58 = vmul.f32 1.442695, %v1994_v0 }
0x100e   :  { %v2004_v44 = vsel %vm585_vm9, %v3335_v28, 0.0 }
0x100f   :  { %3336 = vpow2.f32 %v1999_v58  ;;  %2005 = vadd.xlane.f32.xlu0 %v2004_v44 }
0x1010   :  { %3338 = vpow2.f32 %v2381_v13 }
0x1015   :  { %v3337_v4 = vpop.eup %3336 }
0x1016   :  { %v2007_v11 = vsel %vm592_vm10, %v3337_v4, 0.0  ;;  %v4397_v42 = vpop.eup %3338 }
0x1017   :  { %2008 = vadd.xlane.f32.xlu2 %v2007_v11  ;;  %2196 = vmax.xlane.f32.xlu0 %v2195_v12  ;;  %v2387_v21 = vsel %vm585_vm9, %v4397_v42, 0.0 }
0x101a   :  { %v2191_v14 = vpop.xlane.xlu2 %2190 }
0x101b   :  { %v2198_v43 = vsub.f32 %v2186_v2, %v2191_v14 }
0x101d   :  { %v2201_v17 = vmul.f32 1.442695, %v2198_v43 }
0x101f   :  { %3340 = vpow2.f32 %v2201_v17  ;;  %2373 = vmax.xlane.f32.xlu2 %v2372_v19 }
0x1022   :  { %v2023_v53 = vpop.permute.xlu2 %2022 }
0x1023   :  { %v2032_v20 = vsel %vm383_vm6, %v2023_v53, 0 }
0x1024   :  { %2040 = vmatpush.bf16.msra.mxu1 %v2032_v20 }
0x1025   :  { %v4400_v16 = vpop.eup %3340 }
0x1026   :  { %v2207_v49 = vsel %vm585_vm9, %v4400_v16, 0.0 }
0x1027   :  { %2388 = vadd.xlane.f32.xlu2 %v2387_v21  ;;  %2208 = vadd.xlane.f32.xlu0 %v2207_v49 }
0x1028   :  { %2041 = vmatpush.bf16.msra.mxu1 %v2021_v24 }
0x105b   :  { %v2194_v25 = vpop.xlane.xlu2 %2193 }
0x105c   :  { %v2199_v26 = vsub.f32 %v2187_v39, %v2194_v25 }
0x105e   :  { %v2203_v27 = vmul.f32 1.442695, %v2199_v26 }
0x1060   :  { %3342 = vpow2.f32 %v2203_v27 }
0x1066   :  { %v4406_v22 = vpop.eup %3342 }
0x1067   :  { %v2210_v62 = vsel %vm585_vm9, %v4406_v22, 0.0 }
0x1068   :  { %2211 = vadd.xlane.f32.xlu0 %v2210_v62 }
0x107a   :  { %v2003_v10 = vpop.xlane.xlu2 %2002 }
0x107b   :  { %3344 = vrcp.f32 %v2003_v10 }
0x107c   :  { %2226 = vrot.lane.b32.xlu0 %v4287_v29, %s3769_s2 }
0x1081   :  { %v3345_v2 = vpop.eup %3344 }
0x1082   :  { %v2006_v30 = vpop.xlane.xlu0 %2005  ;;  %v2013_v32 = vmul.f32 %v3345_v2, %v3333_v55  ;;  %v2377_v55 = vpop.xlane.xlu1 %2376 }
0x1083   :  { %3346 = vrcp.f32 %v2006_v30  ;;  %v2380_v56 = vsub.f32 %v4379_v47, %v2377_v55 }
0x1084   :  { %2406 = vrot.lane.b32.xlu0 %v4287_v29, %s3768_s26 }
0x1085   :  { %v2385_v57 = vmul.f32 1.442695, %v2380_v56 }
0x1089   :  { %v3347_v31 = vpop.eup %3346 }
0x108a   :  { %v2014_v33 = vmul.f32 %v3347_v31, %v3335_v28  ;;  %v2009_v34 = vpop.xlane.xlu2 %2008  ;;  %v2197_v39 = vpop.xlane.xlu0 %2196 }
0x108b   :  { %3348 = vrcp.f32 %v2009_v34  ;;  %v2200_v45 = vsub.f32 %v2188_v36, %v2197_v39  ;;  %v3073_v34 = vld [vmem:[%s4557_s10 + $0x1c] sm:$0xf] }
0x108c   :  { %v2016_v1 = vpack.c.bf16 %v2014_v33, %v2013_v32  ;;  %v3066_v33 = vld [vmem:[%s4557_s10 + $0x18] sm:$0xf] }
0x108d   :  { %v2205_v51 = vmul.f32 1.442695, %v2200_v45 }
0x108e   :  { %3055 = vmatmul.msk.bf16.vlgmr.msra.gmra.mxu1 %vm585_vm9, %v2016_v1  ;;  %v2267_v1 = vsel %vm557_vm7, %v3066_v33, 0  ;;  %v3136_v33 = vld [vmem:[#allocation16 + $0x18] sm:$0xff] }
0x1091   :  { %v3349_v38 = vpop.eup %3348 }
0x1092   :  { %v2374_v35 = vpop.xlane.xlu2 %2373  ;;  %v2015_v18 = vmul.f32 %v3349_v38, %v3337_v4  ;;  %v2405_v4 = vpop.permute.xlu1 %2404 }
0x1093   :  { %v2379_v37 = vsub.f32 %v2367_v15, %v2374_v35  ;;  %v2447_v35 = vsel %vm557_vm7, %v3073_v34, 0 }
0x1094   :  { %v2017_v23 = vpack.c.bf16 %v2015_v18, %v2015_v18 }
0x1095   :  { %v2383_v54 = vmul.f32 1.442695, %v2379_v37 }
0x1097   :  { %3350 = vpow2.f32 %v2383_v54 }
0x1098   :  { %3352 = vpow2.f32 %v2205_v51 }
0x1099   :  { %3354 = vpow2.f32 %v2385_v57 }
0x109a   :  { %v2209_v0 = vpop.xlane.xlu0 %2208  ;;  %v2389_v5 = vpop.xlane.xlu2 %2388 }
0x109d   :  { %v3351_v50 = vpop.eup %3350 }
0x109e   :  { %3056 = vmatmul.msk.bf16.gmra.mxu1 %vm585_vm9, %v2017_v23  ;;  %v2390_v29 = vsel %vm585_vm9, %v3351_v50, 0.0  ;;  %v3353_v40 = vpop.eup %3352 }
0x109f   :  { %2391 = vadd.xlane.f32.xlu2 %v2390_v29  ;;  %v2213_v52 = vsel %vm592_vm10, %v3353_v40, 0.0  ;;  %v3355_v63 = vpop.eup %3354 }
0x10a0   :  { %v2393_v28 = vsel %vm592_vm10, %v3355_v63, 0.0 }
0x10ae   :  { %2214 = vadd.xlane.f32.xlu0 %v2213_v52 }
0x10b7   :  { %2224 = vrot.lane.b32.xlu2 %v4291_v6, %s3769_s2  ;;  %v2063_v6 = vsel %vm557_vm7, %v3057_v48, 0 }
0x10b8   :  { %2072 = vmatpush.bf16.msra.mxu2 %v2063_v6 }
0x10bc   :  { %2276 = vmatpush.bf16.msrb.mxu2 %v2267_v1 }
0x10db   :  { %v2212_v58 = vpop.xlane.xlu0 %2211 }
0x10dc   :  { %3356 = vrcp.f32 %v2212_v58 }
0x10dd   :  { %3358 = vrcp.f32 %v2389_v5 }
0x10de   :  { %3360 = vrcp.f32 %v2209_v0 }
0x10e0   :  { %2394 = vadd.xlane.f32.xlu2 %v2393_v28 }
0x10e2   :  { %v3357_v14 = vpop.eup %3356 }
0x10e3   :  { %v3359_v15 = vpop.eup %3358  ;;  %v2220_v17 = vmul.f32 %v3357_v14, %v4406_v22 }
0x10e4   :  { %v3361_v43 = vpop.eup %3360  ;;  %v2399_v53 = vmul.f32 %v3359_v15, %v4397_v42 }
0x10e5   :  { %v2219_v20 = vmul.f32 %v3361_v43, %v4400_v16 }
0x10e7   :  { %v2222_v25 = vpack.c.bf16 %v2220_v17, %v2219_v20 }
0x10ee   :  { %v2227_v46 = vpop.permute.xlu0 %2226 }
0x10ef   :  { %v2236_v44 = vsel %vm383_vm6, %v2227_v46, 0 }
0x10f0   :  { %2244 = vmatpush.bf16.msrb.mxu1 %v2236_v44  ;;  %v3235_v44 = vld [vmem:[#allocation12 + $0x1] ss:$0 sm:$0xff] }
0x10f6   :  { %v2407_v47 = vpop.permute.xlu0 %2406 }
0x10f7   :  { %v2416_v36 = vsel %vm383_vm6, %v2407_v47, 0 }
0x10f8   :  { %2424 = vmatpush.bf16.msrb.mxu0 %v2416_v36 }
0x10fc   :  { %2425 = vmatpush.bf16.msrb.mxu0 %v2405_v4 }
0x110b   :  { %v2043_v7 = vpop.f32.mrf.mxu1 }
0x1112   :  { %v2392_v11 = vpop.xlane.xlu2 %2391 }
0x1113   :  { %3362 = vrcp.f32 %v2392_v11  ;;  %v2045_v12 = vpop.f32.mrf.mxu1 }
0x1114   :  { %v2054_v13 = vpack.c.bf16 %v2045_v12, %v2043_v7 }
0x1116   :  { %3058 = vmatmul.msk.bf16.vlgmr.msra.gmra.mxu2 %vm550_vm8, %v2054_v13 }
0x1117   :  { %2599 = vmatpush.bf16.msra.mxu2 %v3136_v33 }
0x1119   :  { %v3363_v19 = vpop.eup %3362 }
0x111a   :  { %v2400_v21 = vmul.f32 %v3363_v19, %v3351_v50  ;;  %v2225_v49 = vpop.permute.xlu2 %2224 }
0x111b   :  { %v2048_v24 = vpop.f32.mrf.mxu1  ;;  %2245 = vmatpush.bf16.msrb.mxu1 %v2225_v49 }
0x111c   :  { %v2402_v26 = vpack.c.bf16 %v2400_v21, %v2399_v53  ;;  %v2055_v10 = vpack.c.bf16 %v2048_v24, %v2048_v24 }
0x111e   :  { %3064 = vmatmul.msk.bf16.vlgmr.msrb.gmra.mxu1 %vm585_vm9, %v2222_v25  ;;  %3071 = vmatmul.msk.bf16.vlgmr.msrb.gmra.mxu0 %vm585_vm9, %v2402_v26 }
0x111f   :  { %2456 = vmatpush.bf16.msra.mxu1 %v2447_v35  ;;  %v3135_v35 = vld [vmem:[#allocation16 + $0x10] sm:$0xff] }
0x1120   :  { %2600 = vmatpush.bf16.msra.mxu2 %v3135_v35 }
0x1121   :  { %v2215_v27 = vpop.xlane.xlu0 %2214 }
0x1122   :  { %3364 = vrcp.f32 %v2215_v27 }
0x1123   :  { %v2050_v62 = vpop.f32.mrf.mxu1 }
0x1126   :  { %3059 = vmatmul.msk.bf16.gmra.mxu2 %vm550_vm8, %v2055_v10 }
0x1128   :  { %v3365_v22 = vpop.eup %3364 }
0x1129   :  { %v2221_v42 = vmul.f32 %v3365_v22, %v3353_v40 }
0x112b   :  { %v2223_v30 = vpack.c.bf16 %v2221_v42, %v2221_v42 }
0x112e   :  { %3065 = vmatmul.msk.bf16.gmra.mxu1 %vm585_vm9, %v2223_v30 }
0x1153   :  { %v2395_v16 = vpop.xlane.xlu2 %2394 }
0x1154   :  { %3366 = vrcp.f32 %v2395_v16 }
0x115a   :  { %v3367_v2 = vpop.eup %3366 }
0x115b   :  { %v2401_v31 = vmul.f32 %v3367_v2, %v3355_v63 }
0x115d   :  { %v2403_v32 = vpack.c.bf16 %v2401_v31, %v2401_v31 }
0x115f   :  { %3072 = vmatmul.msk.bf16.gmra.mxu0 %vm585_vm9, %v2403_v32 }
0x1199   :  { %v2074_v37 = vpop.f32.mrf.mxu2 }
0x119a   :  { %v2102_v0 = vadd.f32 %v4357_v3, %v2074_v37 }
0x119b   :  { %v2247_v38 = vpop.f32.mrf.mxu1  ;;  %v2427_v54 = vpop.f32.mrf.mxu0 }
0x11a1   :  { %v2076_v18 = vpop.f32.mrf.mxu2 }
0x11a2   :  { %v2104_v47 = vadd.f32 %v4359_v41, %v2076_v18 }
0x11a3   :  { %v2249_v39 = vpop.f32.mrf.mxu1  ;;  %v2429_v45 = vpop.f32.mrf.mxu0 }
0x11a4   :  { %v2258_v23 = vpack.c.bf16 %v2249_v39, %v2247_v38  ;;  %v2438_v50 = vpack.c.bf16 %v2429_v45, %v2427_v54 }
0x11a6   :  { %3067 = vmatmul.msk.bf16.vlgmr.msrb.gmra.mxu2 %vm550_vm8, %v2258_v23  ;;  %3074 = vmatmul.msk.bf16.vlgmr.msra.gmra.mxu1 %vm550_vm8, %v2438_v50 }
0x11a9   :  { %v2079_v29 = vpop.f32.mrf.mxu2 }
0x11aa   :  { %v2107_v17 = vadd.f32 %v4361_v9, %v2079_v29 }
0x11ab   :  { %v2252_v51 = vpop.f32.mrf.mxu1 }
0x11ac   :  { %v2259_v55 = vpack.c.bf16 %v2252_v51, %v2252_v51 }
0x11b1   :  { %v2081_v40 = vpop.f32.mrf.mxu2 }
0x11b3   :  { %v2254_v52 = vpop.f32.mrf.mxu1 }
0x11b6   :  { %3068 = vmatmul.msk.bf16.gmra.mxu2 %vm550_vm8, %v2259_v55 }
0x11dc   :  { %v2432_v56 = vpop.f32.mrf.mxu0 }
0x11dd   :  { %v2439_v57 = vpack.c.bf16 %v2432_v56, %v2432_v56 }
0x11df   :  { %3075 = vmatmul.msk.bf16.gmra.mxu1 %vm550_vm8, %v2439_v57 }
0x11e4   :  { %v2434_v63 = vpop.f32.mrf.mxu0 }
0x11e5   :  { %v3236_v63 = vld [vmem:[#allocation13 + $0x1] ss:$0 sm:$0xff] }
0x1223   :  { %v2458_v28 = vpop.f32.mrf.mxu1 }
0x1229   :  { %v2278_v58 = vpop.f32.mrf.mxu2 }
0x122a   :  { %v2287_v46 = vadd.f32 %v2278_v58, %v2102_v0 }
0x122b   :  { %v2460_v11 = vpop.f32.mrf.mxu1 }
0x122c   :  { %v2467_v48 = vadd.f32 %v2458_v28, %v2287_v46  ;;  %v3237_v46 = vld [vmem:[#allocation15 + $0x1] ss:$0 sm:$0xff] }
0x122e   :  { %v2475_v6 = vadd.f32 %v3235_v44, %v2467_v48 }
0x1230   :  { %v2478_v36 = vadd.f32 %v2475_v6, %v4263_v59 }
0x1231   :  { %v2280_v4 = vpop.f32.mrf.mxu2 }
0x1232   :  { %v2288_v5 = vadd.f32 %v2280_v4, %v2104_v47  ;;  %v2485_v7 = vsel %vm352_vm5, %v2478_v36, 0.0 }
0x1233   :  { %2486 = vadd.xlane.f32.xlu1 %v2485_v7 }
0x1234   :  { %v2468_v12 = vadd.f32 %v2460_v11, %v2288_v5 }
0x1236   :  { %v2476_v13 = vadd.f32 %v3235_v44, %v2468_v12 }
0x1238   :  { %v2479_v3 = vadd.f32 %v2476_v13, %v4265_v60 }
0x1239   :  { %v2283_v14 = vpop.f32.mrf.mxu2 }
0x123a   :  { %v2488_v15 = vsel %vm352_vm5, %v2479_v3, 0.0  ;;  %v2289_v41 = vadd.f32 %v2283_v14, %v2107_v17 }
0x123b   :  { %2489 = vadd.xlane.f32.xlu0 %v2488_v15 }
0x1241   :  { %v2285_v43 = vpop.f32.mrf.mxu2 }
0x125c   :  { %v2463_v19 = vpop.f32.mrf.mxu1 }
0x125d   :  { %v2469_v59 = vadd.f32 %v2463_v19, %v2289_v41 }
0x125f   :  { %v2477_v53 = vadd.f32 %v3235_v44, %v2469_v59 }
0x1261   :  { %v2480_v20 = vadd.f32 %v2477_v53, %v4273_v8 }
0x1263   :  { %v2491_v21 = vsel %vm1243_vm11, %v2480_v20, 0.0 }
0x1264   :  { %v2465_v49 = vpop.f32.mrf.mxu1  ;;  %2492 = vadd.xlane.f32.xlu0 %v2491_v21 }
0x12a6   :  { %v2487_v24 = vpop.xlane.xlu1 %2486 }
0x12a7   :  { %v2494_v60 = vmul.f32 %v2487_v24, %v4165_v61 }
0x12a9   :  { %v2497_v25 = vsub.f32 %v2478_v36, %v2494_v60 }
0x12ab   :  { %v2500_v26 = vmul.f32 %v2497_v25, %v2497_v25 }
0x12ad   :  { %v2503_v27 = vsel %vm352_vm5, %v2500_v26, 0.0 }
0x12ae   :  { %2504 = vadd.xlane.f32.xlu2 %v2503_v27  ;;  %v2490_v62 = vpop.xlane.xlu0 %2489 }
0x12af   :  { %v2495_v9 = vmul.f32 %v2490_v62, %v4165_v61 }
0x12b1   :  { %v2498_v10 = vsub.f32 %v2479_v3, %v2495_v9 }
0x12b3   :  { %v2501_v22 = vmul.f32 %v2498_v10, %v2498_v10 }
0x12b5   :  { %v2506_v42 = vsel %vm352_vm5, %v2501_v22, 0.0 }
0x12b6   :  { %2507 = vadd.xlane.f32.xlu0 %v2506_v42 }
0x12d7   :  { %v2493_v8 = vpop.xlane.xlu0 %2492 }
0x12d8   :  { %v2496_v30 = vmul.f32 %v2493_v8, %v4165_v61 }
0x12da   :  { %v2499_v16 = vsub.f32 %v2480_v20, %v2496_v30  ;;  %v4479_v20 = vld [vmem:[#allocation18 + $0x1] ss:$0 sm:$0xff] }
0x12dc   :  { %v2502_v2 = vmul.f32 %v2499_v16, %v2499_v16 }
0x12de   :  { %v2509_v31 = vsel %vm1243_vm11, %v2502_v2, 0.0  ;;  %v3140_v2 = vld [vmem:[%s4563_s16 + $0x38] sm:$0xff] }
0x12df   :  { %2510 = vadd.xlane.f32.xlu1 %v2509_v31  ;;  %2781 = vmatpush.bf16.msra.mxu3 %v3140_v2 }
0x1321   :  { %v2505_v32 = vpop.xlane.xlu2 %2504 }
0x1322   :  { %v2512_v34 = vmul.f32 %v2505_v32, %v4165_v61 }
0x1324   :  { %v2515_v1 = vadd.f32 1e-05, %v2512_v34 }
0x1326   :  { %3368 = vrsqrt.f32 %v2515_v1  ;;  %vm2524_vm7 = vweird.f32 %v2515_v1 }
0x1329   :  { %v2508_v37 = vpop.xlane.xlu0 %2507 }
0x132a   :  { %v2513_v38 = vmul.f32 %v2508_v37, %v4165_v61 }
0x132c   :  { %v3369_v54 = vpop.eup %3368  ;;  %v2516_v18 = vadd.f32 1e-05, %v2513_v38 }
0x132d   :  { %v2519_v39 = vmul.f32 %v3369_v54, %v2515_v1  ;;  %vm2525_vm6 = vweird.f32 %v3369_v54  ;;  %v3139_v1 = vld [vmem:[%s4563_s16 + $0x30] sm:$0xff] }
0x132e   :  { %3370 = vrsqrt.f32 %v2516_v18  ;;  %vm2526_vm8 = vmor %vm2524_vm7, %vm2525_vm6  ;;  %vm2534_vm10 = vweird.f32 %v2516_v18  ;;  %2782 = vmatpush.bf16.msra.mxu3 %v3139_v1 }
0x132f   :  { %v2520_v45 = vmul.f32 %v3369_v54, %v2519_v39 }
0x1331   :  { %v2521_v23 = vmul.f32 0.5, %v2520_v45 }
0x1333   :  { %v2522_v50 = vsub.f32 1.5, %v2521_v23  ;;  %v3138_v23 = vld [vmem:[%s4563_s16 + $0x28] sm:$0xff] }
0x1334   :  { %v3371_v29 = vpop.eup %3370  ;;  %2783 = vmatpush.bf16.msra.mxu3 %v3138_v23 }
0x1335   :  { %v2523_v51 = vmul.f32 %v3369_v54, %v2522_v50  ;;  %v2529_v40 = vmul.f32 %v3371_v29, %v2516_v18  ;;  %vm2535_vm9 = vweird.f32 %v3371_v29 }
0x1336   :  { %vm2536_vm12 = vmor %vm2534_vm10, %vm2535_vm9 }
0x1337   :  { %v2530_v52 = vmul.f32 %v3371_v29, %v2529_v40  ;;  %v2527_v55 = vsel %vm2526_vm8, %v3369_v54, %v2523_v51 }
0x1338   :  { %v2548_v0 = vmul.f32 %v2527_v55, %v2497_v25 }
0x1339   :  { %v2531_v56 = vmul.f32 0.5, %v2530_v52 }
0x133a   :  { %v2554_v44 = vmul.f32 %v3236_v63, %v2548_v0 }
0x133b   :  { %v2532_v57 = vsub.f32 1.5, %v2531_v56 }
0x133c   :  { %v4466_v47 = vadd.f32 %v3237_v46, %v2554_v44 }
0x133d   :  { %v2533_v28 = vmul.f32 %v3371_v29, %v2532_v57  ;;  %v3137_v57 = vld [vmem:[%s4563_s16 + $0x20] sm:$0xff] }
0x133e   :  { %2784 = vmatpush.bf16.msra.mxu3 %v3137_v57 }
0x133f   :  { %v2537_v58 = vsel %vm2536_vm12, %v3371_v29, %v2533_v28 }
0x1340   :  { %v2549_v48 = vmul.f32 %v2537_v58, %v2498_v10 }
0x1342   :  { %v2555_v6 = vmul.f32 %v3236_v63, %v2549_v48 }
0x1344   :  { %v4468_v36 = vadd.f32 %v3237_v46, %v2555_v6 }
0x1346   :  { %v2568_v4 = vpack.c.bf16 %v4468_v36, %v4466_v47 }
0x1348   :  { %3084 = vmatmul.msk.bf16.vlgmr.msra.gmra.mxu2 %vm352_vm5, %v2568_v4 }
0x1352   :  { %v2511_v5 = vpop.xlane.xlu1 %2510 }
0x1353   :  { %v2514_v7 = vmul.f32 %v2511_v5, %v4165_v61 }
0x1355   :  { %v2517_v11 = vadd.f32 1e-05, %v2514_v7 }
0x1357   :  { %3372 = vrsqrt.f32 %v2517_v11  ;;  %vm2544_vm14 = vweird.f32 %v2517_v11 }
0x135d   :  { %v3373_v12 = vpop.eup %3372 }
0x135e   :  { %v2539_v13 = vmul.f32 %v3373_v12, %v2517_v11  ;;  %vm2545_vm13 = vweird.f32 %v3373_v12 }
0x135f   :  { %vm2546_vm15 = vmor %vm2544_vm14, %vm2545_vm13 }
0x1360   :  { %v2540_v3 = vmul.f32 %v3373_v12, %v2539_v13 }
0x1362   :  { %v2541_v14 = vmul.f32 0.5, %v2540_v3 }
0x1364   :  { %v2542_v15 = vsub.f32 1.5, %v2541_v14 }
0x1366   :  { %v2543_v43 = vmul.f32 %v3373_v12, %v2542_v15 }
0x1368   :  { %v2547_v17 = vsel %vm2546_vm15, %v3373_v12, %v2543_v43 }
0x1369   :  { %v2550_v41 = vmul.f32 %v2547_v17, %v2499_v16 }
0x136b   :  { %v2556_v19 = vmul.f32 %v3236_v63, %v2550_v41 }
0x136d   :  { %v4474_v59 = vadd.f32 %v3237_v46, %v2556_v19 }
0x136f   :  { %v2569_v53 = vpack.c.bf16 %v4474_v59, %v4474_v59 }
0x1371   :  { %3085 = vmatmul.msk.bf16.gmra.mxu2 %vm352_vm5, %v2569_v53 }
0x13cb   :  { %v2602_v21 = vpop.f32.mrf.mxu2 }
0x13cc   :  { %v4482_v49 = vadd.f32 %v4479_v20, %v2602_v21 }
0x13ce   :  { %v4485_v24 = vmul.f32 0.70710677, %v4482_v49 }
0x13d0   :  { %v2617_v60 = vand.u32 2147483647, %v4485_v24  ;;  %vm2716_vm10 = vcmp.ge.f32.partialorder %v4485_v24, 0.0 }
0x13d2   :  { %v2620_v25 = vmul.f32 0.3275911, %v2617_v60  ;;  %v2698_v18 = vsub.f32 0.0, %v2617_v60 }
0x13d3   :  { %v2604_v26 = vpop.f32.mrf.mxu2 }
0x13d4   :  { %v2623_v27 = vadd.f32 1.0, %v2620_v25  ;;  %v4489_v62 = vadd.f32 %v4479_v20, %v2604_v26  ;;  %v2701_v40 = vmul.f32 %v2698_v18, %v2617_v60  ;;  %v2611_v18 = vmul.f32 0.5, %v4482_v49 }
0x13d6   :  { %3374 = vrcp.f32 %v2623_v27  ;;  %v4492_v9 = vmul.f32 0.70710677, %v4489_v62  ;;  %v2637_v31 = vand.u32 2147483648, %v2623_v27  ;;  %v2635_v33 = vand.u32 2147483647, %v2623_v27 }
0x13d7   :  { %vm2631_vm1 = vweird.f32 %v2623_v27  ;;  %v2704_v58 = vmul.f32 1.442695, %v2701_v40 }
0x13d8   :  { %v2618_v10 = vand.u32 2147483647, %v4492_v9  ;;  %v2638_v35 = vor.u32 1.1754944e-38, %v2637_v31  ;;  %vm2636_vm4 = vcmp.eq.f32.partialorder %v2635_v33, 8.507059e+37  ;;  %vm2717_vm12 = vcmp.ge.f32.partialorder %v4492_v9, 0.0 }
0x13da   :  { %v2621_v22 = vmul.f32 0.3275911, %v2618_v10  ;;  %v2699_v6 = vsub.f32 0.0, %v2618_v10 }
0x13dc   :  { %v3375_v42 = vpop.eup %3374  ;;  %v2624_v30 = vadd.f32 1.0, %v2621_v22  ;;  %v2702_v12 = vmul.f32 %v2699_v6, %v2618_v10 }
0x13dd   :  { %v2627_v8 = vmul.f32 %v3375_v42, %v2623_v27  ;;  %vm2632_vm0 = vweird.f32 %v3375_v42 }
0x13de   :  { %3376 = vrcp.f32 %v2624_v30  ;;  %vm2633_vm3 = vmor %vm2631_vm1, %vm2632_vm0  ;;  %v2652_v51 = vand.u32 2147483648, %v2624_v30  ;;  %v2650_v55 = vand.u32 2147483647, %v2624_v30  ;;  %vm2646_vm7 = vweird.f32 %v2624_v30 }
0x13df   :  { %v2628_v16 = vsub.f32 1.0, %v2627_v8  ;;  %3378 = vpow2.f32 %v2704_v58  ;;  %v2706_v41 = vmul.f32 1.442695, %v2702_v12 }
0x13e0   :  { %v2653_v28 = vor.u32 1.1754944e-38, %v2652_v51  ;;  %vm2651_vm9 = vcmp.eq.f32.partialorder %v2650_v55, 8.507059e+37 }
0x13e1   :  { %v2629_v32 = vmul.f32 %v3375_v42, %v2628_v16  ;;  %3380 = vpow2.f32 %v2706_v41  ;;  %v3239_v41 = vld [vmem:[#allocation19 + $0x1] ss:$0 sm:$0xff] }
0x13e3   :  { %v2630_v34 = vadd.f32 %v3375_v42, %v2629_v32 }
0x13e4   :  { %v3377_v37 = vpop.eup %3376 }
0x13e5   :  { %v2634_v38 = vsel %vm2633_vm3, %v3375_v42, %v2630_v34  ;;  %v2642_v39 = vmul.f32 %v3377_v37, %v2624_v30  ;;  %vm2647_vm6 = vweird.f32 %v3377_v37  ;;  %v3379_v53 = vpop.eup %3378 }
0x13e6   :  { %v2639_v54 = vsel %vm2636_vm4, %v2638_v35, %v2634_v38  ;;  %vm2648_vm8 = vmor %vm2646_vm7, %vm2647_vm6 }
0x13e7   :  { %v2671_v45 = vmul.f32 1.0614054, %v2639_v54  ;;  %v2643_v50 = vsub.f32 1.0, %v2642_v39  ;;  %v3381_v2 = vpop.eup %3380  ;;  %v2612_v39 = vmul.f32 0.5, %v4489_v62 }
0x13e9   :  { %v2674_v29 = vadd.f32 -1.4531521, %v2671_v45  ;;  %v2644_v52 = vmul.f32 %v3377_v37, %v2643_v50 }
0x13eb   :  { %v2677_v56 = vmul.f32 %v2674_v29, %v2639_v54  ;;  %v2645_v63 = vadd.f32 %v3377_v37, %v2644_v52 }
0x13ed   :  { %v2680_v0 = vadd.f32 1.4214138, %v2677_v56  ;;  %v2649_v46 = vsel %vm2648_vm8, %v3377_v37, %v2645_v63  ;;  %vm2882_vm8 = vcmask 261121  }
0x13ee   :  { %v2654_v48 = vsel %vm2651_vm9, %v2653_v28, %v2649_v46 }
0x13ef   :  { %v2683_v44 = vmul.f32 %v2680_v0, %v2639_v54  ;;  %v2672_v4 = vmul.f32 1.0614054, %v2654_v48 }
0x13f1   :  { %v2686_v5 = vadd.f32 -0.28449672, %v2683_v44  ;;  %v2675_v7 = vadd.f32 -1.4531521, %v2672_v4 }
0x13f3   :  { %v2689_v11 = vmul.f32 %v2686_v5, %v2639_v54  ;;  %v2678_v13 = vmul.f32 %v2675_v7, %v2654_v48 }
0x13f4   :  { %v2607_v3 = vpop.f32.mrf.mxu2 }
0x13f5   :  { %v2692_v14 = vadd.f32 0.2548296, %v2689_v11  ;;  %v4508_v15 = vadd.f32 %v4479_v20, %v2607_v3  ;;  %v2681_v43 = vadd.f32 1.4214138, %v2678_v13 }
0x13f7   :  { %v2695_v17 = vmul.f32 %v2692_v14, %v2639_v54  ;;  %v4511_v19 = vmul.f32 0.70710677, %v4508_v15  ;;  %v2684_v21 = vmul.f32 %v2681_v43, %v2654_v48  ;;  %v2613_v3 = vmul.f32 0.5, %v4508_v15 }
0x13f9   :  { %v2710_v60 = vmul.f32 %v3379_v53, %v2695_v17  ;;  %v2619_v25 = vand.u32 2147483647, %v4511_v19  ;;  %v2687_v26 = vadd.f32 -0.28449672, %v2684_v21  ;;  %vm2718_vm1 = vcmp.ge.f32.partialorder %v4511_v19, 0.0 }
0x13fb   :  { %v2622_v27 = vmul.f32 0.3275911, %v2619_v25  ;;  %v2713_v10 = vsub.f32 1.0, %v2710_v60  ;;  %v2690_v22 = vmul.f32 %v2687_v26, %v2654_v48  ;;  %v2700_v57 = vsub.f32 0.0, %v2619_v25 }
0x13fc   :  { %v2609_v42 = vpop.f32.mrf.mxu2 }
0x13fd   :  { %v2625_v8 = vadd.f32 1.0, %v2622_v27  ;;  %v2693_v20 = vadd.f32 0.2548296, %v2690_v22  ;;  %v2719_v30 = vsub.f32 0.0, %v2713_v10  ;;  %v2703_v63 = vmul.f32 %v2700_v57, %v2619_v25 }
0x13ff   :  { %3382 = vrcp.f32 %v2625_v8  ;;  %v2696_v16 = vmul.f32 %v2693_v20, %v2654_v48  ;;  %v2722_v32 = vsel %vm2716_vm10, %v2713_v10, %v2719_v30  ;;  %v2667_v23 = vand.u32 2147483648, %v2625_v8 }
0x1400   :  { %v2725_v37 = vadd.f32 1.0, %v2722_v32  ;;  %v2665_v29 = vand.u32 2147483647, %v2625_v8  ;;  %vm2661_vm14 = vweird.f32 %v2625_v8  ;;  %v2708_v58 = vmul.f32 1.442695, %v2703_v63 }
0x1401   :  { %v2711_v31 = vmul.f32 %v3381_v2, %v2696_v16  ;;  %v2668_v55 = vor.u32 1.1754944e-38, %v2667_v23 }
0x1402   :  { %v2728_v24 = vmul.f32 %v2725_v37, %v2611_v18  ;;  %vm2666_vm0 = vcmp.eq.f32.partialorder %v2665_v29, 8.507059e+37  ;;  %3384 = vpow2.f32 %v2708_v58 }
0x1403   :  { %v2714_v33 = vsub.f32 1.0, %v2711_v31 }
0x1405   :  { %v3383_v34 = vpop.eup %3382  ;;  %v2720_v1 = vsub.f32 0.0, %v2714_v33 }
0x1406   :  { %v2657_v35 = vmul.f32 %v3383_v34, %v2625_v8  ;;  %vm2662_vm13 = vweird.f32 %v3383_v34 }
0x1407   :  { %v2723_v38 = vsel %vm2717_vm12, %v2714_v33, %v2720_v1  ;;  %vm2663_vm15 = vmor %vm2661_vm14, %vm2662_vm13  ;;  %vm2884_vm12 = vcmask 253952  }
0x1408   :  { %v2658_v54 = vsub.f32 1.0, %v2657_v35  ;;  %v2726_v45 = vadd.f32 1.0, %v2723_v38  ;;  %v3385_v5 = vpop.eup %3384 }
0x140a   :  { %v2659_v50 = vmul.f32 %v3383_v34, %v2658_v54  ;;  %v2729_v51 = vmul.f32 %v2726_v45, %v2612_v39 }
0x140c   :  { %v2660_v40 = vadd.f32 %v3383_v34, %v2659_v50  ;;  %v2740_v52 = vpack.c.bf16 %v2729_v51, %v2728_v24 }
0x140e   :  { %v2664_v56 = vsel %vm2663_vm15, %v3383_v34, %v2660_v40  ;;  %3110 = vmatmul.msk.bf16.vlgmr.msra.gmra.mxu3 %vm1527_vm2, %v2740_v52 }
0x140f   :  { %v2669_v9 = vsel %vm2666_vm0, %v2668_v55, %v2664_v56 }
0x1410   :  { %v2673_v49 = vmul.f32 1.0614054, %v2669_v9 }
0x1412   :  { %v2676_v62 = vadd.f32 -1.4531521, %v2673_v49  ;;  %v3240_v49 = vld [vmem:[#allocation21 + $0x1] ss:$0 sm:$0xff] }
0x1414   :  { %v2679_v0 = vmul.f32 %v2676_v62, %v2669_v9 }
0x1416   :  { %v2682_v28 = vadd.f32 1.4214138, %v2679_v0  ;;  %v3241_v0 = vld [vmem:[#allocation22 + $0x1] ss:$0 sm:$0xff] }
0x1418   :  { %v2685_v46 = vmul.f32 %v2682_v28, %v2669_v9 }
0x141a   :  { %v2688_v44 = vadd.f32 -0.28449672, %v2685_v46 }
0x141c   :  { %v2691_v48 = vmul.f32 %v2688_v44, %v2669_v9 }
0x141e   :  { %v2694_v6 = vadd.f32 0.2548296, %v2691_v48 }
0x1420   :  { %v2697_v4 = vmul.f32 %v2694_v6, %v2669_v9 }
0x1422   :  { %v2712_v7 = vmul.f32 %v3385_v5, %v2697_v4 }
0x1424   :  { %v2715_v11 = vsub.f32 1.0, %v2712_v7 }
0x1426   :  { %v2721_v12 = vsub.f32 0.0, %v2715_v11 }
0x1428   :  { %v2724_v13 = vsel %vm2718_vm1, %v2715_v11, %v2721_v12 }
0x1429   :  { %v2727_v14 = vadd.f32 1.0, %v2724_v13 }
0x142b   :  { %v2730_v43 = vmul.f32 %v2727_v14, %v2613_v3 }
0x142d   :  { %v2741_v17 = vpack.c.bf16 %v2730_v43, %v2730_v43 }
0x142f   :  { %3111 = vmatmul.msk.bf16.gmra.mxu3 %vm1527_vm2, %v2741_v17 }
0x1491   :  { %v2786_v53 = vpop.f32.mrf.mxu3 }
0x1492   :  { %v2787_v21 = vadd.f32 %v3239_v41, %v2786_v53 }
0x1494   :  { %v2795_v60 = vadd.f32 %v2787_v21, %v4466_v47 }
0x1496   :  { %v2802_v25 = vsel %vm352_vm5, %v2795_v60, 0.0 }
0x1497   :  { %2803 = vadd.xlane.f32.xlu2 %v2802_v25 }
0x1499   :  { %v2788_v26 = vpop.f32.mrf.mxu3 }
0x149a   :  { %v2789_v27 = vadd.f32 %v3239_v41, %v2788_v26 }
0x149c   :  { %v2796_v19 = vadd.f32 %v2789_v27, %v4468_v36 }
0x149e   :  { %v2805_v10 = vsel %vm352_vm5, %v2796_v19, 0.0 }
0x149f   :  { %2806 = vadd.xlane.f32.xlu0 %v2805_v10 }
0x14b2   :  { %v2791_v15 = vpop.f32.mrf.mxu3 }
0x14b3   :  { %v2792_v22 = vadd.f32 %v3239_v41, %v2791_v15 }
0x14b5   :  { %v2797_v42 = vadd.f32 %v2792_v22, %v4474_v59 }
0x14b7   :  { %v2808_v8 = vsel %vm1243_vm11, %v2797_v42, 0.0 }
0x14b8   :  { %2809 = vadd.xlane.f32.xlu1 %v2808_v8 }
0x14ba   :  { %v2793_v20 = vpop.f32.mrf.mxu3 }
0x150a   :  { %v2804_v30 = vpop.xlane.xlu2 %2803 }
0x150b   :  { %v2811_v47 = vmul.f32 %v2804_v30, %v4165_v61 }
0x150d   :  { %v2814_v16 = vsub.f32 %v2795_v60, %v2811_v47 }
0x150f   :  { %v2817_v2 = vmul.f32 %v2814_v16, %v2814_v16 }
0x1511   :  { %v2820_v31 = vsel %vm352_vm5, %v2817_v2, 0.0 }
0x1512   :  { %v2807_v32 = vpop.xlane.xlu0 %2806  ;;  %2821 = vadd.xlane.f32.xlu2 %v2820_v31 }
0x1513   :  { %v2812_v36 = vmul.f32 %v2807_v32, %v4165_v61 }
0x1515   :  { %v2815_v33 = vsub.f32 %v2796_v19, %v2812_v36 }
0x1517   :  { %v2818_v34 = vmul.f32 %v2815_v33, %v2815_v33 }
0x1519   :  { %v2823_v1 = vsel %vm352_vm5, %v2818_v34, 0.0 }
0x151a   :  { %2824 = vadd.xlane.f32.xlu0 %v2823_v1 }
0x152b   :  { %v2810_v59 = vpop.xlane.xlu1 %2809 }
0x152c   :  { %v2813_v35 = vmul.f32 %v2810_v59, %v4165_v61 }
0x152e   :  { %v2816_v37 = vsub.f32 %v2797_v42, %v2813_v35 }
0x1530   :  { %v2819_v38 = vmul.f32 %v2816_v37, %v2816_v37 }
0x1532   :  { %v2826_v54 = vsel %vm1243_vm11, %v2819_v38, 0.0 }
0x1533   :  { %2827 = vadd.xlane.f32.xlu1 %v2826_v54 }
0x1585   :  { %v2822_v18 = vpop.xlane.xlu2 %2821 }
0x1586   :  { %v2829_v39 = vmul.f32 %v2822_v18, %v4165_v61 }
0x1588   :  { %v2832_v45 = vadd.f32 1e-05, %v2829_v39 }
0x158a   :  { %3386 = vrsqrt.f32 %v2832_v45  ;;  %vm2841_vm11 = vweird.f32 %v2832_v45 }
0x158d   :  { %v2825_v23 = vpop.xlane.xlu0 %2824 }
0x158e   :  { %v2830_v50 = vmul.f32 %v2825_v23, %v4165_v61 }
0x1590   :  { %v3387_v29 = vpop.eup %3386  ;;  %v2833_v24 = vadd.f32 1e-05, %v2830_v50 }
0x1591   :  { %v2836_v51 = vmul.f32 %v3387_v29, %v2832_v45  ;;  %vm2842_vm2 = vweird.f32 %v3387_v29 }
0x1592   :  { %3388 = vrsqrt.f32 %v2833_v24  ;;  %vm2843_vm3 = vmor %vm2841_vm11, %vm2842_vm2  ;;  %vm2851_vm6 = vweird.f32 %v2833_v24 }
0x1593   :  { %v2837_v40 = vmul.f32 %v3387_v29, %v2836_v51 }
0x1595   :  { %v2838_v52 = vmul.f32 0.5, %v2837_v40 }
0x1597   :  { %v2839_v55 = vsub.f32 1.5, %v2838_v52 }
0x1598   :  { %v3389_v56 = vpop.eup %3388 }
0x1599   :  { %v2840_v9 = vmul.f32 %v3387_v29, %v2839_v55  ;;  %v2846_v57 = vmul.f32 %v3389_v56, %v2833_v24  ;;  %vm2852_vm4 = vweird.f32 %v3389_v56 }
0x159a   :  { %vm2853_vm7 = vmor %vm2851_vm6, %vm2852_vm4 }
0x159b   :  { %v2844_v62 = vsel %vm2843_vm3, %v3387_v29, %v2840_v9  ;;  %v2847_v63 = vmul.f32 %v3389_v56, %v2846_v57 }
0x159c   :  { %v2865_v28 = vmul.f32 %v2844_v62, %v2814_v16 }
0x159d   :  { %v2848_v58 = vmul.f32 0.5, %v2847_v63 }
0x159e   :  { %v2871_v46 = vmul.f32 %v3240_v49, %v2865_v28 }
0x159f   :  { %v2849_v44 = vsub.f32 1.5, %v2848_v58 }
0x15a0   :  { %v2877_v48 = vadd.f32 %v3241_v0, %v2871_v46 }
0x15a1   :  { %v2850_v6 = vmul.f32 %v3389_v56, %v2849_v44 }
0x15a2   :  { %2880 = vst.msk [vmem:[%s4581_s11] sm:$0xff] %vm352_vm5, %v2877_v48 }
0x15a3   :  { %v2854_v4 = vsel %vm2853_vm7, %v3389_v56, %v2850_v6 }
0x15a4   :  { %v2866_v5 = vmul.f32 %v2854_v4, %v2815_v33 }
0x15a6   :  { %v2828_v7 = vpop.xlane.xlu1 %2827  ;;  %v2872_v11 = vmul.f32 %v3240_v49, %v2866_v5 }
0x15a7   :  { %v2831_v12 = vmul.f32 %v2828_v7, %v4165_v61 }
0x15a8   :  { %v2878_v13 = vadd.f32 %v3241_v0, %v2872_v11 }
0x15a9   :  { %v2834_v3 = vadd.f32 1e-05, %v2831_v12 }
0x15aa   :  { %3112 = vst.msk [vmem:[%s4581_s11 + $0x7] sm:$0xfe] %vm2882_vm8, %v2878_v13 }
0x15ab   :  { %3390 = vrsqrt.f32 %v2834_v3  ;;  %vm2861_vm9 = vweird.f32 %v2834_v3 }
0x15b1   :  { %v3391_v14 = vpop.eup %3390 }
0x15b2   :  { %v2856_v43 = vmul.f32 %v3391_v14, %v2834_v3  ;;  %vm2862_vm5 = vweird.f32 %v3391_v14 }
0x15b3   :  { %vm2863_vm10 = vmor %vm2861_vm9, %vm2862_vm5 }
0x15b4   :  { %v2857_v17 = vmul.f32 %v3391_v14, %v2856_v43 }
0x15b6   :  { %v2858_v41 = vmul.f32 0.5, %v2857_v17 }
0x15b8   :  { %v2859_v53 = vsub.f32 1.5, %v2858_v41 }
0x15ba   :  { %v2860_v21 = vmul.f32 %v3391_v14, %v2859_v53 }
0x15bc   :  { %v2864_v60 = vsel %vm2863_vm10, %v3391_v14, %v2860_v21 }
0x15bd   :  { %v2867_v25 = vmul.f32 %v2864_v60, %v2816_v37 }
0x15bf   :  { %v2873_v61 = vmul.f32 %v3240_v49, %v2867_v25 }
0x15c1   :  { %v2879_v26 = vadd.f32 %v3241_v0, %v2873_v61 }
0x15c3   :  { %3113 = vst.msk [vmem:[%s4581_s11 + $0xf] sm:$0x1] %vm2884_vm12, %v2879_v26 }
0x15c4   :  { %2890 = vsyncpa [#allocation3], 1 }
0x15c5   :  { %2891 = vsyncpa [#allocation5], 1 }
0x15c6   :  { %2892 = vsyncpa [#allocation8], 1 }
0x15c7   :  { %2893 = vsyncpa [#allocation11], 1 }
0x15c8   :  { %2894 = vsyncpa [#allocation14], 1 }
0x15c9   :  { %2895 = vsyncpa [#allocation17], 1 }
0x15ca   :  { %2896 = vsyncpa [#allocation20], 1 }
0x15cb   :  { %2897 = vsyncpa [#allocation23], 1 }

</bundles_post_ra>
